<compile_context>
chip_gen: v7x
topology: tpu7x:2x2x1
jax: 0.10.0
libtpu: 0.0.40
codegen_flags: <defaults>
</compile_context>

<pallas_src>
import functools

import jax
import jax.numpy as jnp
from jax.experimental import pallas as pl
from jax.experimental.pallas import tpu as pltpu


# ---------------------------------------------------------------------------
# Fused kernel: conv1x1+bn1+relu -> conv3x3+bn2+relu -> conv1x1+bn3
#               -> +identity -> relu.   One image (flattened (H*W, C)) / step.
# ---------------------------------------------------------------------------

def _bottleneck_kernel(x_ref, col_ref, w1_ref, b1_ref, w2_ref, b2_ref,
                       w3_ref, b3_ref, o_ref, t1p_ref, *, H, W, pad):
    HW = H * W
    Cmid = w1_ref.shape[1]

    x = x_ref[0]                                   # (HW, Cin) bf16
    identity = x.astype(jnp.float32)               # residual path (f32 epilogue)

    # ---- conv1 (1x1) + bn1 + relu (BN scale pre-folded into w1) -----------
    t1 = jnp.dot(x, w1_ref[...], preferred_element_type=jnp.float32)
    t1 = jnp.maximum(t1 + b1_ref[...], 0.0)        # (HW, Cmid) f32

    # ---- stage conv1 output in a row-padded VMEM scratch -------------------
    # Rows falling outside the image land in the zeroed halos, which gives the
    # conv's zero padding along H for free.  `pad` is a multiple of 8 so the
    # interior store is sublane-aligned; the scratch is f32 so the shifted tap
    # slices below are plain (unpacked) 32-bit sublane loads.
    zeros_pad = jnp.zeros((pad, Cmid), jnp.float32)
    t1p_ref[0:pad, :] = zeros_pad
    t1p_ref[pad + HW:pad + HW + pad, :] = zeros_pad
    t1p_ref[pad:pad + HW, :] = t1

    # Column-validity masks (zero padding along W).  Row validity is handled by
    # the zero halos above.  col_ref holds (m % W) precomputed on the host.
    col = col_ref[...]                             # (HW, 1) int32
    left_ok = col >= 1                             # taps with dx == 0 read w-1
    right_ok = col <= W - 2                        # taps with dx == 2 read w+1

    # ---- conv2 (3x3, pad=1, stride=1) + bn2 + relu -------------------------
    # Nine shifted slices of the scratch, each an MXU matmul with f32
    # accumulation.  No HBM im2col, no extra HBM traffic.
    acc = jnp.zeros((HW, Cmid), jnp.float32)
    for dy in range(3):
        for dx in range(3):
            shift = (dy - 1) * W + (dx - 1)
            tap = t1p_ref[pad + shift:pad + shift + HW, :]   # (HW, Cmid) f32
            if dx == 0:
                tap = jnp.where(left_ok, tap, 0.0)
            elif dx == 2:
                tap = jnp.where(right_ok, tap, 0.0)
            acc = acc + jnp.dot(tap.astype(jnp.bfloat16), w2_ref[3 * dy + dx],
                                preferred_element_type=jnp.float32)
    t2 = jnp.maximum(acc + b2_ref[...], 0.0)       # (HW, Cmid) f32

    # ---- conv3 (1x1) + bn3 + residual add + relu ---------------------------
    y = jnp.dot(t2.astype(jnp.bfloat16), w3_ref[...],
                preferred_element_type=jnp.float32)
    y = y + b3_ref[...] + identity
    o_ref[0] = jnp.maximum(y, 0.0).astype(o_ref.dtype)


# ---------------------------------------------------------------------------
# Host-side wrapper (layout + BN folding + pallas_call plumbing)
# ---------------------------------------------------------------------------

def _fold_bn(gamma, beta, mean, var, eps=1e-5):
    scale = gamma / jnp.sqrt(var + eps)
    bias = beta - mean * scale
    return scale, bias


def bottleneck_forward(x_nchw, params, stride=1):
    """Fused Pallas Bottleneck forward.  Input/output NCHW (PyTorch layout)."""
    if stride != 1:
        # TODO(synk): stride>1 needs a strided conv2 + downsample on identity.
        raise NotImplementedError(
            "Pallas Bottleneck kernel supports stride=1 (downsample=None) only.")

    x = jnp.transpose(x_nchw, (0, 2, 3, 1))        # NCHW -> NHWC
    N, H, W, Cin = x.shape

    s1, b1 = _fold_bn(*params["bn1"])
    s2, b2 = _fold_bn(*params["bn2"])
    s3, b3 = _fold_bn(*params["bn3"])

    # Fold BN scale into conv weights (one-time host cost), cast MXU operands
    # to bf16; biases stay f32 for the f32-accumulator epilogue.
    w1 = (params["w1"] * s1[None, :]).astype(jnp.bfloat16)          # (Cin, Cmid)
    w2 = (params["w2"] * s2[None, None, :]).astype(jnp.bfloat16)    # (9, Cmid, Cmid)
    w3 = (params["w3"] * s3[None, :]).astype(jnp.bfloat16)          # (Cmid, Cout)
    Cmid, Cout = w1.shape[1], w3.shape[1]
    assert Cout == Cin, "identity skip requires inplanes == planes * expansion"

    b1 = b1.astype(jnp.float32)[None, :]
    b2 = b2.astype(jnp.float32)[None, :]
    b3 = b3.astype(jnp.float32)[None, :]

    HW = H * W
    x2 = x.reshape(N, HW, Cin).astype(jnp.bfloat16)
    col = (jnp.arange(HW, dtype=jnp.int32) % W).reshape(HW, 1)

    # Halo size: >= W+1 (max 3x3 tap shift), rounded up to a multiple of 8 so
    # the interior scratch store is sublane-aligned.
    pad = ((W + 1 + 7) // 8) * 8

    kernel = functools.partial(_bottleneck_kernel, H=H, W=W, pad=pad)

    out = pl.pallas_call(
        kernel,
        out_shape=jax.ShapeDtypeStruct((N, HW, Cout), jnp.float32),
        grid=(N,),
        in_specs=[
            pl.BlockSpec((1, HW, Cin), lambda n: (n, 0, 0)),     # x (one image)
            pl.BlockSpec((HW, 1), lambda n: (0, 0)),             # col = m % W
            pl.BlockSpec((Cin, Cmid), lambda n: (0, 0)),         # w1 (resident)
            pl.BlockSpec((1, Cmid), lambda n: (0, 0)),           # b1
            pl.BlockSpec((9, Cmid, Cmid), lambda n: (0, 0, 0)),  # w2
            pl.BlockSpec((1, Cmid), lambda n: (0, 0)),           # b2
            pl.BlockSpec((Cmid, Cout), lambda n: (0, 0)),        # w3
            pl.BlockSpec((1, Cout), lambda n: (0, 0)),           # b3
        ],
        out_specs=pl.BlockSpec((1, HW, Cout), lambda n: (n, 0, 0)),
        scratch_shapes=[pltpu.VMEM((HW + 2 * pad, Cmid), jnp.float32)],
        compiler_params=pltpu.CompilerParams(
            dimension_semantics=("parallel",),   # shard batch across TCs (v7x)
            vmem_limit_bytes=32 * 1024 * 1024,
        ),
    )(x2, col, w1, b1, w2, b2, w3, b3)

    out = out.reshape(N, H, W, Cout)
    return jnp.transpose(out, (0, 3, 1, 2))        # NHWC -> NCHW


# ---------------------------------------------------------------------------
# Parameters (demo) + pure-JAX reference (eval-mode BN) for verification
# ---------------------------------------------------------------------------

def make_bottleneck_params(key, inplanes, planes, expansion=4):
    ks = jax.random.split(key, 12)
    p = {}
    # conv weights in PyTorch layout (Cout, Cin, kh, kw) -> kernel layouts
    w1 = jax.random.normal(ks[0], (planes, inplanes, 1, 1), jnp.float32) * 0.1
    w2 = jax.random.normal(ks[1], (planes, planes, 3, 3), jnp.float32) * 0.1
    w3 = jax.random.normal(ks[2], (planes * expansion, planes, 1, 1),
                           jnp.float32) * 0.1
    p["w1"] = jnp.transpose(w1[:, :, 0, 0], (1, 0))                  # (Cin, Cmid)
    p["w2"] = jnp.transpose(w2, (2, 3, 1, 0)).reshape(9, planes, planes)
    p["w3"] = jnp.transpose(w3[:, :, 0, 0], (1, 0))                  # (Cmid, Cout)
    p["w1_t"], p["w2_t"], p["w3_t"] = w1, w2, w3   # for the pure-JAX reference

    def bn(kg, kb, km, kv, c):
        gamma = 1.0 + 0.1 * jax.random.normal(kg, (c,), jnp.float32)
        beta = 0.1 * jax.random.normal(kb, (c,), jnp.float32)
        mean = 0.1 * jax.random.normal(km, (c,), jnp.float32)
        var = jnp.abs(jax.random.normal(kv, (c,), jnp.float32)) + 0.5
        return gamma, beta, mean, var

    p["bn1"] = bn(ks[3], ks[4], ks[5], ks[6], planes)
    p["bn2"] = bn(ks[7], ks[8], ks[9], ks[10], planes)
    p["bn3"] = bn(ks[11], ks[0], ks[1], ks[2], planes * expansion)
    return p


def _ref_bottleneck(x_nchw, params, stride=1, eps=1e-5):
    def conv(x, w, stride, pad):
        return jax.lax.conv_general_dilated(
            x, w, (stride, stride), [(pad, pad), (pad, pad)],
            dimension_numbers=("NCHW", "OIHW", "NCHW"))

    def bn(x, prm):
        g, b, m, v = prm
        return (x - m[None, :, None, None]) / jnp.sqrt(
            v[None, :, None, None] + eps) * g[None, :, None, None] + \
            b[None, :, None, None]

    out = jax.nn.relu(bn(conv(x_nchw, params["w1_t"], 1, 0), params["bn1"]))
    out = jax.nn.relu(bn(conv(out, params["w2_t"], stride, 1), params["bn2"]))
    out = bn(conv(out, params["w3_t"], 1, 0), params["bn3"])
    out = out + x_nchw
    return jax.nn.relu(out)


# ---------------------------------------------------------------------------

if __name__ == "__main__":
    # inplanes must equal planes * expansion for the identity skip (downsample=None)
    inplanes, planes, expansion = 16, 4, 4
    N, H, W = 2, 16, 16

    key = jax.random.PRNGKey(0)
    kx, kp = jax.random.split(key)
    x = jax.random.normal(kx, (N, inplanes, H, W), jnp.float32)   # NCHW input
    params = make_bottleneck_params(kp, inplanes, planes, expansion)

    out = bottleneck_forward(x, params, stride=1)
    out = jax.block_until_ready(out)

    ref = _ref_bottleneck(x, params, stride=1)
    assert out.shape == (N, planes * expansion, H, W), out.shape
    # bf16 MXU operands (f32 accumulation) vs an all-f32 reference -> loosened
    # tolerance compared to the previous all-f32 kernel.
    max_err = float(jnp.max(jnp.abs(out - ref)))
    assert jnp.allclose(out, ref, atol=5e-2, rtol=5e-2), max_err

    print("KERNEL_OK")
</pallas_src>

<mosaic_0001>
module attributes {stable_mosaic.version = 11 : i64} {
  func.func @_bottleneck_kernel(%arg0: i32, %arg1: memref<1x256x16xbf16, #tpu.memory_space<vmem>>, %arg2: memref<256x1xi32, #tpu.memory_space<vmem>>, %arg3: memref<16x4xbf16, #tpu.memory_space<vmem>>, %arg4: memref<1x4xf32, #tpu.memory_space<vmem>>, %arg5: memref<9x4x4xbf16, #tpu.memory_space<vmem>>, %arg6: memref<1x4xf32, #tpu.memory_space<vmem>>, %arg7: memref<4x16xbf16, #tpu.memory_space<vmem>>, %arg8: memref<1x16xf32, #tpu.memory_space<vmem>>, %arg9: memref<1x256x16xf32, #tpu.memory_space<vmem>>, %arg10: memref<304x4xf32, #tpu.memory_space<vmem>>) attributes {dimension_semantics = [#tpu.dimension_semantics<parallel>], iteration_bounds = array<i64: 2>, scalar_prefetch = 0 : i64, scratch_operands = 1 : i64, tpu.core_type = #tpu.core_type<tc>, window_params = [{transform_indices = @transform_0, window_bounds = array<i64: 1, 256, 16>}, {pipeline_mode = #tpu.pipeline_mode<synchronous>, transform_indices = @transform_1, window_bounds = array<i64: 256, 1>}, {pipeline_mode = #tpu.pipeline_mode<synchronous>, transform_indices = @transform_2, window_bounds = array<i64: 16, 4>}, {pipeline_mode = #tpu.pipeline_mode<synchronous>, transform_indices = @transform_3, window_bounds = array<i64: 1, 4>}, {pipeline_mode = #tpu.pipeline_mode<synchronous>, transform_indices = @transform_4, window_bounds = array<i64: 9, 4, 4>}, {pipeline_mode = #tpu.pipeline_mode<synchronous>, transform_indices = @transform_5, window_bounds = array<i64: 1, 4>}, {pipeline_mode = #tpu.pipeline_mode<synchronous>, transform_indices = @transform_6, window_bounds = array<i64: 4, 16>}, {pipeline_mode = #tpu.pipeline_mode<synchronous>, transform_indices = @transform_7, window_bounds = array<i64: 1, 16>}, {transform_indices = @transform_8, window_bounds = array<i64: 1, 256, 16>}]} {
    %c0 = arith.constant 0 : index
    %c0_0 = arith.constant 0 : index
    %c0_1 = arith.constant 0 : index
    %0 = vector.load %arg1[%c0, %c0_0, %c0_1] : memref<1x256x16xbf16, #tpu.memory_space<vmem>>, vector<1x256x16xbf16>
    %1 = vector.shape_cast %0 : vector<1x256x16xbf16> to vector<256x16xbf16>
    %2 = arith.extf %1 : vector<256x16xbf16> to vector<256x16xf32>
    %c0_2 = arith.constant 0 : index
    %c0_3 = arith.constant 0 : index
    %3 = vector.load %arg3[%c0_2, %c0_3] : memref<16x4xbf16, #tpu.memory_space<vmem>>, vector<16x4xbf16>
    %cst = arith.constant dense<0.000000e+00> : vector<256x4xf32>
    %4 = tpu.matmul %1, %3, %cst {dimension_numbers = #tpu.dot_dimension_numbers<[1], [0], [0], [1], [0, 0, 1, 1], [], []>} : vector<256x16xbf16>, vector<16x4xbf16>, vector<256x4xf32> -> vector<256x4xf32>
    %c0_4 = arith.constant 0 : index
    %c0_5 = arith.constant 0 : index
    %5 = vector.load %arg4[%c0_4, %c0_5] : memref<1x4xf32, #tpu.memory_space<vmem>>, vector<1x4xf32>
    %6 = vector.broadcast %5 : vector<1x4xf32> to vector<256x4xf32>
    %7 = arith.addf %4, %6 : vector<256x4xf32>
    %cst_6 = arith.constant 0.000000e+00 : f32
    %8 = vector.broadcast %cst_6 : f32 to vector<256x4xf32>
    %9 = arith.maximumf %7, %8 : vector<256x4xf32>
    %cst_7 = arith.constant 0.000000e+00 : f32
    %10 = vector.broadcast %cst_7 : f32 to vector<24x4xf32>
    %c0_8 = arith.constant 0 : index
    %c0_9 = arith.constant 0 : index
    %11 = vector.load %arg10[%c0_8, %c0_9] : memref<304x4xf32, #tpu.memory_space<vmem>>, vector<24x4xf32>
    tpu.vector_store %arg10[%c0_8, %c0_9], %10 {strides = array<i32>} : memref<304x4xf32, #tpu.memory_space<vmem>>, vector<24x4xf32>,
    %c280 = arith.constant 280 : index
    %c0_10 = arith.constant 0 : index
    %12 = vector.load %arg10[%c280, %c0_10] : memref<304x4xf32, #tpu.memory_space<vmem>>, vector<24x4xf32>
    tpu.vector_store %arg10[%c280, %c0_10], %10 {strides = array<i32>} : memref<304x4xf32, #tpu.memory_space<vmem>>, vector<24x4xf32>,
    %c24 = arith.constant 24 : index
    %c0_11 = arith.constant 0 : index
    %13 = vector.load %arg10[%c24, %c0_11] : memref<304x4xf32, #tpu.memory_space<vmem>>, vector<256x4xf32>
    tpu.vector_store %arg10[%c24, %c0_11], %9 {strides = array<i32>} : memref<304x4xf32, #tpu.memory_space<vmem>>, vector<256x4xf32>,
    %c0_12 = arith.constant 0 : index
    %c0_13 = arith.constant 0 : index
    %14 = vector.load %arg2[%c0_12, %c0_13] : memref<256x1xi32, #tpu.memory_space<vmem>>, vector<256x1xi32>
    %c1_i32 = arith.constant 1 : i32
    %15 = vector.broadcast %c1_i32 : i32 to vector<256x1xi32>
    %16 = arith.cmpi sge, %14, %15 : vector<256x1xi32>
    %c14_i32 = arith.constant 14 : i32
    %17 = vector.broadcast %c14_i32 : i32 to vector<256x1xi32>
    %18 = arith.cmpi sle, %14, %17 : vector<256x1xi32>
    %cst_14 = arith.constant 0.000000e+00 : f32
    %19 = vector.broadcast %cst_14 : f32 to vector<256x4xf32>
    %c7 = arith.constant 7 : index
    %c0_15 = arith.constant 0 : index
    %20 = vector.load %arg10[%c7, %c0_15] : memref<304x4xf32, #tpu.memory_space<vmem>>, vector<256x4xf32>
    %cst_16 = arith.constant 0.000000e+00 : f32
    %21 = vector.shape_cast %16 : vector<256x1xi1> to vector<256x1xi1>
    %22 = vector.broadcast %21 : vector<256x1xi1> to vector<256x4xi1>
    %23 = vector.broadcast %cst_16 : f32 to vector<256x4xf32>
    %24 = arith.select %22, %20, %23 : vector<256x4xi1>, vector<256x4xf32>
    %25 = arith.truncf %24 : vector<256x4xf32> to vector<256x4xbf16>
    %c0_17 = arith.constant 0 : index
    %c0_18 = arith.constant 0 : index
    %c0_19 = arith.constant 0 : index
    %26 = vector.load %arg5[%c0_17, %c0_18, %c0_19] : memref<9x4x4xbf16, #tpu.memory_space<vmem>>, vector<1x4x4xbf16>
    %27 = vector.shape_cast %26 : vector<1x4x4xbf16> to vector<4x4xbf16>
    %cst_20 = arith.constant dense<0.000000e+00> : vector<256x4xf32>
    %28 = tpu.matmul %25, %27, %cst_20 {dimension_numbers = #tpu.dot_dimension_numbers<[1], [0], [0], [1], [0, 0, 1, 1], [], []>} : vector<256x4xbf16>, vector<4x4xbf16>, vector<256x4xf32> -> vector<256x4xf32>
    %29 = arith.addf %19, %28 : vector<256x4xf32>
    %c8 = arith.constant 8 : index
    %c0_21 = arith.constant 0 : index
    %30 = vector.load %arg10[%c8, %c0_21] : memref<304x4xf32, #tpu.memory_space<vmem>>, vector<256x4xf32>
    %31 = arith.truncf %30 : vector<256x4xf32> to vector<256x4xbf16>
    %c1 = arith.constant 1 : index
    %c0_22 = arith.constant 0 : index
    %c0_23 = arith.constant 0 : index
    %32 = vector.load %arg5[%c1, %c0_22, %c0_23] : memref<9x4x4xbf16, #tpu.memory_space<vmem>>, vector<1x4x4xbf16>
    %33 = vector.shape_cast %32 : vector<1x4x4xbf16> to vector<4x4xbf16>
    %cst_24 = arith.constant dense<0.000000e+00> : vector<256x4xf32>
    %34 = tpu.matmul %31, %33, %cst_24 {dimension_numbers = #tpu.dot_dimension_numbers<[1], [0], [0], [1], [0, 0, 1, 1], [], []>} : vector<256x4xbf16>, vector<4x4xbf16>, vector<256x4xf32> -> vector<256x4xf32>
    %35 = arith.addf %29, %34 : vector<256x4xf32>
    %c9 = arith.constant 9 : index
    %c0_25 = arith.constant 0 : index
    %36 = vector.load %arg10[%c9, %c0_25] : memref<304x4xf32, #tpu.memory_space<vmem>>, vector<256x4xf32>
    %cst_26 = arith.constant 0.000000e+00 : f32
    %37 = vector.shape_cast %18 : vector<256x1xi1> to vector<256x1xi1>
    %38 = vector.broadcast %37 : vector<256x1xi1> to vector<256x4xi1>
    %39 = vector.broadcast %cst_26 : f32 to vector<256x4xf32>
    %40 = arith.select %38, %36, %39 : vector<256x4xi1>, vector<256x4xf32>
    %41 = arith.truncf %40 : vector<256x4xf32> to vector<256x4xbf16>
    %c2 = arith.constant 2 : index
    %c0_27 = arith.constant 0 : index
    %c0_28 = arith.constant 0 : index
    %42 = vector.load %arg5[%c2, %c0_27, %c0_28] : memref<9x4x4xbf16, #tpu.memory_space<vmem>>, vector<1x4x4xbf16>
    %43 = vector.shape_cast %42 : vector<1x4x4xbf16> to vector<4x4xbf16>
    %cst_29 = arith.constant dense<0.000000e+00> : vector<256x4xf32>
    %44 = tpu.matmul %41, %43, %cst_29 {dimension_numbers = #tpu.dot_dimension_numbers<[1], [0], [0], [1], [0, 0, 1, 1], [], []>} : vector<256x4xbf16>, vector<4x4xbf16>, vector<256x4xf32> -> vector<256x4xf32>
    %45 = arith.addf %35, %44 : vector<256x4xf32>
    %c23 = arith.constant 23 : index
    %c0_30 = arith.constant 0 : index
    %46 = vector.load %arg10[%c23, %c0_30] : memref<304x4xf32, #tpu.memory_space<vmem>>, vector<256x4xf32>
    %cst_31 = arith.constant 0.000000e+00 : f32
    %47 = vector.shape_cast %16 : vector<256x1xi1> to vector<256x1xi1>
    %48 = vector.broadcast %47 : vector<256x1xi1> to vector<256x4xi1>
    %49 = vector.broadcast %cst_31 : f32 to vector<256x4xf32>
    %50 = arith.select %48, %46, %49 : vector<256x4xi1>, vector<256x4xf32>
    %51 = arith.truncf %50 : vector<256x4xf32> to vector<256x4xbf16>
    %c3 = arith.constant 3 : index
    %c0_32 = arith.constant 0 : index
    %c0_33 = arith.constant 0 : index
    %52 = vector.load %arg5[%c3, %c0_32, %c0_33] : memref<9x4x4xbf16, #tpu.memory_space<vmem>>, vector<1x4x4xbf16>
    %53 = vector.shape_cast %52 : vector<1x4x4xbf16> to vector<4x4xbf16>
    %cst_34 = arith.constant dense<0.000000e+00> : vector<256x4xf32>
    %54 = tpu.matmul %51, %53, %cst_34 {dimension_numbers = #tpu.dot_dimension_numbers<[1], [0], [0], [1], [0, 0, 1, 1], [], []>} : vector<256x4xbf16>, vector<4x4xbf16>, vector<256x4xf32> -> vector<256x4xf32>
    %55 = arith.addf %45, %54 : vector<256x4xf32>
    %c24_35 = arith.constant 24 : index
    %c0_36 = arith.constant 0 : index
    %56 = vector.load %arg10[%c24_35, %c0_36] : memref<304x4xf32, #tpu.memory_space<vmem>>, vector<256x4xf32>
    %57 = arith.truncf %56 : vector<256x4xf32> to vector<256x4xbf16>
    %c4 = arith.constant 4 : index
    %c0_37 = arith.constant 0 : index
    %c0_38 = arith.constant 0 : index
    %58 = vector.load %arg5[%c4, %c0_37, %c0_38] : memref<9x4x4xbf16, #tpu.memory_space<vmem>>, vector<1x4x4xbf16>
    %59 = vector.shape_cast %58 : vector<1x4x4xbf16> to vector<4x4xbf16>
    %cst_39 = arith.constant dense<0.000000e+00> : vector<256x4xf32>
    %60 = tpu.matmul %57, %59, %cst_39 {dimension_numbers = #tpu.dot_dimension_numbers<[1], [0], [0], [1], [0, 0, 1, 1], [], []>} : vector<256x4xbf16>, vector<4x4xbf16>, vector<256x4xf32> -> vector<256x4xf32>
    %61 = arith.addf %55, %60 : vector<256x4xf32>
    %c25 = arith.constant 25 : index
    %c0_40 = arith.constant 0 : index
    %62 = vector.load %arg10[%c25, %c0_40] : memref<304x4xf32, #tpu.memory_space<vmem>>, vector<256x4xf32>
    %cst_41 = arith.constant 0.000000e+00 : f32
    %63 = vector.shape_cast %18 : vector<256x1xi1> to vector<256x1xi1>
    %64 = vector.broadcast %63 : vector<256x1xi1> to vector<256x4xi1>
    %65 = vector.broadcast %cst_41 : f32 to vector<256x4xf32>
    %66 = arith.select %64, %62, %65 : vector<256x4xi1>, vector<256x4xf32>
    %67 = arith.truncf %66 : vector<256x4xf32> to vector<256x4xbf16>
    %c5 = arith.constant 5 : index
    %c0_42 = arith.constant 0 : index
    %c0_43 = arith.constant 0 : index
    %68 = vector.load %arg5[%c5, %c0_42, %c0_43] : memref<9x4x4xbf16, #tpu.memory_space<vmem>>, vector<1x4x4xbf16>
    %69 = vector.shape_cast %68 : vector<1x4x4xbf16> to vector<4x4xbf16>
    %cst_44 = arith.constant dense<0.000000e+00> : vector<256x4xf32>
    %70 = tpu.matmul %67, %69, %cst_44 {dimension_numbers = #tpu.dot_dimension_numbers<[1], [0], [0], [1], [0, 0, 1, 1], [], []>} : vector<256x4xbf16>, vector<4x4xbf16>, vector<256x4xf32> -> vector<256x4xf32>
    %71 = arith.addf %61, %70 : vector<256x4xf32>
    %c39 = arith.constant 39 : index
    %c0_45 = arith.constant 0 : index
    %72 = vector.load %arg10[%c39, %c0_45] : memref<304x4xf32, #tpu.memory_space<vmem>>, vector<256x4xf32>
    %cst_46 = arith.constant 0.000000e+00 : f32
    %73 = vector.shape_cast %16 : vector<256x1xi1> to vector<256x1xi1>
    %74 = vector.broadcast %73 : vector<256x1xi1> to vector<256x4xi1>
    %75 = vector.broadcast %cst_46 : f32 to vector<256x4xf32>
    %76 = arith.select %74, %72, %75 : vector<256x4xi1>, vector<256x4xf32>
    %77 = arith.truncf %76 : vector<256x4xf32> to vector<256x4xbf16>
    %c6 = arith.constant 6 : index
    %c0_47 = arith.constant 0 : index
    %c0_48 = arith.constant 0 : index
    %78 = vector.load %arg5[%c6, %c0_47, %c0_48] : memref<9x4x4xbf16, #tpu.memory_space<vmem>>, vector<1x4x4xbf16>
    %79 = vector.shape_cast %78 : vector<1x4x4xbf16> to vector<4x4xbf16>
    %cst_49 = arith.constant dense<0.000000e+00> : vector<256x4xf32>
    %80 = tpu.matmul %77, %79, %cst_49 {dimension_numbers = #tpu.dot_dimension_numbers<[1], [0], [0], [1], [0, 0, 1, 1], [], []>} : vector<256x4xbf16>, vector<4x4xbf16>, vector<256x4xf32> -> vector<256x4xf32>
    %81 = arith.addf %71, %80 : vector<256x4xf32>
    %c40 = arith.constant 40 : index
    %c0_50 = arith.constant 0 : index
    %82 = vector.load %arg10[%c40, %c0_50] : memref<304x4xf32, #tpu.memory_space<vmem>>, vector<256x4xf32>
    %83 = arith.truncf %82 : vector<256x4xf32> to vector<256x4xbf16>
    %c7_51 = arith.constant 7 : index
    %c0_52 = arith.constant 0 : index
    %c0_53 = arith.constant 0 : index
    %84 = vector.load %arg5[%c7_51, %c0_52, %c0_53] : memref<9x4x4xbf16, #tpu.memory_space<vmem>>, vector<1x4x4xbf16>
    %85 = vector.shape_cast %84 : vector<1x4x4xbf16> to vector<4x4xbf16>
    %cst_54 = arith.constant dense<0.000000e+00> : vector<256x4xf32>
    %86 = tpu.matmul %83, %85, %cst_54 {dimension_numbers = #tpu.dot_dimension_numbers<[1], [0], [0], [1], [0, 0, 1, 1], [], []>} : vector<256x4xbf16>, vector<4x4xbf16>, vector<256x4xf32> -> vector<256x4xf32>
    %87 = arith.addf %81, %86 : vector<256x4xf32>
    %c41 = arith.constant 41 : index
    %c0_55 = arith.constant 0 : index
    %88 = vector.load %arg10[%c41, %c0_55] : memref<304x4xf32, #tpu.memory_space<vmem>>, vector<256x4xf32>
    %cst_56 = arith.constant 0.000000e+00 : f32
    %89 = vector.shape_cast %18 : vector<256x1xi1> to vector<256x1xi1>
    %90 = vector.broadcast %89 : vector<256x1xi1> to vector<256x4xi1>
    %91 = vector.broadcast %cst_56 : f32 to vector<256x4xf32>
    %92 = arith.select %90, %88, %91 : vector<256x4xi1>, vector<256x4xf32>
    %93 = arith.truncf %92 : vector<256x4xf32> to vector<256x4xbf16>
    %c8_57 = arith.constant 8 : index
    %c0_58 = arith.constant 0 : index
    %c0_59 = arith.constant 0 : index
    %94 = vector.load %arg5[%c8_57, %c0_58, %c0_59] : memref<9x4x4xbf16, #tpu.memory_space<vmem>>, vector<1x4x4xbf16>
    %95 = vector.shape_cast %94 : vector<1x4x4xbf16> to vector<4x4xbf16>
    %cst_60 = arith.constant dense<0.000000e+00> : vector<256x4xf32>
    %96 = tpu.matmul %93, %95, %cst_60 {dimension_numbers = #tpu.dot_dimension_numbers<[1], [0], [0], [1], [0, 0, 1, 1], [], []>} : vector<256x4xbf16>, vector<4x4xbf16>, vector<256x4xf32> -> vector<256x4xf32>
    %97 = arith.addf %87, %96 : vector<256x4xf32>
    %c0_61 = arith.constant 0 : index
    %c0_62 = arith.constant 0 : index
    %98 = vector.load %arg6[%c0_61, %c0_62] : memref<1x4xf32, #tpu.memory_space<vmem>>, vector<1x4xf32>
    %99 = vector.broadcast %98 : vector<1x4xf32> to vector<256x4xf32>
    %100 = arith.addf %97, %99 : vector<256x4xf32>
    %cst_63 = arith.constant 0.000000e+00 : f32
    %101 = vector.broadcast %cst_63 : f32 to vector<256x4xf32>
    %102 = arith.maximumf %100, %101 : vector<256x4xf32>
    %103 = arith.truncf %102 : vector<256x4xf32> to vector<256x4xbf16>
    %c0_64 = arith.constant 0 : index
    %c0_65 = arith.constant 0 : index
    %104 = vector.load %arg7[%c0_64, %c0_65] : memref<4x16xbf16, #tpu.memory_space<vmem>>, vector<4x16xbf16>
    %cst_66 = arith.constant dense<0.000000e+00> : vector<256x16xf32>
    %105 = tpu.matmul %103, %104, %cst_66 {dimension_numbers = #tpu.dot_dimension_numbers<[1], [0], [0], [1], [0, 0, 1, 1], [], []>} : vector<256x4xbf16>, vector<4x16xbf16>, vector<256x16xf32> -> vector<256x16xf32>
    %c0_67 = arith.constant 0 : index
    %c0_68 = arith.constant 0 : index
    %106 = vector.load %arg8[%c0_67, %c0_68] : memref<1x16xf32, #tpu.memory_space<vmem>>, vector<1x16xf32>
    %107 = vector.broadcast %106 : vector<1x16xf32> to vector<256x16xf32>
    %108 = arith.addf %105, %107 : vector<256x16xf32>
    %109 = arith.addf %108, %2 : vector<256x16xf32>
    %cst_69 = arith.constant 0.000000e+00 : f32
    %110 = vector.broadcast %cst_69 : f32 to vector<256x16xf32>
    %111 = arith.maximumf %109, %110 : vector<256x16xf32>
    %c0_70 = arith.constant 0 : index
    %c0_71 = arith.constant 0 : index
    %c0_72 = arith.constant 0 : index
    %112 = vector.load %arg9[%c0_70, %c0_71, %c0_72] : memref<1x256x16xf32, #tpu.memory_space<vmem>>, vector<1x256x16xf32>
    %113 = vector.shape_cast %112 : vector<1x256x16xf32> to vector<256x16xf32>
    %114 = vector.shape_cast %111 : vector<256x16xf32> to vector<1x256x16xf32>
    tpu.vector_store %arg9[%c0_70, %c0_71, %c0_72], %114 {strides = array<i32>} : memref<1x256x16xf32, #tpu.memory_space<vmem>>, vector<1x256x16xf32>,
    return
  }
  func.func @transform_0(%arg0: i32) -> (i32, i32, i32) {
    %c0_i32 = arith.constant 0 : i32
    %c0_i32_0 = arith.constant 0 : i32
    %c0_i32_1 = arith.constant 0 : i32
    return %arg0, %c0_i32, %c0_i32_0 : i32, i32, i32
  }
  func.func @transform_1(%arg0: i32) -> (i32, i32) {
    %c0_i32 = arith.constant 0 : i32
    %c0_i32_0 = arith.constant 0 : i32
    %c0_i32_1 = arith.constant 0 : i32
    return %c0_i32, %c0_i32_0 : i32, i32
  }
  func.func @transform_2(%arg0: i32) -> (i32, i32) {
    %c0_i32 = arith.constant 0 : i32
    %c0_i32_0 = arith.constant 0 : i32
    %c0_i32_1 = arith.constant 0 : i32
    return %c0_i32, %c0_i32_0 : i32, i32
  }
  func.func @transform_3(%arg0: i32) -> (i32, i32) {
    %c0_i32 = arith.constant 0 : i32
    %c0_i32_0 = arith.constant 0 : i32
    %c0_i32_1 = arith.constant 0 : i32
    return %c0_i32, %c0_i32_0 : i32, i32
  }
  func.func @transform_4(%arg0: i32) -> (i32, i32, i32) {
    %c0_i32 = arith.constant 0 : i32
    %c0_i32_0 = arith.constant 0 : i32
    %c0_i32_1 = arith.constant 0 : i32
    %c0_i32_2 = arith.constant 0 : i32
    return %c0_i32, %c0_i32_0, %c0_i32_1 : i32, i32, i32
  }
  func.func @transform_5(%arg0: i32) -> (i32, i32) {
    %c0_i32 = arith.constant 0 : i32
    %c0_i32_0 = arith.constant 0 : i32
    %c0_i32_1 = arith.constant 0 : i32
    return %c0_i32, %c0_i32_0 : i32, i32
  }
  func.func @transform_6(%arg0: i32) -> (i32, i32) {
    %c0_i32 = arith.constant 0 : i32
    %c0_i32_0 = arith.constant 0 : i32
    %c0_i32_1 = arith.constant 0 : i32
    return %c0_i32, %c0_i32_0 : i32, i32
  }
  func.func @transform_7(%arg0: i32) -> (i32, i32) {
    %c0_i32 = arith.constant 0 : i32
    %c0_i32_0 = arith.constant 0 : i32
    %c0_i32_1 = arith.constant 0 : i32
    return %c0_i32, %c0_i32_0 : i32, i32
  }
  func.func @transform_8(%arg0: i32) -> (i32, i32, i32) {
    %c0_i32 = arith.constant 0 : i32
    %c0_i32_0 = arith.constant 0 : i32
    %c0_i32_1 = arith.constant 0 : i32
    return %arg0, %c0_i32, %c0_i32_0 : i32, i32, i32
  }
}

</mosaic_0001>

<bundles_post_ra>
// kernel: tpu_custom_call.1
= control target key start
LH: loop header
LB: loop body
LE: loop exit
PB: predicated region body
PF: predicated region fallthrough
CT: control target
= control target key end

     0   :  { %s5559_s27 = smov 0   ;;  %s8173_s0 = inlined_call_operand.vmem [shape: bf16[2,256,16], index: 0, kind: input, shape index: {}]   ;;  %s8174_s1 = inlined_call_operand.vmem [shape: s32[256,1], index: 1, kind: input, shape index: {}]   ;;  %s8175_s2 = inlined_call_operand.vmem [shape: bf16[16,4], index: 2, kind: input, shape index: {}]   ;;  %s8176_s3 = inlined_call_operand.vmem [shape: f32[1,4], index: 3, kind: input, shape index: {}]   ;;  %s8177_s4 = inlined_call_operand.vmem [shape: bf16[9,4,4], index: 4, kind: input, shape index: {}]   ;;  %s8178_s5 = inlined_call_operand.vmem [shape: f32[1,4], index: 5, kind: input, shape index: {}]   ;;  %s8179_s6 = inlined_call_operand.vmem [shape: bf16[4,16], index: 6, kind: input, shape index: {}]   ;;  %s8180_s7 = inlined_call_operand.vmem [shape: f32[1,16], index: 7, kind: input, shape index: {}]   ;;  %s8181_s8 = inlined_call_operand.vmem [shape: f32[2,256,16], index: 8, kind: output, shape index: {}]  }
   0x1 LB: > { %s4395_s28 = sadd.s32 4294967295, %s5510_s27   ;;  %p4399_p0 = scmp.ge.s32.totalorder %s5510_s27, 1  ;;  %s5510_s27 = sphi %s5559_s27, %s18_s27  }
   0x2   : > { %p262_p1 = scmp.lt.s32.totalorder %s5510_s27, 3 }
   0x4   : > { %p263_p2 = pnand %p4399_p0, %p262_p1 }
   0x6   : > { %266 = sbr.rel (%p263_p2) target bundleno = 1108 (0x454), region = 52 }
   0xd   : > { %v5570_v0 = vld [vmem:[%s8174_s1 + $0x90] sm:$0xff]  ;;  %v5575_v1 = vld [vmem:[%s8174_s1 + $0x80] sm:$0xff]  ;;  %p296_p3 = scmp.lt.s32.totalorder %s4395_s28, 1  ;;  %v5512_v2 = vmov 0   ;;  %v5587_v4 = vld [vmem:[%s8174_s1 + $0x98] sm:$0xff]  ;;  %vm8223_vm6 = vcmask 130048  }
   0xe   : > { %5453 = vset.pattern.permute.xlu1 %v5512_v2  ;;  %5452 = vset.pattern.permute.xlu0 %v5512_v2  ;;  %vm797_vm0 = vcmp.ge.s32.totalorder %v5570_v0, 1  ;;  %vm795_vm1 = vcmp.ge.s32.totalorder %v5575_v1, 1  ;;  %v5454_v3 = vld [vmem:[%s8175_s2] sm:$0xff]   ;;  %vm798_vm2 = vcmp.ge.s32.totalorder %v5587_v4, 1  ;;  %v5595_v7 = vld [vmem:[%s8174_s1 + $0x88] sm:$0xff]  ;;  %v5623_v12 = vld [vmem:[%s8174_s1 + $0xb8] sm:$0xff] }
   0xf   : > { %v893_v5 = vsel %vm797_vm0, 1, %v5512_v2  ;;  %v891_v6 = vsel %vm795_vm1, 1, %v5512_v2  ;;  %s9050_s28 = smov (!%p296_p3, %s4395_s28), 1  ;;  %vm796_vm3 = vcmp.ge.s32.totalorder %v5595_v7, 1  ;;  %v5603_v8 = vld [vmem:[%s8174_s1 + $0xa8] sm:$0xff]  ;;  %v5608_v9 = vld [vmem:[%s8174_s1 + $0xa0] sm:$0xff]  ;;  %4799 = vmatprep.subr.bf16.mxu0 %v5454_v3 }
  0x10   : > { %962 = vperm.xlu1 %5453, %v893_v5   ;;  %956 = vperm.xlu0 %5452, %v891_v6   ;;  %v894_v10 = vsel %vm798_vm2, 1, %v5512_v2  ;;  %v892_v11 = vsel %vm796_vm3, 1, %v5512_v2  ;;  %s4610_s21 = sshll.u32 %s9050_s28, 7  ;;  %vm800_vm4 = vcmp.ge.s32.totalorder %v5603_v8, 1  ;;  %vm799_vm5 = vcmp.ge.s32.totalorder %v5608_v9, 1  ;;  %v5628_v13 = vld [vmem:[%s8174_s1 + $0xb0] sm:$0xff] }
  0x11   : > { %4800 = vmatpush3.bf16.msra.mxu0 %v5454_v3  ;;  %s5616_s24 = scalar_lea.vmem %s8173_s0, %s4610_s21  ;;  %v896_v17 = vsel %vm800_vm4, 1, %v5512_v2  ;;  %v895_v18 = vsel %vm799_vm5, 1, %v5512_v2  ;;  %vm802_vm7 = vcmp.ge.s32.totalorder %v5623_v12, 1  ;;  %vm801_vm8 = vcmp.ge.s32.totalorder %v5628_v13, 1  ;;  %v5642_v19 = vld [vmem:[%s8174_s1 + $0xc8] sm:$0xff]  ;;  %v5647_v20 = vld [vmem:[%s8174_s1 + $0xc0] sm:$0xff] }
  0x12   : > { %v307_v14 = vld [vmem:[%s5616_s24] sm:$0xff]   ;;  %v309_v15 = vld [vmem:[%s5616_s24 + $0x8] sm:$0xff]   ;;  %v311_v16 = vld [vmem:[%s5616_s24 + $0x10] sm:$0xff]   ;;  %v898_v22 = vsel %vm802_vm7, 1, %v5512_v2  ;;  %v897_v23 = vsel %vm801_vm8, 1, %v5512_v2  ;;  %vm804_vm9 = vcmp.ge.s32.totalorder %v5642_v19, 1 }
  0x13   : > { %4801 = vmatprep.mubr.msk.bf16.mxu0 %vm8223_vm6, %v307_v14  ;;  %v313_v21 = vld [vmem:[%s5616_s24 + $0x18] sm:$0xff]   ;;  %vm803_vm10 = vcmp.ge.s32.totalorder %v5647_v20, 1  ;;  %v315_v25 = vld [vmem:[%s5616_s24 + $0x20] sm:$0xff]   ;;  %v5664_v26 = vld [vmem:[%s8174_s1 + $0xd0] sm:$0xff]  ;;  %v900_v32 = vsel %vm804_vm9, 1, %v5512_v2  ;;  %vm827_vm5 = vcmp.le.s32.totalorder %v5575_v1, 14 }
  0x14   : > { %965 = vperm.xlu1 %5453, %v894_v10   ;;  %959 = vperm.xlu0 %5452, %v892_v11   ;;  %v5656_v24 = vld [vmem:[%s8174_s1 + $0xd8] sm:$0xff]  ;;  %v5669_v27 = vld [vmem:[%s8174_s1 + $0xe8] sm:$0xff]  ;;  %v5674_v28 = vld [vmem:[%s8174_s1 + $0xe0] sm:$0xff]  ;;  %v899_v33 = vsel %vm803_vm10, 1, %v5512_v2  ;;  %vm805_vm12 = vcmp.ge.s32.totalorder %v5664_v26, 1  ;;  %vm830_vm7 = vcmp.le.s32.totalorder %v5587_v4, 14 }
  0x15   : > { %4802 = vmatmul.mubr.msk.bf16.vlgmr.msra.gmra.mrb[0].mxu0 %vm8223_vm6, %v309_v15  ;;  %vm806_vm11 = vcmp.ge.s32.totalorder %v5656_v24, 1  ;;  %v5680_v29 = vld [vmem:[%s8174_s1 + $0xf8] sm:$0xff]  ;;  %v5685_v30 = vld [vmem:[%s8174_s1 + $0xf0] sm:$0xff]  ;;  %v5690_v31 = vld [vmem:[%s8174_s1 + $0x8] sm:$0xff]  ;;  %vm808_vm13 = vcmp.ge.s32.totalorder %v5669_v27, 1  ;;  %vm807_vm14 = vcmp.ge.s32.totalorder %v5674_v28, 1 }
  0x16   : > { %4805 = vmatprep.mubr.msk.bf16.mxu0 %vm8223_vm6, %v311_v16  ;;  %v5697_v34 = vld [vmem:[%s8174_s1] sm:$0xff]  ;;  %v5702_v35 = vld [vmem:[%s8174_s1 + $0x18] sm:$0xff]  ;;  %v5707_v36 = vld [vmem:[%s8174_s1 + $0x10] sm:$0xff]  ;;  %v902_v38 = vsel %vm806_vm11, 1, %v5512_v2  ;;  %vm810_vm15 = vcmp.ge.s32.totalorder %v5680_v29, 1  ;;  %vm809_vm0 = vcmp.ge.s32.totalorder %v5685_v30, 1 }
  0x17   : > { %v317_v37 = vld [vmem:[%s5616_s24 + $0x28] sm:$0xff]   ;;  %v319_v39 = vld [vmem:[%s5616_s24 + $0x30] sm:$0xff]   ;;  %v5719_v40 = vld [vmem:[%s5616_s24 + $0x38] sm:$0xff]   ;;  %vm812_vm1 = vcmp.le.s32.totalorder %v5690_v31, 14  ;;  %vm811_vm2 = vcmp.le.s32.totalorder %v5697_v34, 14  ;;  %vm814_vm3 = vcmp.le.s32.totalorder %v5702_v35, 14 }
  0x18   : > { %971 = vperm.xlu1 %5453, %v896_v17   ;;  %968 = vperm.xlu0 %5452, %v895_v18   ;;  %vm813_vm4 = vcmp.le.s32.totalorder %v5707_v36, 14  ;;  %v901_v41 = vsel %vm805_vm12, 1, %v5512_v2  ;;  %v904_v42 = vsel %vm808_vm13, 1, %v5512_v2  ;;  %v903_v43 = vsel %vm807_vm14, 1, %v5512_v2  ;;  %v5736_v44 = vld [vmem:[%s5616_s24 + $0x40] sm:$0xff]   ;;  %v5739_v45 = vld [vmem:[%s5616_s24 + $0x48] sm:$0xff]  }
  0x19   : > { %v906_v46 = vsel %vm810_vm15, 1, %v5512_v2  ;;  %v905_v47 = vsel %vm809_vm0, 1, %v5512_v2  ;;  %v5748_v48 = vsel %vm812_vm1, 1, %v5512_v2  ;;  %v5751_v49 = vsel %vm811_vm2, 1, %v5512_v2  ;;  %v5781_v56 = vld [vmem:[%s8174_s1 + $0x28] sm:$0xff]  ;;  %v5786_v57 = vld [vmem:[%s8174_s1 + $0x20] sm:$0xff] }
  0x1a   : > { %v5754_v50 = vsel %vm814_vm3, 1, %v5512_v2  ;;  %v5757_v51 = vsel %vm813_vm4, 1, %v5512_v2  ;;  %v5762_v52 = vsel %vm827_vm5, 1, %v5512_v2  ;;  %v5765_v53 = vsel %vm830_vm7, 1, %v5512_v2  ;;  %v753_v11 = vld [vmem:[%s8174_s1 + $0x30] sm:$0xff]  ;;  %v755_v15 = vld [vmem:[%s8174_s1 + $0x40] sm:$0xff] }
  0x1b   : > { %vm829_vm8 = vcmp.le.s32.totalorder %v5570_v0, 14  ;;  %vm832_vm9 = vcmp.le.s32.totalorder %v5603_v8, 14  ;;  %vm831_vm10 = vcmp.le.s32.totalorder %v5608_v9, 14  ;;  %vm834_vm11 = vcmp.le.s32.totalorder %v5623_v12, 14  ;;  %v754_v8 = vld [vmem:[%s8174_s1 + $0x38] sm:$0xff]  ;;  %v5856_v12 = vld [vmem:[%s8174_s1 + $0x48] sm:$0xff] }
  0x1c   : > { %977 = vperm.xlu1 %5453, %v898_v22   ;;  %974 = vperm.xlu0 %5452, %v897_v23   ;;  %v5770_v54 = vsel %vm829_vm8, 1, %v5512_v2  ;;  %v5773_v55 = vsel %vm832_vm9, 1, %v5512_v2  ;;  %v5789_v58 = vsel %vm831_vm10, 1, %v5512_v2  ;;  %v5792_v59 = vsel %vm834_vm11, 1, %v5512_v2  ;;  %v5873_v16 = vld [vmem:[%s8174_s1 + $0x58] sm:$0xff]  ;;  %v759_v23 = vld [vmem:[%s8174_s1 + $0x60] sm:$0xff] }
  0x1d   : > { %4806 = vmatmul.mubr.msk.bf16.gmra.mrb[4].mxu0 %vm8223_vm6, %v313_v21  ;;  %vm833_vm12 = vcmp.le.s32.totalorder %v5628_v13, 14  ;;  %vm836_vm13 = vcmp.le.s32.totalorder %v5642_v19, 14  ;;  %vm835_vm14 = vcmp.le.s32.totalorder %v5647_v20, 14  ;;  %vm838_vm15 = vcmp.le.s32.totalorder %v5656_v24, 14  ;;  %v757_v19 = vld [vmem:[%s8174_s1 + $0x50] sm:$0xff]  ;;  %v5890_v20 = vld [vmem:[%s8174_s1 + $0x68] sm:$0xff] }
  0x1e   : > { %4809 = vmatprep.mubr.msk.bf16.mxu0 %vm8223_vm6, %v315_v25  ;;  %v5797_v60 = vsel %vm833_vm12, 1, %v5512_v2  ;;  %v5800_v61 = vsel %vm836_vm13, 1, %v5512_v2  ;;  %v5806_v62 = vsel %vm835_vm14, 1, %v5512_v2  ;;  %v5809_v63 = vsel %vm838_vm15, 1, %v5512_v2  ;;  %v5907_v24 = vld [vmem:[%s8174_s1 + $0x70] sm:$0xff]  ;;  %s4611_s9 = sshll.u32 %s9050_s28, 8 }
  0x1f   : > { %vm837_vm0 = vcmp.le.s32.totalorder %v5664_v26, 14  ;;  %vm840_vm1 = vcmp.le.s32.totalorder %v5669_v27, 14  ;;  %vm816_vm2 = vcmp.le.s32.totalorder %v5781_v56, 14  ;;  %vm815_vm3 = vcmp.le.s32.totalorder %v5786_v57, 14  ;;  %v327_v27 = vld [vmem:[%s5616_s24 + $0x50] sm:$0xff]   ;;  %s8061_s12 = scalar_lea.vmem %s8181_s8, %s4611_s9 }
  0x20   : > { %983 = vperm.xlu1 %5453, %v900_v32   ;;  %980 = vperm.xlu0 %5452, %v899_v33   ;;  %v5816_v0 = vsel %vm837_vm0, 1, %v5512_v2  ;;  %v5819_v1 = vsel %vm840_vm1, 1, %v5512_v2  ;;  %vm839_vm4 = vcmp.le.s32.totalorder %v5674_v28, 14  ;;  %vm842_vm5 = vcmp.le.s32.totalorder %v5680_v29, 14  ;;  %v762_v28 = vld [vmem:[%s8174_s1 + $0x78] sm:$0xff] }
  0x21   : > { %v5824_v3 = vsel %vm839_vm4, 1, %v5512_v2  ;;  %v5827_v4 = vsel %vm842_vm5, 1, %v5512_v2  ;;  %vm841_vm7 = vcmp.le.s32.totalorder %v5685_v30, 14  ;;  %vm780_vm8 = vcmp.ge.s32.totalorder %v5690_v31, 1 }
  0x22   : > { %v5832_v5 = vsel %vm841_vm7, 1, %v5512_v2  ;;  %v5835_v6 = vsel %vm780_vm8, 1, %v5512_v2  ;;  %vm779_vm9 = vcmp.ge.s32.totalorder %v5697_v34, 1  ;;  %vm782_vm10 = vcmp.ge.s32.totalorder %v5702_v35, 1 }
  0x23   : > { %v5843_v9 = vsel %vm779_vm9, 1, %v5512_v2  ;;  %v5846_v10 = vsel %vm782_vm10, 1, %v5512_v2  ;;  %vm781_vm11 = vcmp.ge.s32.totalorder %v5707_v36, 1  ;;  %vm784_vm12 = vcmp.ge.s32.totalorder %v5781_v56, 1 }
  0x24   : > { %989 = vperm.xlu1 %5453, %v902_v38   ;;  %986 = vperm.xlu0 %5452, %v901_v41   ;;  %v5859_v13 = vsel %vm781_vm11, 1, %v5512_v2  ;;  %v5862_v14 = vsel %vm784_vm12, 1, %v5512_v2  ;;  %vm783_vm13 = vcmp.ge.s32.totalorder %v5786_v57, 1  ;;  %vm786_vm14 = vcmp.ge.s32.totalorder %v754_v8, 1 }
  0x25   : > { %4810 = vmatmul.mubr.msk.bf16.gmra.mrb[8].mxu0 %vm8223_vm6, %v317_v37  ;;  %v5876_v17 = vsel %vm783_vm13, 1, %v5512_v2  ;;  %v5879_v18 = vsel %vm786_vm14, 1, %v5512_v2  ;;  %vm785_vm15 = vcmp.ge.s32.totalorder %v753_v11, 1  ;;  %vm788_vm0 = vcmp.ge.s32.totalorder %v5856_v12, 1  ;;  %v329_v37 = vld [vmem:[%s5616_s24 + $0x58] sm:$0xff]  }
  0x26   : > { %4813 = vmatprep.mubr.msk.bf16.mxu0 %vm8223_vm6, %v319_v39  ;;  %v5893_v21 = vsel %vm785_vm15, 1, %v5512_v2  ;;  %v5896_v22 = vsel %vm788_vm0, 1, %v5512_v2  ;;  %vm787_vm1 = vcmp.ge.s32.totalorder %v755_v15, 1  ;;  %vm790_vm4 = vcmp.ge.s32.totalorder %v5873_v16, 1 }
  0x27   : > { %v5910_v25 = vsel %vm787_vm1, 1, %v5512_v2  ;;  %v5913_v26 = vsel %vm790_vm4, 1, %v5512_v2  ;;  %vm789_vm5 = vcmp.ge.s32.totalorder %v757_v19, 1  ;;  %vm792_vm7 = vcmp.ge.s32.totalorder %v5890_v20, 1 }
  0x28   : > { %995 = vperm.xlu1 %5453, %v904_v42   ;;  %992 = vperm.xlu0 %5452, %v903_v43   ;;  %v5921_v29 = vsel %vm789_vm5, 1, %v5512_v2  ;;  %v5924_v30 = vsel %vm792_vm7, 1, %v5512_v2  ;;  %vm791_vm8 = vcmp.ge.s32.totalorder %v759_v23, 1  ;;  %vm793_vm9 = vcmp.ge.s32.totalorder %v5907_v24, 1  ;;  %v333_v43 = vld [vmem:[%s5616_s24 + $0x68] sm:$0xff]  }
  0x29   : > { %v5928_v31 = vsel %vm791_vm8, 1, %v5512_v2  ;;  %v5931_v32 = vsel %vm793_vm9, 1, %v5512_v2  ;;  %vm794_vm10 = vcmp.ge.s32.totalorder %v762_v28, 1  ;;  %vm708_vm11 = vcmask 31744  }
  0x2a   : > { %v5936_v33 = vsel %vm794_vm10, 1, %v5512_v2  ;;  %v1596_v34 = vsel %vm816_vm2, 1, %v5512_v2  ;;  %v1595_v35 = vsel %vm815_vm3, 1, %v5512_v2  ;;  %v5513_v36 = vmov 0.0  }
  0x2b   : > { %712 = vst.msk [vmem:[#allocation2 + $0x118] sm:$0xff] %vm708_vm11, %v5513_v36  ;;  %713 = vst.msk [vmem:[#allocation2 + $0x120] sm:$0xff] %vm708_vm11, %v5513_v36  ;;  %vm818_vm12 = vcmp.le.s32.totalorder %v754_v8, 14  ;;  %vm817_vm2 = vcmp.le.s32.totalorder %v753_v11, 14  ;;  %vm820_vm3 = vcmp.le.s32.totalorder %v5856_v12, 14  ;;  %vm819_vm13 = vcmp.le.s32.totalorder %v755_v15, 14 }
  0x2c   : > { %1001 = vperm.xlu1 %5453, %v906_v46   ;;  %998 = vperm.xlu0 %5452, %v905_v47   ;;  %709 = vst.msk [vmem:[#allocation2] sm:$0xff] %vm708_vm11, %v5513_v36  ;;  %710 = vst.msk [vmem:[#allocation2 + $0x8] sm:$0xff] %vm708_vm11, %v5513_v36  ;;  %v1598_v38 = vsel %vm818_vm12, 1, %v5512_v2  ;;  %v1597_v39 = vsel %vm817_vm2, 1, %v5512_v2  ;;  %v1600_v41 = vsel %vm820_vm3, 1, %v5512_v2  ;;  %v1599_v42 = vsel %vm819_vm13, 1, %v5512_v2 }
  0x2d   : > { %4814 = vmatmul.mubr.msk.bf16.gmra.mrb[12].mxu0 %vm8223_vm6, %v5719_v40  ;;  %711 = vst.msk [vmem:[#allocation2 + $0x10] sm:$0xff] %vm708_vm11, %v5513_v36  ;;  %714 = vst.msk [vmem:[#allocation2 + $0x128] sm:$0xff] %vm708_vm11, %v5513_v36  ;;  %v331_v40 = vld [vmem:[%s5616_s24 + $0x60] sm:$0xff]   ;;  %vm822_vm14 = vcmp.le.s32.totalorder %v5873_v16, 14  ;;  %vm821_vm15 = vcmp.le.s32.totalorder %v757_v19, 14  ;;  %vm824_vm0 = vcmp.le.s32.totalorder %v5890_v20, 14 }
  0x2e   : > { %4817 = vmatprep.mubr.msk.bf16.mxu0 %vm8223_vm6, %v5736_v44  ;;  %v1602_v44 = vsel %vm822_vm14, 1, %v5512_v2  ;;  %vm823_vm1 = vcmp.le.s32.totalorder %v759_v23, 14  ;;  %v335_v46 = vld [vmem:[%s5616_s24 + $0x70] sm:$0xff]   ;;  %v1604_v47 = vsel %vm824_vm0, 1, %v5512_v2  ;;  %vm826_vm4 = vcmp.le.s32.totalorder %v762_v28, 14 }
  0x2f   : > { %vm825_vm5 = vcmp.le.s32.totalorder %v5907_v24, 14  ;;  %vm828_vm7 = vcmp.le.s32.totalorder %v5595_v7, 14  ;;  %vm8264_vm8 = vcmask 1041408   ;;  %v6078_v19 = vld [vmem:[%s8177_s4] sm:$0x3] }
  0x30   : > { %1627 = vperm.xlu1 %5453, %v5748_v48   ;;  %1624 = vperm.xlu0 %5452, %v5751_v49   ;;  %v1603_v48 = vsel %vm823_vm1, 1, %v5512_v2  ;;  %v337_v49 = vld [vmem:[%s5616_s24 + $0x78] sm:$0xff]   ;;  %v1608_v56 = vsel %vm828_vm7, 1, %v5512_v2 }
  0x34   : > { %1633 = vperm.xlu1 %5453, %v5754_v50   ;;  %1630 = vperm.xlu0 %5452, %v5757_v51   ;;  %v1606_v50 = vsel %vm826_vm4, 1, %v5512_v2  ;;  %v1605_v51 = vsel %vm825_vm5, 1, %v5512_v2 }
  0x35   : > { %4818 = vmatmul.mubr.msk.bf16.gmra.mrb[16].mxu0 %vm8223_vm6, %v5739_v45  ;;  %v1601_v45 = vsel %vm821_vm15, 1, %v5512_v2  ;;  %v4438_v2 = vld [vmem:[%s8177_s4 + $0x2] sm:$0x3] }
  0x36   : > { %4821 = vmatprep.mubr.msk.bf16.mxu0 %vm8223_vm6, %v327_v27  ;;  %5431 = vmatprep.subr.msk.bf16.mxu0 %vm8264_vm8, %v4438_v2  ;;  %v1184_v7 = vsel %vm8264_vm8, %v4438_v2, 0 }
  0x37   : > { %4834 = vmatpush3.bf16.msra.mxu0 %v1184_v7 }
  0x38   : > { %1639 = vperm.xlu1 %5453, %v1596_v34   ;;  %1636 = vperm.xlu0 %5452, %v1595_v35  }
  0x39   : > { %5432 = vmatprep.subr.msk.bf16.mxu0 %vm8264_vm8, %v6078_v19 }
  0x3c   : > { %1645 = vperm.xlu1 %5453, %v1598_v38   ;;  %1642 = vperm.xlu0 %5452, %v1597_v39  }
  0x3d   : > { %4822 = vmatmul.mubr.msk.bf16.gmra.mrb[20].mxu0 %vm8223_vm6, %v329_v37 }
  0x3e   : > { %4825 = vmatprep.mubr.msk.bf16.mxu0 %vm8223_vm6, %v331_v40 }
  0x40   : > { %1651 = vperm.xlu1 %5453, %v1600_v41   ;;  %1648 = vperm.xlu0 %5452, %v1599_v42  }
  0x44   : > { %1657 = vperm.xlu1 %5453, %v1602_v44   ;;  %1654 = vperm.xlu0 %5452, %v1601_v45   ;;  %v6133_v44 = vld [vmem:[%s8176_s3] ss:$0 sm:$0xff] }
  0x45   : > { %4826 = vmatmul.mubr.msk.bf16.gmra.mrb[24].mxu0 %vm8223_vm6, %v333_v43 }
  0x46   : > { %4829 = vmatprep.mubr.msk.bf16.mxu0 %vm8223_vm6, %v335_v46 }
  0x48   : > { %1663 = vperm.xlu1 %5453, %v1604_v47   ;;  %1660 = vperm.xlu0 %5452, %v1603_v48  }
  0x4c   : > { %1669 = vperm.xlu1 %5453, %v1606_v50   ;;  %1666 = vperm.xlu0 %5452, %v1605_v51  }
  0x4d   : > { %4830 = vmatmul.mubr.msk.bf16.gmra.mrb[28].mxu0 %vm8223_vm6, %v337_v49 }
  0x50   : > { %1675 = vperm.xlu1 %5453, %v1608_v56   ;;  %1672 = vperm.xlu0 %5452, %v5762_v52   ;;  %v1084_v52 = vld [vmem:[#allocation2 + $0x8] sm:$0xff] }
  0x54   : > { %1681 = vperm.xlu1 %5453, %v5765_v53   ;;  %1678 = vperm.xlu0 %5452, %v5770_v54   ;;  %v1085_v53 = vld [vmem:[#allocation2 + $0x10] sm:$0xff] }
  0x55   : > { %v1116_v54 = vpack.c.bf16 %v1085_v53, %v1084_v52 }
  0x57   : > { %4835 = vmatprep.mubr.msk.bf16.mxu0 %vm708_vm11, %v1116_v54 }
  0x58   : > { %1687 = vperm.xlu1 %5453, %v5773_v55   ;;  %1684 = vperm.xlu0 %5452, %v5789_v58  }
  0x5c   : > { %1693 = vperm.xlu1 %5453, %v5792_v59   ;;  %1690 = vperm.xlu0 %5452, %v5797_v60  }
  0x60   : > { %1699 = vperm.xlu1 %5453, %v5800_v61   ;;  %1696 = vperm.xlu0 %5452, %v5806_v62  }
  0x64   : > { %1705 = vperm.xlu1 %5453, %v5809_v63   ;;  %1702 = vperm.xlu0 %5452, %v5816_v0   ;;  %v4488_v0 = vld [vmem:[%s8177_s4 + $0x6] sm:$0x3] }
  0x65   : > { %5435 = vmatprep.subr.msk.bf16.mxu1 %vm8264_vm8, %v4488_v0 }
  0x68   : > { %1711 = vperm.xlu1 %5453, %v5819_v1   ;;  %1708 = vperm.xlu0 %5452, %v5824_v3  }
  0x6c   : > { %1717 = vperm.xlu1 %5453, %v5827_v4   ;;  %1714 = vperm.xlu0 %5452, %v5832_v5   ;;  %v6041_v4 = vsel %vm8264_vm8, %v4488_v0, 0  ;;  %v6047_v5 = vld [vmem:[%s8177_s4 + $0x8] sm:$0x3] }
  0x6d   : > { %8446 = vst [vmem:[#allocation4_spill] sm:$0xff] %v6041_v4  ;;  %5174 = vmatpush3.bf16.msra.mxu1 %v6041_v4 }
  0x6e   : > { %5436 = vmatprep.subr.msk.bf16.mxu1 %vm8264_vm8, %v6047_v5 }
  0x70   : > { %911 = vperm.xlu1 %5453, %v5835_v6   ;;  %908 = vperm.xlu0 %5452, %v5843_v9  }
  0x74   : > { %917 = vperm.xlu1 %5453, %v5846_v10   ;;  %914 = vperm.xlu0 %5452, %v5859_v13  }
  0x78   : > { %923 = vperm.xlu1 %5453, %v5862_v14   ;;  %920 = vperm.xlu0 %5452, %v5876_v17  }
  0x7c   : > { %929 = vperm.xlu1 %5453, %v5879_v18   ;;  %926 = vperm.xlu0 %5452, %v5893_v21  }
  0x80   : > { %935 = vperm.xlu1 %5453, %v5896_v22   ;;  %932 = vperm.xlu0 %5452, %v5910_v25  }
  0x84   : > { %941 = vperm.xlu1 %5453, %v5913_v26   ;;  %938 = vperm.xlu0 %5452, %v5921_v29  }
  0x88   : > { %947 = vperm.xlu1 %5453, %v5924_v30   ;;  %944 = vperm.xlu0 %5452, %v5928_v31  }
  0x8c   : > { %950 = vperm.xlu0 %5452, %v5931_v32   ;;  %953 = vperm.xlu1 %5453, %v5936_v33  }
  0x8f   : > { %v6016_v55 = vpop.permute.xlu1 %962  ;;  %v6018_v57 = vpop.permute.xlu0 %956 }
  0x90   : > { %8445 = vst [vmem:[#allocation3_spill] sm:$0xff] %v6016_v55 }
  0x93   : > { %v6020_v58 = vpop.permute.xlu1 %965  ;;  %v6022_v59 = vpop.permute.xlu0 %959 }
  0x94   : > { %vm8295_vm6 = vcmp.eq.s32.totalorder %v6022_v59, 1 }
  0x97   : > { %v6024_v60 = vpop.permute.xlu1 %971  ;;  %v6026_v61 = vpop.permute.xlu0 %968 }
  0x9b   : > { %v6028_v62 = vpop.permute.xlu1 %977  ;;  %v6030_v63 = vpop.permute.xlu0 %974 }
  0x9f   : > { %v6036_v1 = vpop.permute.xlu1 %983  ;;  %v6038_v3 = vpop.permute.xlu0 %980 }
  0xa3   : > { %v6049_v6 = vpop.permute.xlu1 %989  ;;  %v6051_v8 = vpop.permute.xlu0 %986 }
  0xa4   : > { %8447 = vst [vmem:[#allocation5_spill] sm:$0xff] %v6049_v6  ;;  %8448 = vst [vmem:[#allocation6_spill] sm:$0xff] %v6051_v8 }
  0xa7   : > { %v6055_v9 = vpop.permute.xlu1 %995  ;;  %v6057_v10 = vpop.permute.xlu0 %992 }
  0xa8   : > { %8449 = vst [vmem:[#allocation7_spill] sm:$0xff] %v6055_v9  ;;  %8450 = vst [vmem:[#allocation8_spill] sm:$0xff] %v6057_v10 }
  0xab   : > { %v6059_v11 = vpop.permute.xlu1 %1001  ;;  %v6061_v12 = vpop.permute.xlu0 %998 }
  0xac   : > { %8451 = vst [vmem:[#allocation9_spill] sm:$0xff] %v6059_v11  ;;  %8452 = vst [vmem:[#allocation10_spill] sm:$0xff] %v6061_v12 }
  0xaf   : > { %v6063_v13 = vpop.permute.xlu1 %1627  ;;  %v6065_v14 = vpop.permute.xlu0 %1624 }
  0xb0   : > { %8453 = vst [vmem:[#allocation11_spill] sm:$0xff] %v6063_v13  ;;  %8454 = vst [vmem:[#allocation12_spill] sm:$0xff] %v6065_v14 }
  0xb3   : > { %v6067_v15 = vpop.permute.xlu1 %1633  ;;  %v6069_v16 = vpop.permute.xlu0 %1630 }
  0xb4   : > { %8455 = vst [vmem:[#allocation13_spill] sm:$0xff] %v6067_v15  ;;  %8456 = vst [vmem:[#allocation14_spill] sm:$0xff] %v6069_v16  ;;  %vm8287_vm4 = vcmp.eq.s32.totalorder %v6067_v15, 1 }
  0xb7   : > { %v6071_v17 = vpop.permute.xlu1 %1639  ;;  %v6073_v18 = vpop.permute.xlu0 %1636 }
  0xb8   : > { %8457 = vst [vmem:[#allocation15_spill] sm:$0xff] %v6071_v17  ;;  %8458 = vst [vmem:[#allocation16_spill] sm:$0xff] %v6073_v18 }
  0xbb   : > { %v6082_v20 = vpop.permute.xlu1 %1645  ;;  %v6084_v21 = vpop.permute.xlu0 %1642 }
  0xbc   : > { %8459 = vst [vmem:[#allocation17_spill] sm:$0xff] %v6082_v20  ;;  %8460 = vst [vmem:[#allocation18_spill] sm:$0xff] %v6084_v21 }
  0xbf   : > { %v6086_v22 = vpop.permute.xlu1 %1651  ;;  %v6088_v23 = vpop.permute.xlu0 %1648 }
  0xc0   : > { %8461 = vst [vmem:[#allocation19_spill] sm:$0xff] %v6086_v22  ;;  %8462 = vst [vmem:[#allocation20_spill] sm:$0xff] %v6088_v23 }
  0xc3   : > { %v6090_v24 = vpop.permute.xlu1 %1657  ;;  %v6092_v25 = vpop.permute.xlu0 %1654 }
  0xc4   : > { %8463 = vst [vmem:[#allocation21_spill] sm:$0xff] %v6090_v24  ;;  %8464 = vst [vmem:[#allocation22_spill] sm:$0xff] %v6092_v25 }
  0xc7   : > { %v6094_v26 = vpop.permute.xlu1 %1663  ;;  %v6096_v27 = vpop.permute.xlu0 %1660 }
  0xc8   : > { %8465 = vst [vmem:[#allocation23_spill] sm:$0xff] %v6094_v26  ;;  %8466 = vst [vmem:[#allocation24_spill] sm:$0xff] %v6096_v27 }
  0xcb   : > { %v6098_v28 = vpop.permute.xlu1 %1669  ;;  %v6100_v29 = vpop.permute.xlu0 %1666 }
  0xcc   : > { %8467 = vst [vmem:[#allocation25_spill] sm:$0xff] %v6100_v29 }
  0xcf   : > { %v6102_v30 = vpop.permute.xlu1 %1675  ;;  %v6104_v31 = vpop.permute.xlu0 %1672 }
  0xd0   : > { %8468 = vst [vmem:[#allocation26_spill] sm:$0xff] %v6102_v30 }
  0xd3   : > { %v6106_v32 = vpop.permute.xlu1 %1681  ;;  %v6108_v33 = vpop.permute.xlu0 %1678 }
  0xd4   : > { %8469 = vst [vmem:[#allocation27_spill] sm:$0xff] %v6106_v32  ;;  %8470 = vst [vmem:[#allocation28_spill] sm:$0xff] %v6108_v33 }
  0xd7   : > { %v6110_v34 = vpop.permute.xlu1 %1687  ;;  %v6112_v35 = vpop.permute.xlu0 %1684 }
  0xd8   : > { %8471 = vst [vmem:[#allocation29_spill] sm:$0xff] %v6110_v34  ;;  %8472 = vst [vmem:[#allocation30_spill] sm:$0xff] %v6112_v35 }
  0xdb   : > { %v6114_v36 = vpop.permute.xlu1 %1693  ;;  %v6116_v37 = vpop.permute.xlu0 %1690 }
  0xdc   : > { %8473 = vst [vmem:[#allocation31_spill] sm:$0xff] %v6114_v36  ;;  %8474 = vst [vmem:[#allocation32_spill] sm:$0xff] %v6116_v37 }
  0xdf   : > { %v6118_v38 = vpop.permute.xlu1 %1699  ;;  %v6120_v39 = vpop.permute.xlu0 %1696 }
  0xe0   : > { %8475 = vst [vmem:[#allocation33_spill] sm:$0xff] %v6118_v38  ;;  %8476 = vst [vmem:[#allocation34_spill] sm:$0xff] %v6120_v39 }
  0xe3   : > { %v6122_v40 = vpop.permute.xlu1 %1705  ;;  %v6124_v41 = vpop.permute.xlu0 %1702 }
  0xe4   : > { %8477 = vst [vmem:[#allocation35_spill] sm:$0xff] %v6122_v40  ;;  %8478 = vst [vmem:[#allocation36_spill] sm:$0xff] %v6124_v41 }
  0xe7   : > { %v6126_v42 = vpop.permute.xlu1 %1711  ;;  %v6128_v43 = vpop.permute.xlu0 %1708 }
  0xe8   : > { %8479 = vst [vmem:[#allocation37_spill] sm:$0xff] %v6126_v42  ;;  %8480 = vst [vmem:[#allocation38_spill] sm:$0xff] %v6128_v43  ;;  %v4803_v45 = vpop.f32.mrb[0].mxu0 }
  0xe9   : > { %v558_v46 = vadd.f32 %v4803_v45, %v6133_v44  ;;  %v549_v48 = vpop.f32.mrb[1].mxu0 }
  0xea   : > { %v550_v49 = vadd.f32 %v6133_v44, %v549_v48  ;;  %v4804_v51 = vpop.f32.mrb[2].mxu0 }
  0xeb   : > { %v6136_v47 = vpop.permute.xlu1 %1717  ;;  %v6139_v50 = vpop.permute.xlu0 %1714  ;;  %v678_v56 = vmax.f32 %v558_v46, 0.0  ;;  %v561_v2 = vadd.f32 %v4804_v51, %v6133_v44 }
  0xec   : > { %8481 = vst [vmem:[#allocation39_spill] sm:$0xff] %v6136_v47  ;;  %8482 = vst [vmem:[#allocation40_spill] sm:$0xff] %v6139_v50  ;;  %v552_v7 = vpop.f32.mrb[3].mxu0  ;;  %v676_v52 = vmax.f32 %v550_v49, 0.0 }
  0xed   : > { %v553_v53 = vadd.f32 %v6133_v44, %v552_v7  ;;  %717 = vst.msk [vmem:[#allocation2 + $0x28] sm:$0xff] %vm708_vm11, %v678_v56  ;;  %v679_v54 = vmax.f32 %v561_v2, 0.0 }
  0xee   : > { %715 = vst.msk [vmem:[#allocation2 + $0x18] sm:$0xff] %vm708_vm11, %v676_v52 }
  0xef   : > { %v6144_v0 = vpop.permute.xlu1 %911  ;;  %v677_v45 = vmax.f32 %v553_v53, 0.0  ;;  %v6147_v47 = vpop.permute.xlu0 %908  ;;  %718 = vst.msk [vmem:[#allocation2 + $0x30] sm:$0xff] %vm708_vm11, %v679_v54 }
  0xf0   : > { %v4807_v46 = vpop.f32.mrb[4].mxu0  ;;  %vm1003_vm9 = vcmp.eq.s32.totalorder %v6147_v47, 1  ;;  %vm1004_vm10 = vcmp.eq.s32.totalorder %v6144_v0, 1 }
  0xf1   : > { %716 = vst.msk [vmem:[#allocation2 + $0x20] sm:$0xff] %vm708_vm11, %v677_v45  ;;  %v574_v48 = vadd.f32 %v4807_v46, %v6133_v44  ;;  %v565_v51 = vpop.f32.mrb[5].mxu0 }
  0xf2   : > { %v566_v56 = vadd.f32 %v6133_v44, %v565_v51  ;;  %v4808_v7 = vpop.f32.mrb[6].mxu0 }
  0xf3   : > { %v6152_v49 = vpop.permute.xlu1 %917  ;;  %v6155_v2 = vpop.permute.xlu0 %914  ;;  %v682_v52 = vmax.f32 %v574_v48, 0.0  ;;  %v577_v53 = vadd.f32 %v4808_v7, %v6133_v44 }
  0xf4   : > { %8483 = vst [vmem:[#allocation41_spill] sm:$0xff] %v6152_v49  ;;  %v568_v50 = vpop.f32.mrb[7].mxu0  ;;  %vm8243_vm12 = vcmp.eq.s32.totalorder %v6152_v49, 1  ;;  %v680_v54 = vmax.f32 %v566_v56, 0.0  ;;  %vm1005_vm2 = vcmp.eq.s32.totalorder %v6155_v2, 1  ;;  %v1088_v38 = vld [vmem:[#allocation2 + $0x28] sm:$0xff] }
  0xf5   : > { %v569_v45 = vadd.f32 %v6133_v44, %v568_v50  ;;  %v6162_v46 = vld [vmem:[#allocation2 + $0x17] sm:$0xff]  ;;  %721 = vst.msk [vmem:[#allocation2 + $0x48] sm:$0xff] %vm708_vm11, %v682_v52  ;;  %v683_v51 = vmax.f32 %v577_v53, 0.0 }
  0xf6   : > { %v6167_v13 = vld [vmem:[#allocation2 + $0x2f] sm:$0xff]  ;;  %v6172_v48 = vsel %vm1003_vm9, %v6162_v46, 0.0  ;;  %719 = vst.msk [vmem:[#allocation2 + $0x38] sm:$0xff] %vm708_vm11, %v680_v54  ;;  %v1086_v33 = vld [vmem:[#allocation2 + $0x18] sm:$0xff] }
  0xf7   : > { %v6165_v4 = vpop.permute.xlu1 %923  ;;  %8484 = vst [vmem:[#allocation42_spill] sm:$0xff] %v6172_v48  ;;  %v681_v7 = vmax.f32 %v569_v45, 0.0  ;;  %v6175_v56 = vpop.permute.xlu0 %920  ;;  %v6182_v52 = vsel %vm1004_vm10, %v6167_v13, 0.0  ;;  %v6189_v14 = vsel %vm8243_vm12, %v6167_v13, 0.0  ;;  %722 = vst.msk [vmem:[#allocation2 + $0x50] sm:$0xff] %vm708_vm11, %v683_v51  ;;  %v1089_v36 = vld [vmem:[#allocation2 + $0x30] sm:$0xff] }
  0xf8   : > { %v6177_v50 = vld [vmem:[#allocation2 + $0x1f] sm:$0xff]  ;;  %8485 = vst [vmem:[#allocation43_spill] sm:$0xff] %v6182_v52  ;;  %v6184_v53 = vld [vmem:[#allocation2 + $0x27] sm:$0xff]  ;;  %8486 = vst [vmem:[#allocation44_spill] sm:$0xff] %v6189_v14  ;;  %v4811_v43 = vpop.f32.mrb[8].mxu0  ;;  %vm1007_vm13 = vcmp.eq.s32.totalorder %v6175_v56, 1 }
  0xf9   : > { %v6196_v54 = vsel %vm1004_vm10, %v6177_v50, 0.0  ;;  %v6201_v45 = vsel %vm1003_vm9, %v6184_v53, 0.0  ;;  %v6206_v42 = vsel %vm1005_vm2, %v6184_v53, 0.0  ;;  %720 = vst.msk [vmem:[#allocation2 + $0x40] sm:$0xff] %vm708_vm11, %v681_v7  ;;  %v1087_v41 = vld [vmem:[#allocation2 + $0x20] sm:$0xff]  ;;  %v581_v37 = vpop.f32.mrb[9].mxu0  ;;  %v590_v34 = vadd.f32 %v4811_v43, %v6133_v44 }
  0xfa   : > { %8487 = vst [vmem:[#allocation45_spill] sm:$0xff] %v6196_v54  ;;  %8488 = vst [vmem:[#allocation46_spill] sm:$0xff] %v6201_v45  ;;  %v582_v35 = vadd.f32 %v6133_v44, %v581_v37  ;;  %v4812_v32 = vpop.f32.mrb[10].mxu0  ;;  %v6223_v40 = vpack.c.bf16 %v1087_v41, %v1086_v33  ;;  %v6228_v37 = vpack.c.bf16 %v1089_v36, %v1088_v38  ;;  %v6233_v45 = vld [vmem:[%s8177_s4 + $0x4] sm:$0x3]  ;;  %vm1008_vm14 = vcmp.eq.s32.totalorder %v6165_v4, 1 }
  0xfb   : > { %8489 = vst [vmem:[#allocation47_spill] sm:$0xff] %v6206_v42  ;;  %v6215_v39 = vpop.permute.xlu1 %929  ;;  %v6219_v7 = vpop.permute.xlu0 %926  ;;  %v593_v51 = vadd.f32 %v4812_v32, %v6133_v44  ;;  %v1396_v42 = vsel %vm8264_vm8, %v6078_v19, 0  ;;  %v686_v14 = vmax.f32 %v590_v34, 0.0  ;;  %8493 = vst [vmem:[#allocation51_spill] sm:$0xff] %v6233_v45 }
  0xfc   : > { %8490 = vst [vmem:[#allocation48_spill] sm:$0xff] %v6215_v39  ;;  %vm8242_vm3 = vcmp.eq.s32.totalorder %v6215_v39, 1  ;;  %8491 = vst [vmem:[#allocation49_spill] sm:$0xff] %v6223_v40  ;;  %v584_v48 = vpop.f32.mrb[11].mxu0  ;;  %v684_v54 = vmax.f32 %v582_v35, 0.0  ;;  %4836 = vmatmul.mubr.msk.bf16.vlgmr.msra.gmra.mrb[32].mxu0 %vm708_vm11, %v6223_v40  ;;  %vm8244_vm15 = vcmp.eq.s32.totalorder %v6219_v7, 1 }
  0xfd   : > { %v585_v43 = vadd.f32 %v6133_v44, %v584_v48  ;;  %8492 = vst [vmem:[#allocation50_spill] sm:$0xff] %v6228_v37  ;;  %v6235_v52 = vld [vmem:[#allocation2 + $0x37] sm:$0xff]  ;;  %v687_v32 = vmax.f32 %v593_v51, 0.0  ;;  %725 = vst.msk [vmem:[#allocation2 + $0x68] sm:$0xff] %vm708_vm11, %v686_v14  ;;  %4839 = vmatprep.mubr.msk.bf16.mxu0 %vm708_vm11, %v6228_v37  ;;  %4868 = vmatpush3.bf16.msra.mxu0 %v1396_v42  ;;  %v844_v39 = vld [vmem:[#allocation2 + $0xf] sm:$0xff] }
  0xfe   : > { %8494 = vst [vmem:[#allocation52_spill] sm:$0xff] %v6235_v52  ;;  %v6245_v33 = vsel %vm1005_vm2, %v6235_v52, 0.0  ;;  %v6248_v34 = vld [vmem:[#allocation2 + $0x4f] sm:$0xff]  ;;  %v6253_v35 = vsel %vm1007_vm13, %v6235_v52, 0.0  ;;  %723 = vst.msk [vmem:[#allocation2 + $0x58] sm:$0xff] %vm708_vm11, %v684_v54  ;;  %5433 = vmatprep.subr.msk.bf16.mxu0 %vm8264_vm8, %v6233_v45 }
  0xff   : > { %v6240_v19 = vpop.permute.xlu1 %935  ;;  %8496 = vst [vmem:[#allocation54_spill] sm:$0xff] %v6245_v33  ;;  %8497 = vst [vmem:[#allocation55_spill] sm:$0xff] %v6248_v34  ;;  %v685_v36 = vmax.f32 %v585_v43, 0.0  ;;  %v6259_v38 = vpop.permute.xlu0 %932  ;;  %v6266_v48 = vsel %vm1008_vm14, %v6248_v34, 0.0  ;;  %v6273_v14 = vsel %vm8242_vm3, %v6248_v34, 0.0  ;;  %v6310_v34 = vsel %vm8264_vm8, %v6047_v5, 0 }
 0x100   : > { %8495 = vst [vmem:[#allocation53_spill] sm:$0xff] %v6240_v19  ;;  %8498 = vst [vmem:[#allocation56_spill] sm:$0xff] %v6253_v35  ;;  %v6261_v41 = vld [vmem:[#allocation2 + $0x3f] sm:$0xff]  ;;  %v6268_v51 = vld [vmem:[#allocation2 + $0x47] sm:$0xff]  ;;  %vm8231_vm1 = vcmp.eq.s32.totalorder %v6259_v38, 1  ;;  %vm8236_vm5 = vcmp.eq.s32.totalorder %v6240_v19, 1 }
 0x101   : > { %8499 = vst [vmem:[#allocation57_spill] sm:$0xff] %v6259_v38  ;;  %8500 = vst [vmem:[#allocation58_spill] sm:$0xff] %v6261_v41  ;;  %v6282_v42 = vsel %vm1008_vm14, %v6261_v41, 0.0  ;;  %v6287_v54 = vsel %vm1007_vm13, %v6268_v51, 0.0  ;;  %v6292_v43 = vsel %vm8244_vm15, %v6268_v51, 0.0  ;;  %v1091_v37 = vld [vmem:[#allocation2 + $0x40] sm:$0xff] }
 0x102   : > { %8501 = vst [vmem:[#allocation59_spill] sm:$0xff] %v6266_v48  ;;  %8502 = vst [vmem:[#allocation60_spill] sm:$0xff] %v6268_v51  ;;  %v1090_v35 = vld [vmem:[#allocation2 + $0x38] sm:$0xff]  ;;  %v843_v48 = vld [vmem:[#allocation2 + $0x7] sm:$0xff]  ;;  %vm8311_vm3 = vcmp.eq.s32.totalorder %v6024_v60, 1 }
 0x103   : > { %8503 = vst [vmem:[#allocation61_spill] sm:$0xff] %v6273_v14  ;;  %726 = vst.msk [vmem:[#allocation2 + $0x70] sm:$0xff] %vm708_vm11, %v687_v32  ;;  %v4815_v32 = vpop.f32.mrb[12].mxu0  ;;  %v6301_v41 = vpop.permute.xlu1 %941  ;;  %v6313_v14 = vpack.c.bf16 %v1091_v37, %v1090_v35  ;;  %v6345_v35 = vsel %vm1004_vm10, %v844_v39, 0.0  ;;  %vm8277_vm10 = vcmp.eq.s32.totalorder %v6018_v57, 1  ;;  %v6372_v0 = vsel %vm1003_vm9, %v843_v48, 0.0 }
 0x104   : > { %8504 = vst [vmem:[#allocation62_spill] sm:$0xff] %v6282_v42  ;;  %8505 = vst [vmem:[#allocation63_spill] sm:$0xff] %v6287_v54  ;;  %v597_v45 = vpop.f32.mrb[13].mxu0  ;;  %v606_v52 = vadd.f32 %v4815_v32, %v6133_v44  ;;  %v6304_v51 = vpop.permute.xlu0 %938  ;;  %vm8230_vm0 = vcmp.eq.s32.totalorder %v6301_v41, 1  ;;  %v1092_v54 = vld [vmem:[#allocation2 + $0x48] sm:$0xff]  ;;  %vm8276_vm9 = vcmp.eq.s32.totalorder %v6069_v16, 1 }
 0x105   : > { %8506 = vst [vmem:[#allocation64_spill] sm:$0xff] %v6292_v43  ;;  %724 = vst.msk [vmem:[#allocation2 + $0x60] sm:$0xff] %vm708_vm11, %v685_v36  ;;  %v4816_v40 = vpop.f32.mrb[14].mxu0  ;;  %v1093_v36 = vld [vmem:[#allocation2 + $0x50] sm:$0xff]  ;;  %v598_v11 = vadd.f32 %v6133_v44, %v597_v45  ;;  %4840 = vmatmul.mubr.msk.bf16.gmra.mrb[36].mxu0 %vm708_vm11, %v6313_v14  ;;  %vm8245_vm7 = vcmp.eq.s32.totalorder %v6304_v51, 1 }
 0x106   : > { %8507 = vst [vmem:[#allocation65_spill] sm:$0xff] %v6301_v41  ;;  %8508 = vst [vmem:[#allocation66_spill] sm:$0xff] %v6304_v51  ;;  %v609_v33 = vadd.f32 %v4816_v40, %v6133_v44  ;;  %v600_v42 = vpop.f32.mrb[15].mxu0  ;;  %v690_v43 = vmax.f32 %v606_v52, 0.0  ;;  %v6316_v12 = vld [vmem:[#allocation2 + $0x57] sm:$0xff]  ;;  %v6319_v30 = vpack.c.bf16 %v1093_v36, %v1092_v54 }
 0x107   : > { %8509 = vst [vmem:[#allocation67_spill] sm:$0xff] %v6313_v14  ;;  %v601_v32 = vadd.f32 %v6133_v44, %v600_v42  ;;  %8510 = vst [vmem:[#allocation68_spill] sm:$0xff] %v6316_v12  ;;  %v688_v40 = vmax.f32 %v598_v11, 0.0  ;;  %v6325_v5 = vsel %vm8244_vm15, %v6316_v12, 0.0  ;;  %v6333_v37 = vsel %vm8231_vm1, %v6316_v12, 0.0  ;;  %v6366_v39 = vpop.permute.xlu1 %947  ;;  %v1094_v14 = vld [vmem:[#allocation2 + $0x58] sm:$0xff] }
 0x108   : > { %v691_v45 = vmax.f32 %v609_v33, 0.0  ;;  %8511 = vst [vmem:[#allocation69_spill] sm:$0xff] %v6319_v30  ;;  %8512 = vst [vmem:[#allocation70_spill] sm:$0xff] %v6325_v5  ;;  %v6341_v33 = vld [vmem:[%s8177_s4 + $0xa] sm:$0x3]  ;;  %4843 = vmatprep.mubr.msk.bf16.mxu0 %vm708_vm11, %v6319_v30  ;;  %v6390_v47 = vpop.permute.xlu0 %944  ;;  %v4819_v48 = vpop.f32.mrb[16].mxu0 }
 0x109   : > { %8514 = vst [vmem:[#allocation72_spill] sm:$0xff] %v6333_v37  ;;  %729 = vst.msk [vmem:[#allocation2 + $0x88] sm:$0xff] %vm708_vm11, %v690_v43  ;;  %v689_v11 = vmax.f32 %v601_v32, 0.0  ;;  %v613_v41 = vpop.f32.mrb[17].mxu0  ;;  %vm8263_vm15 = vcmp.eq.s32.totalorder %v6390_v47, 1 }
 0x10a   : > { %v6328_v52 = vld [vmem:[#allocation2 + $0x6f] sm:$0xff]  ;;  %727 = vst.msk [vmem:[#allocation2 + $0x78] sm:$0xff] %vm708_vm11, %v688_v40  ;;  %730 = vst.msk [vmem:[#allocation2 + $0x90] sm:$0xff] %vm708_vm11, %v691_v45 }
 0x10b   : > { %8513 = vst [vmem:[#allocation71_spill] sm:$0xff] %v6328_v52  ;;  %v6352_v54 = vsel %vm8236_vm5, %v6328_v52, 0.0  ;;  %v6359_v36 = vsel %vm8230_vm0, %v6328_v52, 0.0  ;;  %8519 = vst [vmem:[#allocation77_spill] sm:$0xff] %v6366_v39  ;;  %vm8290_vm0 = vcmp.eq.s32.totalorder %v6071_v17, 1  ;;  %v1097_v38 = vld [vmem:[#allocation2 + $0x70] sm:$0xff] }
 0x10c   : > { %v6347_v42 = vld [vmem:[#allocation2 + $0x5f] sm:$0xff]  ;;  %8516 = vst [vmem:[#allocation74_spill] sm:$0xff] %v6352_v54  ;;  %v6354_v43 = vld [vmem:[#allocation2 + $0x67] sm:$0xff]  ;;  %8518 = vst [vmem:[#allocation76_spill] sm:$0xff] %v6359_v36  ;;  %v6409_v36 = vpop.permute.xlu1 %953 }
 0x10d   : > { %8515 = vst [vmem:[#allocation73_spill] sm:$0xff] %v6347_v42  ;;  %8517 = vst [vmem:[#allocation75_spill] sm:$0xff] %v6354_v43  ;;  %v6377_v32 = vsel %vm8236_vm5, %v6347_v42, 0.0  ;;  %v6382_v40 = vsel %vm8231_vm1, %v6354_v43, 0.0  ;;  %v6387_v45 = vsel %vm8245_vm7, %v6354_v43, 0.0  ;;  %v1095_v12 = vld [vmem:[#allocation2 + $0x60] sm:$0xff]  ;;  %v614_v43 = vadd.f32 %v6133_v44, %v613_v41 }
 0x10e   : > { %8520 = vst [vmem:[#allocation78_spill] sm:$0xff] %v6377_v32  ;;  %8521 = vst [vmem:[#allocation79_spill] sm:$0xff] %v6382_v40  ;;  %vm8268_vm1 = vcmp.eq.s32.totalorder %v6073_v18, 1  ;;  %v4820_v42 = vpop.f32.mrb[18].mxu0  ;;  %vm8291_vm5 = vcmp.eq.s32.totalorder %v6016_v55, 1  ;;  %v6407_v52 = vpack.c.bf16 %v1095_v12, %v1094_v14  ;;  %v6418_v41 = vsel %vm1005_vm2, %v6162_v46, 0.0 }
 0x10f   : > { %8522 = vst [vmem:[#allocation80_spill] sm:$0xff] %v6387_v45  ;;  %728 = vst.msk [vmem:[#allocation2 + $0x80] sm:$0xff] %vm708_vm11, %v689_v11  ;;  %v622_v11 = vadd.f32 %v4819_v48, %v6133_v44  ;;  %v625_v5 = vadd.f32 %v4820_v42, %v6133_v44  ;;  %v616_v45 = vpop.f32.mrb[19].mxu0  ;;  %v6413_v48 = vsel %vm8264_vm8, %v6341_v33, 0  ;;  %v692_v32 = vmax.f32 %v614_v43, 0.0  ;;  %v1096_v40 = vld [vmem:[#allocation2 + $0x68] sm:$0xff]  ;;  %v6421_v42 = vpop.permute.xlu0 %950 }
 0x110   : > { %8523 = vst [vmem:[#allocation81_spill] sm:$0xff] %v6390_v47  ;;  %8524 = vst [vmem:[#allocation82_spill] sm:$0xff] %v6407_v52  ;;  %v617_v30 = vadd.f32 %v6133_v44, %v616_v45  ;;  %v6426_v12 = vsel %vm8243_vm12, %v6177_v50, 0.0  ;;  %v6431_v14 = vsel %vm1008_vm14, %v6167_v13, 0.0  ;;  %v6433_v46 = vpack.c.bf16 %v1097_v38, %v1096_v40  ;;  %v6437_v43 = vld [vmem:[#allocation2 + $0x21] sm:$0xff]  ;;  %4844 = vmatmul.mubr.msk.bf16.gmra.mrb[40].mxu0 %vm708_vm11, %v6407_v52  ;;  %v6450_v13 = vld [vmem:[#allocation2 + $0x29] sm:$0xff] }
 0x111   : > { %8525 = vst [vmem:[#allocation83_spill] sm:$0xff] %v6409_v36  ;;  %8526 = vst [vmem:[#allocation84_spill] sm:$0xff] %v6413_v48  ;;  %v694_v37 = vmax.f32 %v622_v11, 0.0  ;;  %v695_v2 = vmax.f32 %v625_v5, 0.0  ;;  %v6435_v11 = vld [vmem:[#allocation2 + $0x19] sm:$0xff]  ;;  %vm8289_vm2 = vcmp.eq.s32.totalorder %v6020_v58, 1 }
 0x112   : > { %8527 = vst [vmem:[#allocation85_spill] sm:$0xff] %v6421_v42  ;;  %8528 = vst [vmem:[#allocation86_spill] sm:$0xff] %v6433_v46  ;;  %v6441_v45 = vld [vmem:[#allocation2 + $0x77] sm:$0xff]  ;;  %vm8250_vm12 = vcmp.eq.s32.totalorder %v6366_v39, 1  ;;  %v3004_v50 = vld [vmem:[#allocation2 + $0x8f] sm:$0xff]  ;;  %v693_v4 = vmax.f32 %v617_v30, 0.0  ;;  %4847 = vmatprep.mubr.msk.bf16.mxu0 %vm708_vm11, %v6433_v46 }
 0x113   : > { %8529 = vst [vmem:[#allocation87_spill] sm:$0xff] %v6435_v11  ;;  %8530 = vst [vmem:[#allocation88_spill] sm:$0xff] %v6437_v43  ;;  %vm8288_vm14 = vcmp.eq.s32.totalorder %v6409_v36, 1  ;;  %v6455_v38 = vsel %vm8245_vm7, %v6441_v45, 0.0  ;;  %vm8269_vm7 = vcmp.eq.s32.totalorder %v6421_v42, 1  ;;  %v6489_v46 = vsel %vm8276_vm9, %v6435_v11, 0.0 }
 0x114   : > { %8531 = vst [vmem:[#allocation89_spill] sm:$0xff] %v6441_v45  ;;  %733 = vst.msk [vmem:[#allocation2 + $0xa8] sm:$0xff] %vm708_vm11, %v694_v37  ;;  %v6461_v37 = vsel %vm8250_vm12, %v3004_v50, 0.0  ;;  %v1098_v47 = vld [vmem:[#allocation2 + $0x78] sm:$0xff]  ;;  %v6520_v11 = vsel %vm8295_vm6, %v3004_v50, 0.0  ;;  %vm8308_vm8 = vcmp.eq.s32.totalorder %v6030_v63, 1 }
 0x115   : > { %731 = vst.msk [vmem:[#allocation2 + $0x98] sm:$0xff] %vm708_vm11, %v692_v32  ;;  %8532 = vst [vmem:[#allocation90_spill] sm:$0xff] %v6450_v13  ;;  %v6466_v32 = vsel %vm8263_vm15, %v6441_v45, 0.0  ;;  %v6560_v19 = vsel %vm8276_vm9, %v6450_v13, 0.0  ;;  %vm8338_vm9 = vcmp.eq.s32.totalorder %v6038_v3, 1 }
 0x116   : > { %8533 = vst [vmem:[#allocation91_spill] sm:$0xff] %v6455_v38  ;;  %v6457_v5 = vld [vmem:[#allocation2 + $0x7f] sm:$0xff]  ;;  %8535 = vst [vmem:[#allocation93_spill] sm:$0xff] %v6461_v37  ;;  %v3003_v30 = vld [vmem:[#allocation2 + $0x87] sm:$0xff]  ;;  %v6503_v38 = vsel %vm8287_vm4, %v6437_v43, 0.0 }
 0x117   : > { %8534 = vst [vmem:[#allocation92_spill] sm:$0xff] %v6457_v5  ;;  %8536 = vst [vmem:[#allocation94_spill] sm:$0xff] %v6466_v32  ;;  %v6475_v40 = vsel %vm8250_vm12, %v6457_v5, 0.0  ;;  %v6479_v54 = vsel %vm8263_vm15, %v3003_v30, 0.0  ;;  %v6484_v49 = vsel %vm8269_vm7, %v3003_v30, 0.0  ;;  %v1099_v45 = vld [vmem:[#allocation2 + $0x80] sm:$0xff] }
 0x118   : > { %734 = vst.msk [vmem:[#allocation2 + $0xb0] sm:$0xff] %vm708_vm11, %v695_v2  ;;  %8537 = vst [vmem:[#allocation95_spill] sm:$0xff] %v6475_v40  ;;  %v4823_v2 = vpop.f32.mrb[20].mxu0  ;;  %vm8294_vm12 = vcmp.eq.s32.totalorder %v6026_v61, 1  ;;  %v6509_v52 = vpack.c.bf16 %v1099_v45, %v1098_v47  ;;  %v1101_v40 = vld [vmem:[#allocation2 + $0x90] sm:$0xff]  ;;  %v6516_v43 = vsel %vm8277_vm10, %v3003_v30, 0.0 }
 0x119   : > { %8538 = vst [vmem:[#allocation96_spill] sm:$0xff] %v6479_v54  ;;  %732 = vst.msk [vmem:[#allocation2 + $0xa0] sm:$0xff] %vm708_vm11, %v693_v4  ;;  %v6498_v4 = vsel %vm8288_vm14, %v3004_v50, 0.0  ;;  %v629_v51 = vpop.f32.mrb[21].mxu0  ;;  %v638_v39 = vadd.f32 %v4823_v2, %v6133_v44  ;;  %v6511_v54 = vld [vmem:[#allocation2 + $0x31] sm:$0xff]  ;;  %v1100_v2 = vld [vmem:[#allocation2 + $0x88] sm:$0xff] }
 0x11a   : > { %8539 = vst [vmem:[#allocation97_spill] sm:$0xff] %v6484_v49  ;;  %8540 = vst [vmem:[#allocation98_spill] sm:$0xff] %v6489_v46  ;;  %v630_v5 = vadd.f32 %v6133_v44, %v629_v51  ;;  %v4824_v32 = vpop.f32.mrb[22].mxu0  ;;  %v6525_v51 = vsel %vm8268_vm1, %v6450_v13, 0.0  ;;  %vm8305_vm15 = vcmp.eq.s32.totalorder %v6028_v62, 1  ;;  %4848 = vmatmul.mubr.msk.bf16.gmra.mrb[44].mxu0 %vm708_vm11, %v6509_v52  ;;  %vm8322_vm1 = vcmp.eq.s32.totalorder %v6088_v23, 1 }
 0x11b   : > { %8541 = vst [vmem:[#allocation99_spill] sm:$0xff] %v6498_v4  ;;  %8542 = vst [vmem:[#allocation100_spill] sm:$0xff] %v6503_v38  ;;  %v641_v37 = vadd.f32 %v4824_v32, %v6133_v44  ;;  %v632_v48 = vpop.f32.mrb[23].mxu0  ;;  %v698_v47 = vmax.f32 %v638_v39, 0.0  ;;  %v6532_v4 = vpack.c.bf16 %v1101_v40, %v1100_v2  ;;  %v6539_v39 = vsel %vm8290_vm0, %v6511_v54, 0.0 }
 0x11c   : > { %8543 = vst [vmem:[#allocation101_spill] sm:$0xff] %v6509_v52  ;;  %8544 = vst [vmem:[#allocation102_spill] sm:$0xff] %v6511_v54  ;;  %v696_v45 = vmax.f32 %v630_v5, 0.0  ;;  %v633_v32 = vadd.f32 %v6133_v44, %v632_v48  ;;  %v3005_v49 = vld [vmem:[#allocation2 + $0x97] sm:$0xff] }
 0x11d   : > { %8545 = vst [vmem:[#allocation103_spill] sm:$0xff] %v6516_v43  ;;  %8546 = vst [vmem:[#allocation104_spill] sm:$0xff] %v6520_v11  ;;  %v699_v50 = vmax.f32 %v641_v37, 0.0  ;;  %v6545_v48 = vsel %vm8269_vm7, %v3005_v49, 0.0  ;;  %v1102_v37 = vld [vmem:[#allocation2 + $0x98] sm:$0xff]  ;;  %v6555_v2 = vsel %vm8291_vm5, %v3005_v49, 0.0  ;;  %4851 = vmatprep.mubr.msk.bf16.mxu0 %vm708_vm11, %v6532_v4 }
 0x11e   : > { %8547 = vst [vmem:[#allocation105_spill] sm:$0xff] %v6525_v51  ;;  %8548 = vst [vmem:[#allocation106_spill] sm:$0xff] %v6532_v4  ;;  %v697_v5 = vmax.f32 %v633_v32, 0.0  ;;  %vm8335_vm7 = vcmp.eq.s32.totalorder %v6082_v20, 1  ;;  %v2093_v32 = vsel %vm8277_vm10, %v3005_v49, 0.0  ;;  %v4827_v49 = vpop.f32.mrb[24].mxu0 }
 0x11f   : > { %8549 = vst [vmem:[#allocation107_spill] sm:$0xff] %v6539_v39  ;;  %8550 = vst [vmem:[#allocation108_spill] sm:$0xff] %v6545_v48  ;;  %v6551_v40 = vld [vmem:[#allocation2 + $0xaf] sm:$0xff]  ;;  %vm8328_vm10 = vcmp.eq.s32.totalorder %v6086_v22, 1  ;;  %v654_v51 = vadd.f32 %v4827_v49, %v6133_v44 }
 0x120   : > { %737 = vst.msk [vmem:[#allocation2 + $0xc8] sm:$0xff] %vm708_vm11, %v698_v47  ;;  %735 = vst.msk [vmem:[#allocation2 + $0xb8] sm:$0xff] %vm708_vm11, %v696_v45  ;;  %v3006_v47 = vld [vmem:[#allocation2 + $0x9f] sm:$0xff]  ;;  %v6569_v30 = vld [vmem:[#allocation2 + $0xa7] sm:$0xff]  ;;  %v2096_v46 = vsel %vm8289_vm2, %v6551_v40, 0.0  ;;  %v6577_v38 = vsel %vm8311_vm3, %v6551_v40, 0.0 }
 0x121   : > { %8551 = vst [vmem:[#allocation109_spill] sm:$0xff] %v6555_v2  ;;  %8552 = vst [vmem:[#allocation110_spill] sm:$0xff] %v6560_v19  ;;  %v1103_v45 = vld [vmem:[#allocation2 + $0xa0] sm:$0xff]  ;;  %v6583_v43 = vsel %vm8288_vm14, %v3006_v47, 0.0  ;;  %v2094_v4 = vsel %vm8295_vm6, %v3006_v47, 0.0  ;;  %v2095_v42 = vsel %vm8291_vm5, %v6569_v30, 0.0 }
 0x122   : > { %738 = vst.msk [vmem:[#allocation2 + $0xd0] sm:$0xff] %vm708_vm11, %v699_v50  ;;  %8553 = vst [vmem:[#allocation111_spill] sm:$0xff] %v6577_v38  ;;  %v6586_v11 = vpack.c.bf16 %v1103_v45, %v1102_v37  ;;  %v2117_v39 = vpack.c.bf16 %v2094_v4, %v2093_v32  ;;  %v2118_v37 = vpack.c.bf16 %v2096_v46, %v2095_v42  ;;  %v6598_v45 = vld [vmem:[#allocation2 + $0x39] sm:$0xff]  ;;  %v1105_v13 = vld [vmem:[#allocation2 + $0xb0] sm:$0xff]  ;;  %v6603_v36 = vsel %vm8289_vm2, %v3006_v47, 0.0 }
 0x123   : > { %8554 = vst [vmem:[#allocation112_spill] sm:$0xff] %v6583_v43  ;;  %736 = vst.msk [vmem:[#allocation2 + $0xc0] sm:$0xff] %vm708_vm11, %v697_v5  ;;  %v645_v5 = vpop.f32.mrb[25].mxu0  ;;  %v6608_v55 = vsel %vm8294_vm12, %v6569_v30, 0.0  ;;  %v6613_v4 = vsel %vm8287_vm4, %v6511_v54, 0.0  ;;  %v6615_v42 = vld [vmem:[#allocation2 + $0x41] sm:$0xff] }
 0x124   : > { %8555 = vst [vmem:[#allocation113_spill] sm:$0xff] %v6586_v11  ;;  %8556 = vst [vmem:[#allocation114_spill] sm:$0xff] %v6598_v45  ;;  %v646_v52 = vadd.f32 %v6133_v44, %v645_v5  ;;  %v4828_v16 = vpop.f32.mrb[26].mxu0  ;;  %v702_v46 = vmax.f32 %v654_v51, 0.0  ;;  %4953 = vmatprep.mubr.msk.bf16.mxu1 %vm708_vm11, %v2117_v39  ;;  %v6626_v50 = vsel %vm1007_vm13, %v6184_v53, 0.0  ;;  %v1104_v51 = vld [vmem:[#allocation2 + $0xa8] sm:$0xff]  ;;  %4852 = vmatmul.mubr.msk.bf16.gmra.mrb[48].mxu0 %vm708_vm11, %v6586_v11 }
 0x125   : > { %8557 = vst [vmem:[#allocation115_spill] sm:$0xff] %v6603_v36  ;;  %8558 = vst [vmem:[#allocation116_spill] sm:$0xff] %v6608_v55  ;;  %v657_v32 = vadd.f32 %v4828_v16, %v6133_v44  ;;  %v648_v49 = vpop.f32.mrb[27].mxu0  ;;  %4954 = vmatmul.mubr.msk.bf16.vlgmr.msra.gmra.mrb[0].mxu1 %vm708_vm11, %v2118_v37  ;;  %vm8337_vm4 = vcmp.eq.s32.totalorder %v6051_v8, 1  ;;  %v6634_v5 = vpack.c.bf16 %v1105_v13, %v1104_v51  ;;  %vm8562_vm13 = vcmp.eq.s32.totalorder %v6073_v18, 1  ;;  %v6828_v22 = vld [vmem:[#allocation2 + $0x71] sm:$0xff] }
 0x126   : > { %8559 = vst [vmem:[#allocation117_spill] sm:$0xff] %v6613_v4  ;;  %8560 = vst [vmem:[#allocation118_spill] sm:$0xff] %v6615_v42  ;;  %v700_v48 = vmax.f32 %v646_v52, 0.0  ;;  %v649_v43 = vadd.f32 %v6133_v44, %v648_v49  ;;  %4970 = vmatpush3.bf16.msra.mxu1 %v6310_v34  ;;  %v6642_v52 = vsel %vm8562_vm13, %v6598_v45, 0.0  ;;  %v6647_v37 = vsel %vm8290_vm0, %v6615_v42, 0.0  ;;  %v6649_v49 = vld [vmem:[#allocation2 + $0x49] sm:$0xff] }
 0x127   : > { %741 = vst.msk [vmem:[#allocation2 + $0xe8] sm:$0xff] %vm708_vm11, %v702_v46  ;;  %v703_v39 = vmax.f32 %v657_v32, 0.0  ;;  %8561 = vst [vmem:[#allocation119_spill] sm:$0xff] %v6634_v5  ;;  %v1106_v56 = vld [vmem:[#allocation2 + $0xb8] sm:$0xff]  ;;  %vm8336_vm14 = vcmp.eq.s32.totalorder %v6049_v6, 1  ;;  %vm1032_vm2 = vcmp.eq.s32.totalorder %v6055_v9, 1  ;;  %4855 = vmatprep.mubr.msk.bf16.mxu0 %vm708_vm11, %v6634_v5 }
 0x128   : > { %v6637_v53 = vld [vmem:[#allocation2 + $0xb7] sm:$0xff]  ;;  %8563 = vst [vmem:[#allocation120_spill] sm:$0xff] %v6642_v52  ;;  %8564 = vst [vmem:[#allocation121_spill] sm:$0xff] %v6647_v37  ;;  %v701_v34 = vmax.f32 %v649_v43, 0.0  ;;  %v1108_v13 = vld [vmem:[#allocation2 + $0xc8] sm:$0xff]  ;;  %vm8566_vm13 = vcmask 1041408  }
 0x129   : > { %8565 = vst [vmem:[#allocation122_spill] sm:$0xff] %v6649_v49  ;;  %739 = vst.msk [vmem:[#allocation2 + $0xd8] sm:$0xff] %vm708_vm11, %v700_v48  ;;  %v1109_v46 = vld [vmem:[#allocation2 + $0xd0] sm:$0xff]  ;;  %v2097_v32 = vsel %vm8294_vm12, %v6637_v53, 0.0  ;;  %5437 = vmatprep.subr.msk.bf16.mxu1 %vm8566_vm13, %v6341_v33  ;;  %v6666_v16 = vsel %vm8308_vm8, %v6637_v53, 0.0  ;;  %vm8569_vm13 = vcmp.eq.s32.totalorder %v6036_v1, 1 }
 0x12a   : > { %v6659_v51 = vld [vmem:[#allocation2 + $0xcf] sm:$0xff]  ;;  %8567 = vst [vmem:[#allocation123_spill] sm:$0xff] %v6666_v16  ;;  %742 = vst.msk [vmem:[#allocation2 + $0xf0] sm:$0xff] %vm708_vm11, %v703_v39  ;;  %v1107_v43 = vld [vmem:[#allocation2 + $0xc0] sm:$0xff]  ;;  %v6675_v47 = vpack.c.bf16 %v1109_v46, %v1108_v13  ;;  %vm8571_vm12 = vcmp.eq.s32.totalorder %v6084_v21, 1  ;;  %vm8370_vm6 = vcmp.eq.s32.totalorder %v6057_v10, 1 }
 0x12b   : > { %v6677_v33 = vld [vmem:[#allocation2 + $0xbf] sm:$0xff]  ;;  %v6679_v19 = vld [vmem:[#allocation2 + $0xc7] sm:$0xff]  ;;  %v2100_v48 = vsel %vm8305_vm15, %v6659_v51, 0.0  ;;  %v6687_v52 = vsel %vm8569_vm13, %v6659_v51, 0.0  ;;  %v6692_v39 = vsel %vm8571_vm12, %v6598_v45, 0.0  ;;  %vm8356_vm0 = vcmp.eq.s32.totalorder %v6094_v26, 1 }
 0x12c   : > { %8568 = vst [vmem:[#allocation124_spill] sm:$0xff] %v6675_v47  ;;  %8570 = vst [vmem:[#allocation125_spill] sm:$0xff] %v6687_v52  ;;  %vm8368_vm5 = vcmp.eq.s32.totalorder %v6096_v27, 1  ;;  %v4831_v13 = vpop.f32.mrb[28].mxu0  ;;  %v6698_v46 = vpack.c.bf16 %v1107_v43, %v1106_v56  ;;  %v2098_v37 = vsel %vm8311_vm3, %v6677_v33, 0.0  ;;  %v2099_v4 = vsel %vm8308_vm8, %v6679_v19, 0.0 }
 0x12d   : > { %8572 = vst [vmem:[#allocation126_spill] sm:$0xff] %v6692_v39  ;;  %740 = vst.msk [vmem:[#allocation2 + $0xe0] sm:$0xff] %vm708_vm11, %v701_v34  ;;  %v6709_v55 = vsel %vm8305_vm15, %v6677_v33, 0.0  ;;  %v670_v38 = vadd.f32 %v4831_v13, %v6133_v44  ;;  %v661_v2 = vpop.f32.mrb[29].mxu0  ;;  %v2119_v34 = vpack.c.bf16 %v2098_v37, %v2097_v32  ;;  %v2120_v36 = vpack.c.bf16 %v2100_v48, %v2099_v4  ;;  %v6714_v43 = vld [vmem:[#allocation2 + $0x51] sm:$0xff]  ;;  %v6734_v32 = vld [vmem:[#allocation2 + $0x59] sm:$0xff] }
 0x12e   : > { %8573 = vst [vmem:[#allocation127_spill] sm:$0xff] %v6698_v46  ;;  %8574 = vst [vmem:[#allocation128_spill] sm:$0xff] %v6709_v55  ;;  %vm1734_vm12 = vcmp.eq.s32.totalorder %v6098_v28, 1  ;;  %vm8377_vm13 = vcmp.eq.s32.totalorder %v6100_v29, 1  ;;  %v662_v5 = vadd.f32 %v6133_v44, %v661_v2  ;;  %v4832_v11 = vpop.f32.mrb[30].mxu0  ;;  %v6722_v17 = vsel %vm8338_vm9, %v6679_v19, 0.0  ;;  %4856 = vmatmul.mubr.msk.bf16.gmra.mrb[52].mxu0 %vm708_vm11, %v6698_v46 }
 0x12f   : > { %8575 = vst [vmem:[#allocation129_spill] sm:$0xff] %v6714_v43  ;;  %8576 = vst [vmem:[#allocation130_spill] sm:$0xff] %v6722_v17  ;;  %v6727_v4 = vsel %vm8335_vm7, %v6615_v42, 0.0  ;;  %v6732_v37 = vsel %vm8322_vm1, %v6649_v49, 0.0  ;;  %v706_v2 = vmax.f32 %v670_v38, 0.0  ;;  %v673_v48 = vadd.f32 %v4832_v11, %v6133_v44  ;;  %v664_v13 = vpop.f32.mrb[31].mxu0  ;;  %4957 = vmatprep.mubr.msk.bf16.mxu1 %vm708_vm11, %v2119_v34  ;;  %4859 = vmatprep.mubr.msk.bf16.mxu0 %vm708_vm11, %v6675_v47 }
 0x130   : > { %8577 = vst [vmem:[#allocation131_spill] sm:$0xff] %v6727_v4  ;;  %8578 = vst [vmem:[#allocation132_spill] sm:$0xff] %v6732_v37  ;;  %v8580_v55 = vld [vmem:[#allocation26_spill] sm:$0xff]  ;;  %v704_v18 = vmax.f32 %v662_v5, 0.0  ;;  %v665_v15 = vadd.f32 %v6133_v44, %v664_v13  ;;  %4958 = vmatmul.mubr.msk.bf16.gmra.mrb[4].mxu1 %vm708_vm11, %v2120_v36  ;;  %v6749_v11 = vsel %vm8328_vm10, %v6714_v43, 0.0  ;;  %vm8582_vm3 = vcmp.eq.s32.totalorder %v6084_v21, 1 }
 0x131   : > { %8579 = vst [vmem:[#allocation133_spill] sm:$0xff] %v6734_v32  ;;  %vm1736_vm8 = vcmp.eq.s32.totalorder %v8580_v55, 1  ;;  %8581 = vst [vmem:[#allocation26_spill] sm:$0xff] %v6749_v11  ;;  %v6754_v38 = vsel %vm8582_vm3, %v6649_v49, 0.0  ;;  %v6756_v34 = vld [vmem:[#allocation2 + $0x61] sm:$0xff]  ;;  %v707_v5 = vmax.f32 %v673_v48, 0.0 }
 0x132   : > { %8583 = vst [vmem:[#allocation134_spill] sm:$0xff] %v6754_v38  ;;  %8584 = vst [vmem:[#allocation135_spill] sm:$0xff] %v6756_v34  ;;  %v8585_v16 = vld [vmem:[#allocation10_spill] sm:$0xff]  ;;  %v6760_v13 = vld [vmem:[#allocation2 + $0xd7] sm:$0xff]  ;;  %v6767_v56 = vsel %vm8335_vm7, %v6714_v43, 0.0  ;;  %v6772_v39 = vsel %vm8322_vm1, %v6734_v32, 0.0 }
 0x133   : > { %vm8387_vm15 = vcmp.eq.s32.totalorder %v8585_v16, 1  ;;  %745 = vst.msk [vmem:[#allocation2 + $0x108] sm:$0xff] %vm708_vm11, %v706_v2  ;;  %v1112_v44 = vld [vmem:[#allocation2 + $0xe8] sm:$0xff]  ;;  %8586 = vst [vmem:[#allocation136_spill] sm:$0xff] %v6767_v56  ;;  %v8588_v4 = vld [vmem:[#allocation9_spill] sm:$0xff]  ;;  %v705_v2 = vmax.f32 %v665_v15, 0.0 }
 0x134   : > { %8587 = vst [vmem:[#allocation137_spill] sm:$0xff] %v6772_v39  ;;  %vm8382_vm3 = vcmp.eq.s32.totalorder %v8588_v4, 1  ;;  %743 = vst.msk [vmem:[#allocation2 + $0xf8] sm:$0xff] %vm708_vm11, %v704_v18  ;;  %v1110_v48 = vld [vmem:[#allocation2 + $0xd8] sm:$0xff]  ;;  %v1113_v36 = vld [vmem:[#allocation2 + $0xf0] sm:$0xff]  ;;  %v2101_v37 = vsel %vm8338_vm9, %v6760_v13, 0.0 }
 0x135   : > { %v6781_v11 = vld [vmem:[#allocation2 + $0xef] sm:$0xff]  ;;  %v6786_v17 = vsel %vm8337_vm4, %v6760_v13, 0.0  ;;  %746 = vst.msk [vmem:[#allocation2 + $0x110] sm:$0xff] %vm708_vm11, %v707_v5  ;;  %v1111_v15 = vld [vmem:[#allocation2 + $0xe0] sm:$0xff]  ;;  %v6793_v52 = vpack.c.bf16 %v1113_v36, %v1112_v44  ;;  %v6810_v5 = vsel %vm8328_vm10, %v6756_v34, 0.0  ;;  %744 = vst.msk [vmem:[#allocation2 + $0x100] sm:$0xff] %vm708_vm11, %v705_v2 }
 0x136   : > { %8589 = vst [vmem:[#allocation138_spill] sm:$0xff] %v6786_v17  ;;  %v6795_v46 = vld [vmem:[#allocation2 + $0xdf] sm:$0xff]  ;;  %v6797_v23 = vld [vmem:[#allocation2 + $0xe7] sm:$0xff]  ;;  %v2104_v20 = vsel %vm8336_vm14, %v6781_v11, 0.0  ;;  %v6805_v18 = vsel %vm1032_vm2, %v6781_v11, 0.0  ;;  %8592 = vst [vmem:[#allocation141_spill] sm:$0xff] %v6810_v5  ;;  %v6813_v44 = vpack.c.bf16 %v1111_v15, %v1110_v48 }
 0x137   : > { %8590 = vst [vmem:[#allocation139_spill] sm:$0xff] %v6793_v52  ;;  %8591 = vst [vmem:[#allocation140_spill] sm:$0xff] %v6805_v18  ;;  %vm8594_vm1 = vcmp.eq.s32.totalorder %v6036_v1, 1  ;;  %v2103_v38 = vsel %vm8337_vm4, %v6797_v23, 0.0  ;;  %v6824_v56 = vsel %vm8336_vm14, %v6795_v46, 0.0  ;;  %v6826_v47 = vld [vmem:[#allocation2 + $0x69] sm:$0xff] }
 0x138   : > { %8593 = vst [vmem:[#allocation142_spill] sm:$0xff] %v6813_v44  ;;  %v2102_v36 = vsel %vm8594_vm1, %v6795_v46, 0.0  ;;  %8595 = vst [vmem:[#allocation143_spill] sm:$0xff] %v6824_v56  ;;  %v8598_v2 = vld [vmem:[#allocation28_spill] sm:$0xff]  ;;  %v2122_v15 = vpack.c.bf16 %v2104_v20, %v2103_v38  ;;  %v6836_v43 = vsel %vm8370_vm6, %v6797_v23, 0.0  ;;  %v6840_v42 = vld [vmem:[#allocation2 + $0x81] sm:$0xff]  ;;  %4860 = vmatmul.mubr.msk.bf16.gmra.mrb[56].mxu0 %vm708_vm11, %v6813_v44 }
 0x139   : > { %8596 = vst [vmem:[#allocation144_spill] sm:$0xff] %v6826_v47  ;;  %8597 = vst [vmem:[#allocation145_spill] sm:$0xff] %v6828_v22  ;;  %vm1737_vm10 = vcmp.eq.s32.totalorder %v8598_v2, 1  ;;  %v2121_v48 = vpack.c.bf16 %v2102_v36, %v2101_v37  ;;  %v6838_v49 = vld [vmem:[#allocation2 + $0x79] sm:$0xff]  ;;  %v8602_v45 = vld [vmem:[#allocation27_spill] sm:$0xff]  ;;  %vm8604_vm14 = vcmp.eq.s32.totalorder %v6092_v25, 1  ;;  %4863 = vmatprep.mubr.msk.bf16.mxu0 %vm708_vm11, %v6793_v52 }
 0x13a   : > { %8599 = vst [vmem:[#allocation28_spill] sm:$0xff] %v6836_v43  ;;  %8600 = vst [vmem:[#allocation146_spill] sm:$0xff] %v6838_v49  ;;  %vm1738_vm1 = vcmp.eq.s32.totalorder %v8602_v45, 1  ;;  %v8603_v54 = vld [vmem:[#allocation30_spill] sm:$0xff]  ;;  %v6851_v38 = vsel %vm8604_vm14, %v6734_v32, 0.0  ;;  %vm8606_vm4 = vcmp.eq.s32.totalorder %v6090_v24, 1 }
 0x13b   : > { %8601 = vst [vmem:[#allocation147_spill] sm:$0xff] %v6840_v42  ;;  %8605 = vst [vmem:[#allocation27_spill] sm:$0xff] %v6851_v38  ;;  %v6856_v36 = vsel %vm8606_vm4, %v6756_v34, 0.0  ;;  %v8608_v21 = vld [vmem:[#allocation29_spill] sm:$0xff]  ;;  %4961 = vmatprep.mubr.msk.bf16.mxu1 %vm708_vm11, %v2121_v48  ;;  %v6865_v20 = vsel %vm8368_vm5, %v6826_v47, 0.0  ;;  %v6870_v39 = vsel %vm8356_vm0, %v6828_v22, 0.0 }
 0x13c   : > { %8607 = vst [vmem:[#allocation30_spill] sm:$0xff] %v6856_v36  ;;  %8609 = vst [vmem:[#allocation29_spill] sm:$0xff] %v6865_v20  ;;  %v6877_v43 = vld [vmem:[#allocation2 + $0x89] sm:$0xff]  ;;  %4962 = vmatmul.mubr.msk.bf16.gmra.mrb[8].mxu1 %vm708_vm11, %v2122_v15  ;;  %v6890_v38 = vsel %vm8368_vm5, %v6838_v49, 0.0  ;;  %v6895_v36 = vsel %vm8356_vm0, %v6840_v42, 0.0  ;;  %v6897_v18 = vld [vmem:[#allocation2 + $0x91] sm:$0xff] }
 0x13d   : > { %8610 = vst [vmem:[#allocation148_spill] sm:$0xff] %v6870_v39  ;;  %vm8611_vm4 = vmmov %vm8604_vm14  ;;  %vm8614_vm14 = vcmp.eq.s32.totalorder %v6090_v24, 1  ;;  %v8618_v15 = vld [vmem:[#allocation31_spill] sm:$0xff]  ;;  %v8619_v48 = vld [vmem:[#allocation32_spill] sm:$0xff]  ;;  %v6911_v26 = vsel %vm8377_vm13, %v6838_v49, 0.0  ;;  %v6916_v27 = vsel %vm1734_vm12, %v6840_v42, 0.0 }
 0x13e   : > { %v6875_v5 = vsel %vm8611_vm4, %v6826_v47, 0.0  ;;  %8613 = vst [vmem:[#allocation150_spill] sm:$0xff] %v6877_v43  ;;  %v6885_v37 = vsel %vm8614_vm14, %v6828_v22, 0.0  ;;  %8616 = vst [vmem:[#allocation152_spill] sm:$0xff] %v6890_v38  ;;  %vm1742_vm4 = vcmp.eq.s32.totalorder %v8618_v15, 1  ;;  %vm1741_vm9 = vcmp.eq.s32.totalorder %v8619_v48, 1 }
 0x13f   : > { %8612 = vst [vmem:[#allocation149_spill] sm:$0xff] %v6875_v5  ;;  %8615 = vst [vmem:[#allocation151_spill] sm:$0xff] %v6885_v37  ;;  %v8620_v20 = vld [vmem:[#allocation34_spill] sm:$0xff]  ;;  %v6902_v39 = vld [vmem:[#allocation2 + $0xf7] sm:$0xff]  ;;  %vm8627_vm0 = vcmp.eq.s32.totalorder %v6104_v31, 1  ;;  %v6961_v42 = vsel %vm8377_vm13, %v6877_v43, 0.0 }
 0x140   : > { %8617 = vst [vmem:[#allocation153_spill] sm:$0xff] %v6895_v36  ;;  %vm1743_vm7 = vcmp.eq.s32.totalorder %v8620_v20, 1  ;;  %8621 = vst [vmem:[#allocation31_spill] sm:$0xff] %v6902_v39  ;;  %v6918_v24 = vld [vmem:[#allocation2 + $0x99] sm:$0xff]  ;;  %v2105_v56 = vsel %vm8370_vm6, %v6902_v39, 0.0  ;;  %v6926_v38 = vld [vmem:[#allocation2 + $0x10f] sm:$0xff] }
 0x141   : > { %8622 = vst [vmem:[#allocation32_spill] sm:$0xff] %v6911_v26  ;;  %8623 = vst [vmem:[#allocation154_spill] sm:$0xff] %v6916_v27  ;;  %v8624_v25 = vld [vmem:[#allocation33_spill] sm:$0xff]  ;;  %v1114_v17 = vld [vmem:[#allocation2 + $0xf8] sm:$0xff]  ;;  %v6931_v36 = vsel %vm8387_vm15, %v6902_v39, 0.0  ;;  %v6938_v37 = vsel %vm8627_vm0, %v6877_v43, 0.0 }
 0x142   : > { %vm1744_vm14 = vcmp.eq.s32.totalorder %v8624_v25, 1  ;;  %8625 = vst [vmem:[#allocation155_spill] sm:$0xff] %v6926_v38  ;;  %8626 = vst [vmem:[#allocation156_spill] sm:$0xff] %v6931_v36  ;;  %v6940_v44 = vld [vmem:[#allocation2 + $0xa1] sm:$0xff]  ;;  %v2108_v5 = vsel %vm8382_vm3, %v6926_v38, 0.0  ;;  %v6956_v26 = vsel %vm1736_vm8, %v6897_v18, 0.0 }
 0x143   : > { %8628 = vst [vmem:[#allocation157_spill] sm:$0xff] %v6938_v37  ;;  %v1115_v49 = vld [vmem:[#allocation2 + $0x100] sm:$0xff]  ;;  %8629 = vst [vmem:[#allocation158_spill] sm:$0xff] %v6956_v26  ;;  %v8631_v27 = vld [vmem:[#allocation35_spill] sm:$0xff]  ;;  %v6991_v4 = vsel %vm1734_vm12, %v6897_v18, 0.0  ;;  %v7020_v37 = vsel %vm1738_vm1, %v6940_v44, 0.0 }
 0x144   : > { %v6946_v22 = vld [vmem:[#allocation2 + $0xff] sm:$0xff]  ;;  %v6948_v47 = vld [vmem:[#allocation2 + $0x107] sm:$0xff]  ;;  %8630 = vst [vmem:[#allocation159_spill] sm:$0xff] %v6961_v42  ;;  %vm1746_vm0 = vcmp.eq.s32.totalorder %v8631_v27, 1  ;;  %v6966_v32 = vpack.c.bf16 %v1115_v49, %v1114_v17  ;;  %v6986_v39 = vld [vmem:[#allocation2 + $0xb1] sm:$0xff] }
 0x145   : > { %v8632_v52 = vld [vmem:[#allocation36_spill] sm:$0xff]  ;;  %v8633_v34 = vld [vmem:[#allocation38_spill] sm:$0xff]  ;;  %v2106_v38 = vsel %vm1032_vm2, %v6946_v22, 0.0  ;;  %v2107_v10 = vsel %vm8387_vm15, %v6948_v47, 0.0  ;;  %v6977_v29 = vsel %vm8382_vm3, %v6946_v22, 0.0  ;;  %v8636_v6 = vld [vmem:[#allocation37_spill] sm:$0xff] }
 0x146   : > { %vm1745_vm5 = vcmp.eq.s32.totalorder %v8632_v52, 1  ;;  %vm8429_vm6 = vcmp.eq.s32.totalorder %v8633_v34, 1  ;;  %8634 = vst [vmem:[#allocation160_spill] sm:$0xff] %v6966_v32  ;;  %8635 = vst [vmem:[#allocation161_spill] sm:$0xff] %v6977_v29  ;;  %v6979_v43 = vld [vmem:[#allocation2 + $0xa9] sm:$0xff]  ;;  %vm8423_vm13 = vcmp.eq.s32.totalorder %v8636_v6, 1  ;;  %v2123_v8 = vpack.c.bf16 %v2106_v38, %v2105_v56  ;;  %4864 = vmatmul.mubr.msk.bf16.gmra.mrb[60].mxu0 %vm708_vm11, %v6966_v32 }
 0x147   : > { %v2124_v17 = vpack.c.bf16 %v2108_v5, %v2107_v10  ;;  %8637 = vst [vmem:[#allocation162_spill] sm:$0xff] %v6991_v4  ;;  %vm8638_vm3 = vcmp.eq.s32.totalorder %v6104_v31, 1  ;;  %v7001_v10 = vsel %vm1736_vm8, %v6940_v44, 0.0  ;;  %v7006_v56 = vsel %vm1737_vm10, %v6918_v24, 0.0  ;;  %v7008_v5 = vld [vmem:[#allocation2 + $0xb9] sm:$0xff]  ;;  %v7010_v38 = vld [vmem:[#allocation2 + $0xc1] sm:$0xff] }
 0x148   : > { %v6996_v16 = vsel %vm8638_vm3, %v6918_v24, 0.0  ;;  %8640 = vst [vmem:[#allocation164_spill] sm:$0xff] %v7001_v10  ;;  %8641 = vst [vmem:[#allocation165_spill] sm:$0xff] %v7006_v56  ;;  %4965 = vmatprep.mubr.msk.bf16.mxu1 %vm708_vm11, %v2123_v8  ;;  %vm8643_vm3 = vcmp.eq.s32.totalorder %v8603_v54, 1  ;;  %v7027_v36 = vld [vmem:[#allocation2 + $0xc9] sm:$0xff]  ;;  %vm8645_vm15 = vcmp.eq.s32.totalorder %v8608_v21, 1 }
 0x149   : > { %8639 = vst [vmem:[#allocation163_spill] sm:$0xff] %v6996_v16  ;;  %8642 = vst [vmem:[#allocation166_spill] sm:$0xff] %v7020_v37  ;;  %v7025_v26 = vsel %vm8643_vm3, %v6979_v43, 0.0  ;;  %4966 = vmatmul.mubr.msk.bf16.gmra.mrb[12].mxu1 %vm708_vm11, %v2124_v17  ;;  %v7035_v49 = vsel %vm8645_vm15, %v6986_v39, 0.0  ;;  %v7040_v9 = vsel %vm1737_vm10, %v6979_v43, 0.0  ;;  %v7045_v16 = vsel %vm1738_vm1, %v6986_v39, 0.0 }
 0x14a   : > { %8644 = vst [vmem:[#allocation167_spill] sm:$0xff] %v7025_v26  ;;  %8646 = vst [vmem:[#allocation168_spill] sm:$0xff] %v7035_v49  ;;  %v7047_v10 = vld [vmem:[#allocation2 + $0xd1] sm:$0xff]  ;;  %v8649_v17 = vld [vmem:[#allocation49_spill] sm:$0xff]  ;;  %v7076_v8 = vsel %vm1741_vm9, %v7008_v5, 0.0  ;;  %v7081_v56 = vsel %vm1742_vm4, %v7010_v38, 0.0 }
 0x14b   : > { %8647 = vst [vmem:[#allocation169_spill] sm:$0xff] %v7040_v9  ;;  %8648 = vst [vmem:[#allocation170_spill] sm:$0xff] %v7045_v16  ;;  %4971 = vmatprep.mubr.msk.bf16.mxu1 %vm708_vm11, %v8649_v17  ;;  %v7065_v4 = vld [vmem:[#allocation2 + $0xd9] sm:$0xff]  ;;  %v7067_v29 = vld [vmem:[#allocation2 + $0xe1] sm:$0xff]  ;;  %v7086_v26 = vsel %vm1743_vm7, %v7027_v36, 0.0  ;;  %v8658_v17 = vpack.c.bf16 %v6345_v35, %v6372_v0  ;;  %v7104_v9 = vsel %vm1741_vm9, %v7027_v36, 0.0 }
 0x14c   : > { %vm8650_vm15 = vmmov %vm8643_vm3  ;;  %vm8652_vm3 = vcmp.eq.s32.totalorder %v8608_v21, 1  ;;  %8654 = vst [vmem:[#allocation172_spill] sm:$0xff] %v7076_v8  ;;  %v7088_v49 = vld [vmem:[#allocation2 + $0xe9] sm:$0xff]  ;;  %v7109_v16 = vsel %vm1742_vm4, %v7047_v10, 0.0  ;;  %v7111_v35 = vld [vmem:[#allocation2 + $0xf1] sm:$0xff]  ;;  %v7125_v8 = vsel %vm1744_vm14, %v7067_v29, 0.0 }
 0x14d   : > { %v7058_v37 = vsel %vm8650_vm15, %v7008_v5, 0.0  ;;  %v7063_v42 = vsel %vm8652_vm3, %v7010_v38, 0.0  ;;  %8655 = vst [vmem:[#allocation173_spill] sm:$0xff] %v7081_v56  ;;  %8656 = vst [vmem:[#allocation174_spill] sm:$0xff] %v7086_v26  ;;  %4869 = vmatprep.mubr.msk.bf16.mxu0 %vm708_vm11, %v8658_v17  ;;  %v7127_v56 = vld [vmem:[#allocation2 + $0xf9] sm:$0xff]  ;;  %v7129_v32 = vld [vmem:[#allocation2 + $0x101] sm:$0xff] }
 0x14e   : > { %8651 = vst [vmem:[#allocation49_spill] sm:$0xff] %v7058_v37  ;;  %8653 = vst [vmem:[#allocation171_spill] sm:$0xff] %v7063_v42  ;;  %v7099_v42 = vsel %vm1744_vm14, %v7047_v10, 0.0  ;;  %v7120_v37 = vsel %vm1743_vm7, %v7065_v4, 0.0  ;;  %v7136_v17 = vsel %vm1745_vm5, %v7065_v4, 0.0  ;;  %v7141_v26 = vsel %vm1746_vm0, %v7067_v29, 0.0 }
 0x14f   : > { %8657 = vst [vmem:[#allocation175_spill] sm:$0xff] %v7088_v49  ;;  %8659 = vst [vmem:[#allocation176_spill] sm:$0xff] %v7099_v42  ;;  %v7146_v42 = vsel %vm8429_vm6, %v7088_v49, 0.0  ;;  %v7153_v0 = vsel %vm8423_vm13, %v7111_v35, 0.0  ;;  %v7177_v52 = vsel %vm8429_vm6, %v7127_v56, 0.0  ;;  %v7182_v27 = vsel %vm8423_vm13, %v7129_v32, 0.0 }
 0x150   : > { %8660 = vst [vmem:[#allocation177_spill] sm:$0xff] %v7104_v9  ;;  %8661 = vst [vmem:[#allocation178_spill] sm:$0xff] %v7109_v16  ;;  %v2998_v16 = vld [vmem:[#allocation2 + $0x5f] sm:$0xff]  ;;  %v7168_v9 = vld [vmem:[%s8177_s4 + $0xc] sm:$0x3]  ;;  %vm8676_vm15 = vcmp.eq.s32.totalorder %v6219_v7, 1 }
 0x151   : > { %8662 = vst [vmem:[#allocation179_spill] sm:$0xff] %v7111_v35  ;;  %8663 = vst [vmem:[#allocation180_spill] sm:$0xff] %v7120_v37  ;;  %v7158_v37 = vsel %vm1745_vm5, %v7088_v49, 0.0  ;;  %v3002_v25 = vld [vmem:[#allocation2 + $0x7f] sm:$0xff]  ;;  %vm8679_vm3 = vcmask 1041408   ;;  %v7459_v28 = vsel %vm1737_vm10, %v7008_v5, 0.0 }
 0x152   : > { %8664 = vst [vmem:[#allocation181_spill] sm:$0xff] %v7125_v8  ;;  %8665 = vst [vmem:[#allocation182_spill] sm:$0xff] %v7127_v56  ;;  %v7163_v8 = vsel %vm1746_vm0, %v7111_v35, 0.0  ;;  %v1069_v35 = vpack.c.bf16 %v6431_v14, %v6626_v50  ;;  %v8675_v20 = vld [vmem:[#allocation52_spill] sm:$0xff]  ;;  %v8684_v56 = vld [vmem:[#allocation53_spill] sm:$0xff]  ;;  %vm8783_vm10 = vcmp.eq.s32.totalorder %v8608_v21, 1 }
 0x153   : > { %8666 = vst [vmem:[#allocation183_spill] sm:$0xff] %v7129_v32  ;;  %8667 = vst [vmem:[#allocation184_spill] sm:$0xff] %v7136_v17  ;;  %v1041_v17 = vsel %vm8676_vm15, %v8675_v20, 0.0  ;;  %v8681_v6 = vld [vmem:[#allocation48_spill] sm:$0xff]  ;;  %v8683_v32 = vld [vmem:[#allocation55_spill] sm:$0xff]  ;;  %vm8685_vm6 = vcmp.eq.s32.totalorder %v8684_v56, 1 }
 0x154   : > { %8668 = vst [vmem:[#allocation185_spill] sm:$0xff] %v7141_v26  ;;  %8669 = vst [vmem:[#allocation186_spill] sm:$0xff] %v7146_v42  ;;  %v8677_v42 = vld [vmem:[#allocation50_spill] sm:$0xff]  ;;  %v8678_v26 = vld [vmem:[#allocation51_spill] sm:$0xff]  ;;  %vm8682_vm13 = vcmp.eq.s32.totalorder %v8681_v6, 1  ;;  %v1044_v14 = vsel %vm8685_vm6, %v8683_v32, 0.0 }
 0x155   : > { %8670 = vst [vmem:[#allocation187_spill] sm:$0xff] %v7153_v0  ;;  %8671 = vst [vmem:[#allocation188_spill] sm:$0xff] %v7158_v37  ;;  %4972 = vmatmul.mubr.msk.bf16.vlgmr.msra.gmra.mrb[16].mxu1 %vm708_vm11, %v8677_v42  ;;  %v1850_v0 = vsel %vm8679_vm3, %v8678_v26, 0  ;;  %v8686_v50 = vld [vmem:[#allocation60_spill] sm:$0xff]  ;;  %v8687_v7 = vld [vmem:[#allocation57_spill] sm:$0xff]  ;;  %v7483_v45 = vsel %vm8783_vm10, %v7047_v10, 0.0 }
 0x156   : > { %8672 = vst [vmem:[#allocation189_spill] sm:$0xff] %v7163_v8  ;;  %8673 = vst [vmem:[#allocation190_spill] sm:$0xff] %v7177_v52  ;;  %v8680_v8 = vld [vmem:[#allocation58_spill] sm:$0xff]  ;;  %vm8688_vm15 = vcmp.eq.s32.totalorder %v8687_v7, 1  ;;  %v8689_v49 = vld [vmem:[#allocation84_spill] sm:$0xff] }
 0x157   : > { %8674 = vst [vmem:[#allocation191_spill] sm:$0xff] %v7182_v27  ;;  %v1042_v34 = vsel %vm8682_vm13, %v8680_v8, 0.0  ;;  %v1043_v20 = vsel %vm8688_vm15, %v8686_v50, 0.0  ;;  %5004 = vmatpush3.bf16.msra.mxu1 %v8689_v49  ;;  %v8690_v42 = vld [vmem:[#allocation67_spill] sm:$0xff]  ;;  %vm8691_vm3 = vmmov %vm8682_vm13  ;;  %v8692_v37 = vld [vmem:[#allocation73_spill] sm:$0xff]  ;;  %v8698_v49 = vpack.c.bf16 %v6426_v12, %v6418_v41  ;;  %vm8699_vm15 = vcmask 1041408  }
 0x158   : > { %4975 = vmatprep.mubr.msk.bf16.mxu1 %vm708_vm11, %v8690_v42  ;;  %v7209_v26 = vsel %vm8691_vm3, %v2998_v16, 0.0  ;;  %v8693_v52 = vld [vmem:[#allocation65_spill] sm:$0xff]  ;;  %v8695_v56 = vld [vmem:[#allocation71_spill] sm:$0xff]  ;;  %5438 = vmatprep.subr.msk.bf16.mxu1 %vm8699_vm15, %v7168_v9  ;;  %v8700_v6 = vld [vmem:[#allocation70_spill] sm:$0xff] }
 0x159   : > { %vm8694_vm13 = vcmp.eq.s32.totalorder %v8693_v52, 1  ;;  %v8696_v32 = vld [vmem:[#allocation77_spill] sm:$0xff]  ;;  %4870 = vmatmul.mubr.msk.bf16.vlgmr.msra.gmra.mrb[32].mxu0 %vm708_vm11, %v8698_v49  ;;  %v8702_v50 = vld [vmem:[#allocation91_spill] sm:$0xff] }
 0x15a   : > { %v7214_v8 = vsel %vm8694_vm13, %v8692_v37, 0.0  ;;  %vm8697_vm6 = vcmp.eq.s32.totalorder %v8696_v32, 1  ;;  %vm8701_vm3 = vmmov %vm8694_vm13  ;;  %4873 = vmatprep.mubr.msk.bf16.mxu0 %vm708_vm11, %v1069_v35  ;;  %4902 = vmatpush3.bf16.msra.mxu0 %v1850_v0  ;;  %vm8703_vm13 = vcmp.eq.s32.totalorder %v6018_v57, 1  ;;  %v8705_v52 = vld [vmem:[#allocation3_spill] sm:$0xff]  ;;  %v8708_v0 = vld [vmem:[#allocation81_spill] sm:$0xff] }
 0x15b   : > { %v7219_v27 = vsel %vm8697_vm6, %v8695_v56, 0.0  ;;  %v7231_v37 = vsel %vm8701_vm3, %v3002_v25, 0.0  ;;  %v7239_v41 = vsel %vm8703_vm13, %v6569_v30, 0.0  ;;  %vm8704_vm6 = vcmp.eq.s32.totalorder %v6022_v59, 1  ;;  %v8707_v35 = vld [vmem:[#allocation75_spill] sm:$0xff]  ;;  %v8801_v48 = vld [vmem:[#allocation37_spill] sm:$0xff] }
 0x15c   : > { %v7244_v12 = vsel %vm8704_vm6, %v6551_v40, 0.0  ;;  %vm8706_vm15 = vcmp.eq.s32.totalorder %v8705_v52, 1  ;;  %vm8709_vm3 = vcmp.eq.s32.totalorder %v8708_v0, 1  ;;  %v5487_v57 = vld [vmem:[%s8177_s4 + $0x6] sm:$0x3]  ;;  %vm8710_vm13 = vcmask 1041408  }
 0x15d   : > { %v7249_v25 = vsel %vm8706_vm15, %v6637_v53, 0.0  ;;  %v7254_v42 = vsel %vm8709_vm3, %v8707_v35, 0.0  ;;  %5434 = vmatprep.subr.msk.bf16.mxu0 %vm8710_vm13, %v5487_v57  ;;  %vm8711_vm6 = vcmp.eq.s32.totalorder %v6020_v58, 1  ;;  %vm8712_vm15 = vcmp.eq.s32.totalorder %v6026_v61, 1  ;;  %v8726_v52 = vld [vmem:[#allocation69_spill] sm:$0xff]  ;;  %v8727_v0 = vld [vmem:[#allocation155_spill] sm:$0xff] }
 0x15e   : > { %v7265_v30 = vsel %vm8711_vm6, %v6677_v33, 0.0  ;;  %v7270_v40 = vsel %vm8712_vm15, %v6679_v19, 0.0  ;;  %vm8713_vm3 = vcmp.eq.s32.totalorder %v6024_v60, 1  ;;  %vm8714_vm13 = vcmp.eq.s32.totalorder %v6030_v63, 1  ;;  %v8719_v33 = vld [vmem:[#allocation6_spill] sm:$0xff]  ;;  %4976 = vmatmul.mubr.msk.bf16.gmra.mrb[20].mxu1 %vm708_vm11, %v8726_v52  ;;  %v8735_v35 = vld [vmem:[#allocation83_spill] sm:$0xff] }
 0x15f   : > { %v7277_v56 = vsel %vm8713_vm3, %v6659_v51, 0.0  ;;  %v7282_v32 = vsel %vm8714_vm13, %v6760_v13, 0.0  ;;  %vm8715_vm6 = vcmp.eq.s32.totalorder %v6028_v62, 1  ;;  %vm8716_vm15 = vcmp.eq.s32.totalorder %v6038_v3, 1  ;;  %v8718_v51 = vld [vmem:[#allocation31_spill] sm:$0xff]  ;;  %v8721_v13 = vld [vmem:[#allocation5_spill] sm:$0xff] }
 0x160   : > { %v7287_v58 = vsel %vm8715_vm6, %v6795_v46, 0.0  ;;  %v7296_v60 = vsel %vm8716_vm15, %v6797_v23, 0.0  ;;  %vm8717_vm3 = vcmp.eq.s32.totalorder %v6036_v1, 1  ;;  %vm8720_vm13 = vcmp.eq.s32.totalorder %v8719_v33, 1  ;;  %v8723_v3 = vld [vmem:[#allocation8_spill] sm:$0xff]  ;;  %v8749_v62 = vld [vmem:[#allocation129_spill] sm:$0xff] }
 0x161   : > { %v7301_v63 = vsel %vm8717_vm3, %v6781_v11, 0.0  ;;  %v7308_v46 = vsel %vm8720_vm13, %v8718_v51, 0.0  ;;  %vm8722_vm6 = vcmp.eq.s32.totalorder %v8721_v13, 1  ;;  %vm8724_vm15 = vcmp.eq.s32.totalorder %v8723_v3, 1  ;;  %v8725_v1 = vld [vmem:[#allocation12_spill] sm:$0xff]  ;;  %v8730_v13 = vld [vmem:[#allocation66_spill] sm:$0xff] }
 0x162   : > { %v7313_v49 = vsel %vm8722_vm6, %v6946_v22, 0.0  ;;  %v7318_v23 = vsel %vm8724_vm15, %v6948_v47, 0.0  ;;  %vm1719_vm3 = vcmp.eq.s32.totalorder %v8725_v1, 1  ;;  %v1070_v11 = vpack.c.bf16 %v1042_v34, %v1041_v17  ;;  %v8729_v33 = vld [vmem:[#allocation68_spill] sm:$0xff]  ;;  %v8732_v3 = vld [vmem:[#allocation82_spill] sm:$0xff]  ;;  %v8733_v17 = vld [vmem:[#allocation11_spill] sm:$0xff] }
 0x163   : > { %v7328_v51 = vsel %vm1032_vm2, %v8727_v0, 0.0  ;;  %v1071_v22 = vpack.c.bf16 %v1044_v14, %v1043_v20  ;;  %vm8731_vm13 = vcmp.eq.s32.totalorder %v8730_v13, 1  ;;  %4979 = vmatprep.mubr.msk.bf16.mxu1 %vm708_vm11, %v8732_v3  ;;  %vm8433_vm6 = vcmp.eq.s32.totalorder %v8733_v17, 1  ;;  %v8734_v0 = vld [vmem:[#allocation92_spill] sm:$0xff]  ;;  %v8737_v20 = vld [vmem:[#allocation90_spill] sm:$0xff]  ;;  %v8743_v3 = vld [vmem:[#allocation13_spill] sm:$0xff] }
 0x164   : > { %v1045_v47 = vsel %vm8731_vm13, %v8729_v33, 0.0  ;;  %v1073_v57 = vpack.c.bf16 %v7219_v27, %v7254_v42  ;;  %vm8736_vm2 = vcmp.eq.s32.totalorder %v8735_v35, 1  ;;  %4874 = vmatmul.mubr.msk.bf16.gmra.mrb[36].mxu0 %vm708_vm11, %v1070_v11  ;;  %v7349_v33 = vsel %vm1719_vm3, %v8737_v20, 0.0  ;;  %v8738_v13 = vld [vmem:[#allocation102_spill] sm:$0xff]  ;;  %v8746_v34 = vld [vmem:[#allocation16_spill] sm:$0xff]  ;;  %v8756_v61 = vld [vmem:[#allocation135_spill] sm:$0xff] }
 0x165   : > { %v1072_v52 = vpack.c.bf16 %v7214_v8, %v1045_v47  ;;  %v1050_v14 = vsel %vm8736_vm2, %v8734_v0, 0.0  ;;  %4877 = vmatprep.mubr.msk.bf16.mxu0 %vm708_vm11, %v1071_v22  ;;  %v7354_v8 = vsel %vm8433_vm6, %v8738_v13, 0.0  ;;  %v8739_v47 = vld [vmem:[#allocation114_spill] sm:$0xff]  ;;  %vm8744_vm13 = vcmp.eq.s32.totalorder %v8743_v3, 1  ;;  %v8752_v3 = vld [vmem:[#allocation133_spill] sm:$0xff]  ;;  %v8813_v15 = vld [vmem:[#allocation127_spill] sm:$0xff] }
 0x166   : > { %v8740_v27 = vld [vmem:[#allocation14_spill] sm:$0xff]  ;;  %vm8747_vm2 = vcmp.eq.s32.totalorder %v8746_v34, 1  ;;  %v8757_v0 = vld [vmem:[#allocation17_spill] sm:$0xff]  ;;  %v8759_v34 = vld [vmem:[#allocation144_spill] sm:$0xff] }
 0x167   : > { %vm8741_vm15 = vcmp.eq.s32.totalorder %v8740_v27, 1  ;;  %v8742_v35 = vld [vmem:[#allocation118_spill] sm:$0xff]  ;;  %v8750_v27 = vld [vmem:[#allocation15_spill] sm:$0xff]  ;;  %vm8758_vm6 = vcmp.eq.s32.totalorder %v8757_v0, 1  ;;  %v8769_v0 = vld [vmem:[#allocation21_spill] sm:$0xff] }
 0x168   : > { %v7359_v42 = vsel %vm8741_vm15, %v8739_v47, 0.0  ;;  %v7364_v11 = vsel %vm8744_vm13, %v8742_v35, 0.0  ;;  %v8745_v20 = vld [vmem:[#allocation122_spill] sm:$0xff]  ;;  %vm8751_vm15 = vcmp.eq.s32.totalorder %v8750_v27, 1  ;;  %v7390_v53 = vsel %vm8758_vm6, %v8756_v61, 0.0  ;;  %v8762_v27 = vld [vmem:[#allocation145_spill] sm:$0xff] }
 0x169   : > { %v7373_v13 = vsel %vm8747_vm2, %v8745_v20, 0.0  ;;  %v7378_v47 = vsel %vm8751_vm15, %v8749_v62, 0.0  ;;  %v8753_v19 = vld [vmem:[#allocation18_spill] sm:$0xff]  ;;  %v8760_v20 = vld [vmem:[#allocation20_spill] sm:$0xff]  ;;  %v8763_v35 = vld [vmem:[#allocation19_spill] sm:$0xff]  ;;  %vm8770_vm6 = vcmp.eq.s32.totalorder %v8769_v0, 1 }
 0x16a   : > { %8748 = vst [vmem:[#allocation52_spill] sm:$0xff] %v7373_v13  ;;  %vm8754_vm13 = vcmp.eq.s32.totalorder %v8753_v19, 1  ;;  %vm8761_vm2 = vcmp.eq.s32.totalorder %v8760_v20, 1  ;;  %vm8764_vm15 = vcmp.eq.s32.totalorder %v8763_v35, 1  ;;  %v8765_v19 = vld [vmem:[#allocation146_spill] sm:$0xff]  ;;  %v8768_v61 = vld [vmem:[#allocation147_spill] sm:$0xff] }
 0x16b   : > { %v7385_v22 = vsel %vm8754_vm13, %v8752_v3, 0.0  ;;  %v7395_v59 = vsel %vm8761_vm2, %v8759_v34, 0.0  ;;  %v7402_v7 = vsel %vm8764_vm15, %v8762_v27, 0.0  ;;  %v8766_v3 = vld [vmem:[#allocation22_spill] sm:$0xff]  ;;  %v7412_v13 = vsel %vm8770_vm6, %v8768_v61, 0.0  ;;  %v8772_v35 = vld [vmem:[#allocation24_spill] sm:$0xff] }
 0x16c   : > { %8755 = vst [vmem:[#allocation50_spill] sm:$0xff] %v7385_v22  ;;  %vm8767_vm13 = vcmp.eq.s32.totalorder %v8766_v3, 1  ;;  %v8771_v62 = vld [vmem:[#allocation150_spill] sm:$0xff]  ;;  %vm8773_vm2 = vcmp.eq.s32.totalorder %v8772_v35, 1  ;;  %v8774_v3 = vld [vmem:[#allocation23_spill] sm:$0xff]  ;;  %v8777_v0 = vld [vmem:[#allocation25_spill] sm:$0xff]  ;;  %4878 = vmatmul.mubr.msk.bf16.gmra.mrb[40].mxu0 %vm708_vm11, %v1072_v52 }
 0x16d   : > { %v7407_v16 = vsel %vm8767_vm13, %v8765_v19, 0.0  ;;  %v7421_v27 = vsel %vm8773_vm2, %v8771_v62, 0.0  ;;  %vm8775_vm15 = vcmp.eq.s32.totalorder %v8774_v3, 1  ;;  %v8776_v22 = vld [vmem:[#allocation86_spill] sm:$0xff]  ;;  %vm8778_vm13 = vcmp.eq.s32.totalorder %v8777_v0, 1  ;;  %v8780_v35 = vld [vmem:[#allocation101_spill] sm:$0xff]  ;;  %4881 = vmatprep.mubr.msk.bf16.mxu0 %vm708_vm11, %v1073_v57 }
 0x16e   : > { %v7426_v19 = vsel %vm8775_vm15, %v6897_v18, 0.0  ;;  %4980 = vmatmul.mubr.msk.bf16.gmra.mrb[24].mxu1 %vm708_vm11, %v8776_v22  ;;  %v7435_v20 = vsel %vm8778_vm13, %v6918_v24, 0.0  ;;  %v7440_v62 = vsel %vm1734_vm12, %v6940_v44, 0.0  ;;  %vm8779_vm6 = vcmp.eq.s32.totalorder %v6104_v31, 1  ;;  %v7469_v44 = vld [vmem:[#allocation2 + $0x111] sm:$0xff]  ;;  %v8798_v3 = vld [vmem:[#allocation38_spill] sm:$0xff] }
 0x16f   : > { %v7445_v18 = vsel %vm8779_vm6, %v6979_v43, 0.0  ;;  %4983 = vmatprep.mubr.msk.bf16.mxu1 %vm708_vm11, %v8780_v35  ;;  %v7454_v24 = vsel %vm1736_vm8, %v6986_v39, 0.0  ;;  %v7464_v31 = vsel %vm1738_vm1, %v7010_v38, 0.0  ;;  %v7467_v43 = vld [vmem:[#allocation2 + $0x109] sm:$0xff]  ;;  %vm8781_vm8 = vcmp.eq.s32.totalorder %v8603_v54, 1  ;;  %v8804_v39 = vld [vmem:[#allocation89_spill] sm:$0xff] }
 0x170   : > { %v7478_v2 = vsel %vm8781_vm8, %v7027_v36, 0.0  ;;  %v7491_v38 = vsel %vm1741_vm9, %v7065_v4, 0.0  ;;  %v7496_v54 = vsel %vm1742_vm4, %v7067_v29, 0.0  ;;  %v8786_v36 = vld [vmem:[#allocation175_spill] sm:$0xff]  ;;  %v8792_v4 = vld [vmem:[#allocation182_spill] sm:$0xff]  ;;  %v8805_v55 = vld [vmem:[#allocation85_spill] sm:$0xff] }
 0x171   : > { %8782 = vst [vmem:[#allocation51_spill] sm:$0xff] %v7478_v2  ;;  %8784 = vst [vmem:[#allocation58_spill] sm:$0xff] %v7491_v38  ;;  %v7501_v21 = vsel %vm1743_vm7, %v8786_v36, 0.0  ;;  %v8789_v57 = vld [vmem:[#allocation179_spill] sm:$0xff]  ;;  %v7513_v35 = vsel %vm1745_vm5, %v8792_v4, 0.0  ;;  %vm8799_vm7 = vcmp.eq.s32.totalorder %v8798_v3, 1 }
 0x172   : > { %8785 = vst [vmem:[#allocation48_spill] sm:$0xff] %v7496_v54  ;;  %8788 = vst [vmem:[#allocation55_spill] sm:$0xff] %v7501_v21  ;;  %v7508_v0 = vsel %vm1744_vm14, %v8789_v57, 0.0  ;;  %v8795_v29 = vld [vmem:[#allocation183_spill] sm:$0xff]  ;;  %v7527_v57 = vsel %vm8799_vm7, %v7467_v43, 0.0  ;;  %vm8802_vm5 = vcmp.eq.s32.totalorder %v8801_v48, 1 }
 0x173   : > { %8791 = vst [vmem:[#allocation53_spill] sm:$0xff] %v7508_v0  ;;  %8794 = vst [vmem:[#allocation60_spill] sm:$0xff] %v7513_v35  ;;  %v7518_v5 = vsel %vm1746_vm0, %v8795_v29, 0.0  ;;  %v7532_v10 = vsel %vm8802_vm5, %v7469_v44, 0.0  ;;  %vm8806_vm9 = vcmp.eq.s32.totalorder %v8805_v55, 1  ;;  %v8807_v61 = vld [vmem:[#allocation106_spill] sm:$0xff] }
 0x174   : > { %8797 = vst [vmem:[#allocation57_spill] sm:$0xff] %v7518_v5  ;;  %8800 = vst [vmem:[#allocation84_spill] sm:$0xff] %v7527_v57  ;;  %v1049_v36 = vsel %vm8806_vm9, %v8804_v39, 0.0  ;;  %v8808_v52 = vld [vmem:[#allocation113_spill] sm:$0xff]  ;;  %v8809_v3 = vld [vmem:[#allocation104_spill] sm:$0xff]  ;;  %vm8838_vm12 = vcmp.eq.s32.totalorder %v8733_v17, 1 }
 0x175   : > { %8803 = vst [vmem:[#allocation67_spill] sm:$0xff] %v7532_v10  ;;  %v1074_v22 = vpack.c.bf16 %v1050_v14, %v1049_v36  ;;  %v8810_v48 = vld [vmem:[#allocation103_spill] sm:$0xff]  ;;  %v8815_v55 = vld [vmem:[#allocation109_spill] sm:$0xff]  ;;  %v8818_v36 = vld [vmem:[#allocation116_spill] sm:$0xff]  ;;  %vm8843_vm4 = vcmask 1041408  }
 0x176   : > { %4984 = vmatmul.mubr.msk.bf16.gmra.mrb[28].mxu1 %vm708_vm11, %v8807_v61  ;;  %v8811_v34 = vpack.c.bf16 %v8809_v3, %v8810_v48  ;;  %v8812_v35 = vld [vmem:[#allocation119_spill] sm:$0xff]  ;;  %v8825_v57 = vld [vmem:[#allocation125_spill] sm:$0xff]  ;;  %v8837_v0 = vld [vmem:[#allocation88_spill] sm:$0xff]  ;;  %v3122_v1 = vsel %vm8843_vm4, %v7168_v9, 0 }
 0x177   : > { %4987 = vmatprep.mubr.msk.bf16.mxu1 %vm708_vm11, %v8808_v52  ;;  %4882 = vmatmul.mubr.msk.bf16.gmra.mrb[44].mxu0 %vm708_vm11, %v1074_v22  ;;  %v8814_v14 = vld [vmem:[#allocation115_spill] sm:$0xff]  ;;  %v8820_v22 = vld [vmem:[#allocation124_spill] sm:$0xff]  ;;  %v2698_v38 = vsel %vm8838_vm12, %v8837_v0, 0.0  ;;  %v2401_v54 = vld [vmem:[#allocation2 + $0x108] sm:$0xff] }
 0x178   : > { %4885 = vmatprep.mubr.msk.bf16.mxu0 %vm708_vm11, %v8811_v34  ;;  %v8816_v39 = vpack.c.bf16 %v8814_v14, %v8815_v55  ;;  %v8817_v61 = vld [vmem:[#allocation111_spill] sm:$0xff]  ;;  %v8821_v34 = vld [vmem:[#allocation142_spill] sm:$0xff]  ;;  %vm8839_vm1 = vmmov %vm8838_vm12 }
 0x179   : > { %v8819_v52 = vpack.c.bf16 %v8817_v61, %v8818_v36  ;;  %v8823_v3 = vld [vmem:[#allocation123_spill] sm:$0xff]  ;;  %v8826_v14 = vld [vmem:[#allocation130_spill] sm:$0xff]  ;;  %v8829_v61 = vld [vmem:[#allocation160_spill] sm:$0xff] }
 0x17a   : > { %v8827_v55 = vpack.c.bf16 %v8825_v57, %v8826_v14  ;;  %v8830_v36 = vld [vmem:[#allocation143_spill] sm:$0xff]  ;;  %v4556_v17 = vld [vmem:[%s8177_s4 + $0xe] sm:$0x3]  ;;  %v8848_v0 = vld [vmem:[#allocation120_spill] sm:$0xff] }
 0x17b   : > { %v1559_v5 = vld [vmem:[#allocation2 + $0x9] sm:$0xff]  ;;  %v1560_v57 = vld [vmem:[#allocation2 + $0x11] sm:$0xff]  ;;  %vm8853_vm14 = vmmov %vm8843_vm4 }
 0x17c   : > { %v2402_v14 = vld [vmem:[#allocation2 + $0x110] sm:$0xff]  ;;  %vm8941_vm15 = vmmov %vm8843_vm4 }
 0x17d   : > { %v8854_v9 = vld [vmem:[#allocation107_spill] sm:$0xff]  ;;  %vm8948_vm13 = vmmov %vm8843_vm4 }
 0x17e   : > { %4988 = vmatmul.mubr.msk.bf16.gmra.mrb[0].mxu1 %vm708_vm11, %v8812_v35  ;;  %v8822_v35 = vld [vmem:[#allocation128_spill] sm:$0xff]  ;;  %vm8989_vm10 = vmmov %vm8843_vm4 }
 0x17f   : > { %4991 = vmatprep.mubr.msk.bf16.mxu1 %vm708_vm11, %v8813_v15  ;;  %4886 = vmatmul.mubr.msk.bf16.gmra.mrb[48].mxu0 %vm708_vm11, %v8816_v39  ;;  %v8824_v48 = vpack.c.bf16 %v8822_v35, %v8823_v3  ;;  %v8828_v39 = vld [vmem:[#allocation139_spill] sm:$0xff]  ;;  %v8833_v35 = vld [vmem:[#allocation140_spill] sm:$0xff]  ;;  %vm8990_vm7 = vmmov %vm8843_vm4 }
 0x180   : > { %4889 = vmatprep.mubr.msk.bf16.mxu0 %vm708_vm11, %v8819_v52  ;;  %v8831_v52 = vld [vmem:[#allocation138_spill] sm:$0xff]  ;;  %v8834_v3 = vld [vmem:[#allocation28_spill] sm:$0xff]  ;;  %vm8991_vm5 = vmmov %vm8843_vm4 }
 0x181   : > { %v8832_v10 = vpack.c.bf16 %v8830_v36, %v8831_v52  ;;  %v1752_v36 = vsel %vm8839_vm1, %v1560_v57, 0.0  ;;  %v7594_v52 = vpack.c.bf16 %v2402_v14, %v2401_v54  ;;  %v8851_v14 = vld [vmem:[#allocation98_spill] sm:$0xff] }
 0x186   : > { %4992 = vmatmul.mubr.msk.bf16.gmra.mrb[4].mxu1 %vm708_vm11, %v8820_v22 }
 0x187   : > { %4995 = vmatprep.mubr.msk.bf16.mxu1 %vm708_vm11, %v8821_v34  ;;  %4890 = vmatmul.mubr.msk.bf16.gmra.mrb[52].mxu0 %vm708_vm11, %v8824_v48  ;;  %v8835_v48 = vpack.c.bf16 %v8833_v35, %v8834_v3 }
 0x188   : > { %4893 = vmatprep.mubr.msk.bf16.mxu0 %vm708_vm11, %v8827_v55  ;;  %v8836_v55 = vld [vmem:[#allocation87_spill] sm:$0xff] }
 0x189   : > { %v2697_v21 = vsel %vm1719_vm3, %v8836_v55, 0.0  ;;  %v8841_v55 = vld [vmem:[#allocation156_spill] sm:$0xff] }
 0x18a   : > { %v2729_v35 = vpack.c.bf16 %v2698_v38, %v2697_v21  ;;  %v8845_v38 = vld [vmem:[#allocation110_spill] sm:$0xff]  ;;  %v8847_v21 = vld [vmem:[#allocation121_spill] sm:$0xff] }
 0x18b   : > { %v8849_v57 = vpack.c.bf16 %v8847_v21, %v8848_v0  ;;  %v8864_v21 = vld [vmem:[#allocation131_spill] sm:$0xff]  ;;  %v8865_v0 = vld [vmem:[#allocation126_spill] sm:$0xff] }
 0x18e   : > { %4996 = vmatmul.mubr.msk.bf16.gmra.mrb[8].mxu1 %vm708_vm11, %v8828_v39 }
 0x18f   : > { %4999 = vmatprep.mubr.msk.bf16.mxu1 %vm708_vm11, %v8829_v61  ;;  %4894 = vmatmul.mubr.msk.bf16.gmra.mrb[56].mxu0 %vm708_vm11, %v8832_v10  ;;  %v1751_v10 = vsel %vm1719_vm3, %v1559_v5, 0.0  ;;  %v8844_v5 = vld [vmem:[#allocation117_spill] sm:$0xff] }
 0x190   : > { %4897 = vmatprep.mubr.msk.bf16.mxu0 %vm708_vm11, %v8835_v48  ;;  %v1783_v3 = vpack.c.bf16 %v1752_v36, %v1751_v10  ;;  %v8840_v48 = vld [vmem:[#allocation161_spill] sm:$0xff]  ;;  %v8846_v54 = vpack.c.bf16 %v8844_v5, %v8845_v38 }
 0x191   : > { %v8842_v2 = vpack.c.bf16 %v8840_v48, %v8841_v55  ;;  %v8855_v36 = vld [vmem:[#allocation105_spill] sm:$0xff]  ;;  %v8858_v48 = vld [vmem:[#allocation136_spill] sm:$0xff]  ;;  %v8859_v55 = vld [vmem:[#allocation134_spill] sm:$0xff] }
 0x192   : > { %v8861_v5 = vld [vmem:[#allocation141_spill] sm:$0xff] }
 0x193   : > { %v8862_v38 = vld [vmem:[#allocation137_spill] sm:$0xff] }
 0x196   : > { %5000 = vmatmul.mubr.msk.bf16.gmra.mrb[12].mxu1 %vm708_vm11, %v7594_v52 }
 0x197   : > { %5005 = vmatprep.mubr.msk.bf16.mxu1 %vm708_vm11, %v2729_v35  ;;  %4898 = vmatmul.mubr.msk.bf16.gmra.mrb[60].mxu0 %vm708_vm11, %v8842_v2  ;;  %v8850_v2 = vld [vmem:[#allocation100_spill] sm:$0xff]  ;;  %v8856_v35 = vpack.c.bf16 %v8854_v9, %v8855_v36  ;;  %v8870_v9 = vld [vmem:[#allocation151_spill] sm:$0xff]  ;;  %v8871_v36 = vld [vmem:[#allocation149_spill] sm:$0xff] }
 0x198   : > { %4903 = vmatprep.mubr.msk.bf16.mxu0 %vm708_vm11, %v1783_v3  ;;  %v8852_v10 = vpack.c.bf16 %v8850_v2, %v8851_v14  ;;  %v8857_v3 = vld [vmem:[#allocation4_spill] sm:$0xff]  ;;  %v8867_v2 = vld [vmem:[#allocation26_spill] sm:$0xff] }
 0x199   : > { %v8868_v14 = vld [vmem:[#allocation132_spill] sm:$0xff] }
 0x19e   : > { %5006 = vmatmul.mubr.msk.bf16.vlgmr.msra.gmra.mrb[16].mxu1 %vm708_vm11, %v8846_v54  ;;  %v8863_v54 = vpack.c.bf16 %v8861_v5, %v8862_v38  ;;  %v8877_v5 = vld [vmem:[#allocation27_spill] sm:$0xff] }
 0x19f   : > { %5038 = vmatpush3.bf16.msra.mxu1 %v3122_v1  ;;  %5009 = vmatprep.mubr.msk.bf16.mxu1 %vm708_vm11, %v8849_v57  ;;  %v8860_v1 = vpack.c.bf16 %v8858_v48, %v8859_v55  ;;  %v8866_v57 = vpack.c.bf16 %v8864_v21, %v8865_v0  ;;  %v8874_v48 = vld [vmem:[#allocation152_spill] sm:$0xff]  ;;  %v8880_v21 = vld [vmem:[#allocation29_spill] sm:$0xff] }
 0x1a0   : > { %4904 = vmatmul.mubr.msk.bf16.vlgmr.msra.gmra.mrb[32].mxu0 %vm708_vm11, %v8852_v10  ;;  %5439 = vmatprep.subr.msk.bf16.mxu1 %vm8853_vm14, %v4556_v17  ;;  %v8869_v10 = vpack.c.bf16 %v8867_v2, %v8868_v14  ;;  %v8883_v2 = vld [vmem:[#allocation159_spill] sm:$0xff] }
 0x1a1   : > { %4907 = vmatprep.mubr.msk.bf16.mxu0 %vm708_vm11, %v8856_v35  ;;  %4936 = vmatpush3.bf16.msra.mxu0 %v8857_v3  ;;  %v8872_v35 = vpack.c.bf16 %v8870_v9, %v8871_v36  ;;  %v8873_v3 = vld [vmem:[#allocation153_spill] sm:$0xff]  ;;  %v8886_v9 = vld [vmem:[#allocation163_spill] sm:$0xff] }
 0x1a2   : > { %v8875_v55 = vpack.c.bf16 %v8873_v3, %v8874_v48  ;;  %v8889_v3 = vld [vmem:[#allocation32_spill] sm:$0xff] }
 0x1a6   : > { %5010 = vmatmul.mubr.msk.bf16.gmra.mrb[20].mxu1 %vm708_vm11, %v8860_v1  ;;  %v8876_v1 = vld [vmem:[#allocation30_spill] sm:$0xff] }
 0x1a7   : > { %5013 = vmatprep.mubr.msk.bf16.mxu1 %vm708_vm11, %v8863_v54  ;;  %v8878_v38 = vpack.c.bf16 %v8876_v1, %v8877_v5  ;;  %v8879_v54 = vld [vmem:[#allocation148_spill] sm:$0xff]  ;;  %v8892_v1 = vld [vmem:[#allocation157_spill] sm:$0xff] }
 0x1a8   : > { %4908 = vmatmul.mubr.msk.bf16.gmra.mrb[36].mxu0 %vm708_vm11, %v8866_v57  ;;  %v8881_v0 = vpack.c.bf16 %v8879_v54, %v8880_v21  ;;  %v8882_v57 = vld [vmem:[#allocation162_spill] sm:$0xff]  ;;  %v8895_v54 = vld [vmem:[#allocation169_spill] sm:$0xff] }
 0x1a9   : > { %4911 = vmatprep.mubr.msk.bf16.mxu0 %vm708_vm11, %v8869_v10  ;;  %v8884_v14 = vpack.c.bf16 %v8882_v57, %v8883_v2  ;;  %v8885_v10 = vld [vmem:[#allocation164_spill] sm:$0xff]  ;;  %v8898_v57 = vld [vmem:[#allocation49_spill] sm:$0xff] }
 0x1aa   : > { %v8887_v36 = vpack.c.bf16 %v8885_v10, %v8886_v9  ;;  %v8901_v10 = vld [vmem:[#allocation165_spill] sm:$0xff] }
 0x1ae   : > { %5014 = vmatmul.mubr.msk.bf16.gmra.mrb[24].mxu1 %vm708_vm11, %v8872_v35  ;;  %v8888_v35 = vld [vmem:[#allocation154_spill] sm:$0xff] }
 0x1af   : > { %5017 = vmatprep.mubr.msk.bf16.mxu1 %vm708_vm11, %v8875_v55  ;;  %v8890_v48 = vpack.c.bf16 %v8888_v35, %v8889_v3  ;;  %v8891_v55 = vld [vmem:[#allocation158_spill] sm:$0xff]  ;;  %v8904_v35 = vld [vmem:[#allocation167_spill] sm:$0xff] }
 0x1b0   : > { %4912 = vmatmul.mubr.msk.bf16.gmra.mrb[40].mxu0 %vm708_vm11, %v8878_v38  ;;  %v8893_v5 = vpack.c.bf16 %v8891_v55, %v8892_v1  ;;  %v8894_v38 = vld [vmem:[#allocation170_spill] sm:$0xff]  ;;  %v8907_v55 = vld [vmem:[#allocation177_spill] sm:$0xff] }
 0x1b1   : > { %4915 = vmatprep.mubr.msk.bf16.mxu0 %vm708_vm11, %v8881_v0  ;;  %v8896_v21 = vpack.c.bf16 %v8894_v38, %v8895_v54  ;;  %v8897_v0 = vld [vmem:[#allocation171_spill] sm:$0xff]  ;;  %v8910_v38 = vld [vmem:[#allocation180_spill] sm:$0xff] }
 0x1b2   : > { %v8899_v2 = vpack.c.bf16 %v8897_v0, %v8898_v57  ;;  %v8913_v0 = vld [vmem:[#allocation172_spill] sm:$0xff] }
 0x1b6   : > { %5018 = vmatmul.mubr.msk.bf16.gmra.mrb[28].mxu1 %vm708_vm11, %v8884_v14  ;;  %v8900_v14 = vld [vmem:[#allocation166_spill] sm:$0xff] }
 0x1b7   : > { %5021 = vmatprep.mubr.msk.bf16.mxu1 %vm708_vm11, %v8887_v36  ;;  %v8902_v9 = vpack.c.bf16 %v8900_v14, %v8901_v10  ;;  %v8903_v36 = vld [vmem:[#allocation168_spill] sm:$0xff]  ;;  %v8916_v14 = vld [vmem:[#allocation174_spill] sm:$0xff] }
 0x1b8   : > { %4916 = vmatmul.mubr.msk.bf16.gmra.mrb[44].mxu0 %vm708_vm11, %v8890_v48  ;;  %v8905_v3 = vpack.c.bf16 %v8903_v36, %v8904_v35  ;;  %v8906_v48 = vld [vmem:[#allocation178_spill] sm:$0xff]  ;;  %v8919_v36 = vld [vmem:[#allocation188_spill] sm:$0xff] }
 0x1b9   : > { %4919 = vmatprep.mubr.msk.bf16.mxu0 %vm708_vm11, %v8893_v5  ;;  %v8908_v1 = vpack.c.bf16 %v8906_v48, %v8907_v55  ;;  %v8909_v5 = vld [vmem:[#allocation181_spill] sm:$0xff]  ;;  %v8922_v48 = vld [vmem:[#allocation190_spill] sm:$0xff] }
 0x1ba   : > { %v8911_v54 = vpack.c.bf16 %v8909_v5, %v8910_v38  ;;  %v8925_v5 = vld [vmem:[#allocation40_spill] sm:$0xff]  ;;  %v8926_v38 = vld [vmem:[#allocation185_spill] sm:$0xff] }
 0x1bb   : > { %vm1749_vm3 = vcmp.eq.s32.totalorder %v8925_v5, 1 }
 0x1be   : > { %5022 = vmatmul.mubr.msk.bf16.gmra.mrb[0].mxu1 %vm708_vm11, %v8896_v21  ;;  %v8912_v21 = vld [vmem:[#allocation173_spill] sm:$0xff] }
 0x1bf   : > { %5025 = vmatprep.mubr.msk.bf16.mxu1 %vm708_vm11, %v8899_v2  ;;  %v8914_v57 = vpack.c.bf16 %v8912_v21, %v8913_v0  ;;  %v8915_v2 = vld [vmem:[#allocation176_spill] sm:$0xff]  ;;  %v8929_v0 = vld [vmem:[#allocation187_spill] sm:$0xff] }
 0x1c0   : > { %4920 = vmatmul.mubr.msk.bf16.gmra.mrb[48].mxu0 %vm708_vm11, %v8902_v9  ;;  %v8917_v10 = vpack.c.bf16 %v8915_v2, %v8916_v14  ;;  %v8918_v9 = vld [vmem:[#allocation189_spill] sm:$0xff]  ;;  %v2727_v14 = vsel %vm1749_vm3, %v7467_v43, 0.0 }
 0x1c1   : > { %4923 = vmatprep.mubr.msk.bf16.mxu0 %vm708_vm11, %v8905_v3  ;;  %v8920_v35 = vpack.c.bf16 %v8918_v9, %v8919_v36  ;;  %v8921_v3 = vld [vmem:[#allocation191_spill] sm:$0xff]  ;;  %v1781_v9 = vsel %vm1749_vm3, %v8792_v4, 0.0  ;;  %v8938_v4 = vld [vmem:[#allocation41_spill] sm:$0xff] }
 0x1c2   : > { %v8923_v55 = vpack.c.bf16 %v8921_v3, %v8922_v48  ;;  %v2994_v48 = vld [vmem:[#allocation2 + $0x3f] sm:$0xff]  ;;  %vm8939_vm2 = vcmp.eq.s32.totalorder %v8938_v4, 1 }
 0x1c3   : > { %v8956_v4 = vld [vmem:[#allocation61_spill] sm:$0xff] }
 0x1c6   : > { %5026 = vmatmul.mubr.msk.bf16.gmra.mrb[4].mxu1 %vm708_vm11, %v8908_v1  ;;  %v8924_v1 = vld [vmem:[#allocation39_spill] sm:$0xff] }
 0x1c7   : > { %5029 = vmatprep.mubr.msk.bf16.mxu1 %vm708_vm11, %v8911_v54  ;;  %vm1750_vm0 = vcmp.eq.s32.totalorder %v8924_v1, 1  ;;  %v8927_v54 = vld [vmem:[#allocation184_spill] sm:$0xff] }
 0x1c8   : > { %4924 = vmatmul.mubr.msk.bf16.gmra.mrb[52].mxu0 %vm708_vm11, %v8914_v57  ;;  %v8928_v21 = vpack.c.bf16 %v8926_v38, %v8927_v54  ;;  %v8930_v57 = vld [vmem:[#allocation186_spill] sm:$0xff]  ;;  %v1782_v36 = vsel %vm1750_vm0, %v8795_v29, 0.0  ;;  %v3026_v29 = vsel %vm8939_vm2, %v2994_v48, 0.0  ;;  %v8950_v48 = vld [vmem:[#allocation56_spill] sm:$0xff] }
 0x1c9   : > { %4927 = vmatprep.mubr.msk.bf16.mxu0 %vm708_vm11, %v8917_v10  ;;  %v8931_v2 = vpack.c.bf16 %v8929_v0, %v8930_v57  ;;  %v2728_v10 = vsel %vm1750_vm0, %v7469_v44, 0.0  ;;  %v1798_v3 = vpack.c.bf16 %v1782_v36, %v1781_v9  ;;  %v8933_v38 = vld [vmem:[#allocation46_spill] sm:$0xff]  ;;  %v8935_v44 = vld [vmem:[#allocation45_spill] sm:$0xff]  ;;  %v8943_v9 = vld [vmem:[#allocation63_spill] sm:$0xff] }
 0x1ca   : > { %v8936_v54 = vld [vmem:[#allocation42_spill] sm:$0xff] }
 0x1cb   : > { %v8940_v0 = vld [vmem:[#allocation54_spill] sm:$0xff] }
 0x1cc   : > { %v3056_v57 = vpack.c.bf16 %v3026_v29, %v8940_v0  ;;  %v8957_v29 = vld [vmem:[#allocation64_spill] sm:$0xff] }
 0x1cd   : > { %v8958_v0 = vpack.c.bf16 %v8956_v4, %v8957_v29  ;;  %v8979_v29 = vpack.c.bf16 %v7265_v30, %v7249_v25  ;;  %v8983_v25 = vpack.c.bf16 %v7313_v49, %v7308_v46  ;;  %v3021_v30 = vld [vmem:[#allocation2 + $0x117] sm:$0xff]  ;;  %v3320_v46 = vld [vmem:[#allocation2 + $0x40] sm:$0xff] }
 0x1ce   : > { %5030 = vmatmul.mubr.msk.bf16.gmra.mrb[8].mxu1 %vm708_vm11, %v8920_v35  ;;  %v2744_v35 = vpack.c.bf16 %v2728_v10, %v2727_v14  ;;  %v4573_v14 = vld [vmem:[%s8177_s4 + $0x10] sm:$0x3] }
 0x1cf   : > { %5033 = vmatprep.mubr.msk.bf16.mxu1 %vm708_vm11, %v8923_v55  ;;  %v8932_v55 = vld [vmem:[#allocation43_spill] sm:$0xff] }
 0x1d0   : > { %4928 = vmatmul.mubr.msk.bf16.gmra.mrb[56].mxu0 %vm708_vm11, %v8928_v21  ;;  %v8934_v43 = vpack.c.bf16 %v8932_v55, %v8933_v38  ;;  %v8937_v21 = vpack.c.bf16 %v8935_v44, %v8936_v54  ;;  %v8942_v10 = vld [vmem:[#allocation59_spill] sm:$0xff]  ;;  %v8953_v44 = vld [vmem:[#allocation74_spill] sm:$0xff] }
 0x1d1   : > { %4931 = vmatprep.mubr.msk.bf16.mxu0 %vm708_vm11, %v8931_v2  ;;  %v3416_v2 = vsel %vm8941_vm15, %v4556_v17, 0  ;;  %v8944_v36 = vpack.c.bf16 %v8942_v10, %v8943_v9  ;;  %v8949_v17 = vld [vmem:[#allocation62_spill] sm:$0xff]  ;;  %v8954_v54 = vld [vmem:[#allocation79_spill] sm:$0xff]  ;;  %v8964_v9 = vld [vmem:[#allocation96_spill] sm:$0xff] }
 0x1d2   : > { %v8951_v38 = vpack.c.bf16 %v8949_v17, %v8950_v48  ;;  %v8969_v17 = vld [vmem:[#allocation95_spill] sm:$0xff]  ;;  %v8970_v48 = vld [vmem:[#allocation94_spill] sm:$0xff] }
 0x1d3   : > { %v3322_v49 = vld [vmem:[#allocation2 + $0x50] sm:$0xff] }
 0x1d6   : > { %5034 = vmatmul.mubr.msk.bf16.gmra.mrb[12].mxu1 %vm708_vm11, %v2744_v35  ;;  %v8945_v35 = vld [vmem:[#allocation44_spill] sm:$0xff] }
 0x1d7   : > { %5039 = vmatprep.mubr.msk.bf16.mxu1 %vm708_vm11, %v8934_v43  ;;  %v8952_v43 = vpack.c.bf16 %v7209_v26, %v8700_v6  ;;  %v8962_v26 = vpack.c.bf16 %v7231_v37, %v8702_v50  ;;  %v8963_v6 = vld [vmem:[#allocation93_spill] sm:$0xff]  ;;  %v8975_v50 = vpack.c.bf16 %v7244_v12, %v7239_v41  ;;  %v8981_v41 = vpack.c.bf16 %v7287_v58, %v7282_v32  ;;  %v8985_v32 = vld [vmem:[#allocation10_spill] sm:$0xff] }
 0x1d8   : > { %4932 = vmatmul.mubr.msk.bf16.gmra.mrb[60].mxu0 %vm708_vm11, %v1798_v3  ;;  %v8946_v3 = vld [vmem:[#allocation47_spill] sm:$0xff]  ;;  %v8982_v12 = vpack.c.bf16 %v7301_v63, %v7296_v60  ;;  %vm8986_vm6 = vcmp.eq.s32.totalorder %v8985_v32, 1 }
 0x1d9   : > { %4937 = vmatprep.mubr.msk.bf16.mxu0 %vm708_vm11, %v8937_v21  ;;  %v8947_v55 = vpack.c.bf16 %v8945_v35, %v8946_v3  ;;  %v8955_v21 = vpack.c.bf16 %v8953_v44, %v8954_v54  ;;  %v8966_v35 = vld [vmem:[#allocation76_spill] sm:$0xff]  ;;  %v8976_v54 = vld [vmem:[#allocation99_spill] sm:$0xff]  ;;  %v3053_v58 = vsel %vm8986_vm6, %v3021_v30, 0.0  ;;  %v3348_v30 = vld [vmem:[#allocation2 + $0x120] sm:$0xff] }
 0x1da   : > { %v8967_v3 = vld [vmem:[#allocation80_spill] sm:$0xff] }
 0x1db   : > { %v8973_v44 = vld [vmem:[#allocation108_spill] sm:$0xff] }
 0x1de   : > { %5040 = vmatmul.mubr.msk.bf16.vlgmr.msra.gmra.mrb[16].mxu1 %vm708_vm11, %v3056_v57  ;;  %v8959_v57 = vld [vmem:[#allocation78_spill] sm:$0xff] }
 0x1df   : > { %5072 = vmatpush3.bf16.msra.mxu1 %v3416_v2  ;;  %5043 = vmatprep.mubr.msk.bf16.mxu1 %vm708_vm11, %v8944_v36  ;;  %v8960_v2 = vld [vmem:[#allocation72_spill] sm:$0xff]  ;;  %v8965_v36 = vpack.c.bf16 %v8963_v6, %v8964_v9  ;;  %v3742_v6 = vsel %vm8989_vm10, %v4573_v14, 0  ;;  %v3321_v9 = vld [vmem:[#allocation2 + $0x48] sm:$0xff] }
 0x1e0   : > { %4938 = vmatmul.mubr.msk.bf16.vlgmr.msra.gmra.mrb[32].mxu0 %vm708_vm11, %v8947_v55  ;;  %5440 = vmatprep.subr.msk.bf16.mxu1 %vm8948_vm13, %v4573_v14  ;;  %v8961_v10 = vpack.c.bf16 %v8959_v57, %v8960_v2  ;;  %v8968_v55 = vpack.c.bf16 %v8966_v35, %v8967_v3  ;;  %v3318_v57 = vld [vmem:[#allocation2 + $0x30] sm:$0xff]  ;;  %v8987_v2 = vld [vmem:[#allocation9_spill] sm:$0xff]  ;;  %v3327_v14 = vld [vmem:[#allocation2 + $0x78] sm:$0xff] }
 0x1e1   : > { %4941 = vmatprep.mubr.msk.bf16.mxu0 %vm708_vm11, %v8951_v38  ;;  %v8971_v38 = vpack.c.bf16 %v8969_v17, %v8970_v48  ;;  %vm8988_vm8 = vcmp.eq.s32.totalorder %v8987_v2, 1  ;;  %v3324_v35 = vld [vmem:[#allocation2 + $0x60] sm:$0xff]  ;;  %v3326_v3 = vld [vmem:[#allocation2 + $0x70] sm:$0xff]  ;;  %v3325_v48 = vld [vmem:[#allocation2 + $0x68] sm:$0xff] }
 0x1e6   : > { %5044 = vmatmul.mubr.msk.bf16.gmra.mrb[20].mxu1 %vm708_vm11, %v8952_v43  ;;  %v8972_v43 = vld [vmem:[#allocation112_spill] sm:$0xff] }
 0x1e7   : > { %5047 = vmatprep.mubr.msk.bf16.mxu1 %vm708_vm11, %v8955_v21  ;;  %v8974_v37 = vpack.c.bf16 %v8972_v43, %v8973_v44  ;;  %v8977_v21 = vld [vmem:[#allocation97_spill] sm:$0xff]  ;;  %v3330_v44 = vld [vmem:[#allocation2 + $0x90] sm:$0xff] }
 0x1e8   : > { %4942 = vmatmul.mubr.msk.bf16.gmra.mrb[36].mxu0 %vm708_vm11, %v8958_v0  ;;  %v8978_v4 = vpack.c.bf16 %v8976_v54, %v8977_v21  ;;  %v8980_v0 = vpack.c.bf16 %v7277_v56, %v7270_v40  ;;  %v8984_v40 = vpack.c.bf16 %v7328_v51, %v7318_v23  ;;  %v3022_v56 = vld [vmem:[#allocation2 + $0x11f] sm:$0xff] }
 0x1e9   : > { %4945 = vmatprep.mubr.msk.bf16.mxu0 %vm708_vm11, %v8961_v10  ;;  %v3054_v60 = vsel %vm8988_vm8, %v3022_v56, 0.0  ;;  %v3317_v10 = vld [vmem:[#allocation2 + $0x28] sm:$0xff]  ;;  %v3319_v23 = vld [vmem:[#allocation2 + $0x38] sm:$0xff]  ;;  %v3328_v43 = vld [vmem:[#allocation2 + $0x80] sm:$0xff] }
 0x1ea   : > { %v3070_v63 = vpack.c.bf16 %v3054_v60, %v3053_v58  ;;  %v3350_v51 = vpack.c.bf16 %v3320_v46, %v3319_v23  ;;  %v3332_v21 = vld [vmem:[#allocation2 + $0xa0] sm:$0xff]  ;;  %v8996_v56 = vld [vmem:[#allocation50_spill] sm:$0xff] }
 0x1eb   : > { %v8997_v32 = vpack.c.bf16 %v7390_v53, %v8996_v56  ;;  %v9001_v53 = vpack.c.bf16 %v7440_v62, %v7435_v20 }
 0x1ee   : > { %5048 = vmatmul.mubr.msk.bf16.gmra.mrb[24].mxu1 %vm708_vm11, %v8962_v26  ;;  %v3349_v26 = vpack.c.bf16 %v3318_v57, %v3317_v10  ;;  %v9016_v57 = vld [vmem:[#allocation84_spill] sm:$0xff] }
 0x1ef   : > { %5051 = vmatprep.mubr.msk.bf16.mxu1 %vm708_vm11, %v8965_v36  ;;  %v3351_v36 = vpack.c.bf16 %v3322_v49, %v3321_v9 }
 0x1f0   : > { %4946 = vmatmul.mubr.msk.bf16.gmra.mrb[40].mxu0 %vm708_vm11, %v8968_v55  ;;  %v3323_v55 = vld [vmem:[#allocation2 + $0x58] sm:$0xff] }
 0x1f1   : > { %4949 = vmatprep.mubr.msk.bf16.mxu0 %vm708_vm11, %v8971_v38  ;;  %v3352_v17 = vpack.c.bf16 %v3324_v35, %v3323_v55  ;;  %v3353_v38 = vpack.c.bf16 %v3326_v3, %v3325_v48 }
 0x1f6   : > { %5052 = vmatmul.mubr.msk.bf16.gmra.mrb[28].mxu1 %vm708_vm11, %v8974_v37  ;;  %v3354_v37 = vpack.c.bf16 %v3328_v43, %v3327_v14 }
 0x1f7   : > { %5055 = vmatprep.mubr.msk.bf16.mxu1 %vm708_vm11, %v8975_v50  ;;  %v3329_v50 = vld [vmem:[#allocation2 + $0x88] sm:$0xff] }
 0x1f8   : > { %4950 = vmatmul.mubr.msk.bf16.gmra.mrb[44].mxu0 %vm708_vm11, %v8978_v4  ;;  %v3355_v54 = vpack.c.bf16 %v3330_v44, %v3329_v50  ;;  %v3334_v4 = vld [vmem:[#allocation2 + $0xb0] sm:$0xff] }
 0x1fe   : > { %5056 = vmatmul.mubr.msk.bf16.gmra.mrb[0].mxu1 %vm708_vm11, %v8979_v29  ;;  %v3331_v29 = vld [vmem:[#allocation2 + $0x98] sm:$0xff] }
 0x1ff   : > { %5059 = vmatprep.mubr.msk.bf16.mxu1 %vm708_vm11, %v8980_v0  ;;  %v3356_v0 = vpack.c.bf16 %v3332_v21, %v3331_v29 }
 0x206   : > { %5060 = vmatmul.mubr.msk.bf16.gmra.mrb[4].mxu1 %vm708_vm11, %v8981_v41  ;;  %v3333_v41 = vld [vmem:[#allocation2 + $0xa8] sm:$0xff] }
 0x207   : > { %5063 = vmatprep.mubr.msk.bf16.mxu1 %vm708_vm11, %v8982_v12  ;;  %v3357_v12 = vpack.c.bf16 %v3334_v4, %v3333_v41 }
 0x20e   : > { %5064 = vmatmul.mubr.msk.bf16.gmra.mrb[8].mxu1 %vm708_vm11, %v8983_v25  ;;  %v4024_v25 = vld [vmem:[%s8179_s6] sm:$0x3] }
 0x20f   : > { %5067 = vmatprep.mubr.msk.bf16.mxu1 %vm708_vm11, %v8984_v40  ;;  %5441 = vmatprep.subr.msk.bf16.mxu0 %vm8990_vm7, %v4024_v25 }
 0x216   : > { %5068 = vmatmul.mubr.msk.bf16.gmra.mrb[12].mxu1 %vm708_vm11, %v3070_v63 }
 0x217   : > { %5073 = vmatprep.mubr.msk.bf16.mxu1 %vm708_vm11, %v3349_v26 }
 0x21e   : > { %5074 = vmatmul.mubr.msk.bf16.vlgmr.msra.gmra.mrb[16].mxu1 %vm708_vm11, %v3350_v51 }
 0x21f   : > { %5106 = vmatpush3.bf16.msra.mxu1 %v3742_v6  ;;  %5077 = vmatprep.mubr.msk.bf16.mxu1 %vm708_vm11, %v3351_v36 }
 0x226   : > { %5078 = vmatmul.mubr.msk.bf16.gmra.mrb[20].mxu1 %vm708_vm11, %v3352_v17 }
 0x227   : > { %5081 = vmatprep.mubr.msk.bf16.mxu1 %vm708_vm11, %v3353_v38 }
 0x22e   : > { %5082 = vmatmul.mubr.msk.bf16.gmra.mrb[24].mxu1 %vm708_vm11, %v3354_v37 }
 0x22f   : > { %5085 = vmatprep.mubr.msk.bf16.mxu1 %vm708_vm11, %v3355_v54 }
 0x236   : > { %5086 = vmatmul.mubr.msk.bf16.gmra.mrb[28].mxu1 %vm708_vm11, %v3356_v0 }
 0x237   : > { %5089 = vmatprep.mubr.msk.bf16.mxu1 %vm708_vm11, %v3357_v12 }
 0x23e   : > { %5090 = vmatmul.mubr.msk.bf16.gmra.mrb[0].mxu1 %vm708_vm11, %v8813_v15  ;;  %v3347_v15 = vld [vmem:[#allocation2 + $0x118] sm:$0xff] }
 0x23f   : > { %5093 = vmatprep.mubr.msk.bf16.mxu1 %vm708_vm11, %v8820_v22  ;;  %v4081_v22 = vsel %vm8991_vm5, %v4024_v25, 0 }
 0x240   : > { %5140 = vmatpush3.bf16.msra.mxu0 %v4081_v22 }
 0x246   : > { %5094 = vmatmul.mubr.msk.bf16.gmra.mrb[4].mxu1 %vm708_vm11, %v8821_v34  ;;  %v3364_v34 = vpack.c.bf16 %v3348_v30, %v3347_v15 }
 0x247   : > { %5097 = vmatprep.mubr.msk.bf16.mxu1 %vm708_vm11, %v8828_v39  ;;  %v8992_v39 = vpack.c.bf16 %v7354_v8, %v7349_v33  ;;  %v8998_v33 = vpack.c.bf16 %v7402_v7, %v7395_v59  ;;  %v8999_v8 = vpack.c.bf16 %v7412_v13, %v7407_v16  ;;  %v9002_v7 = vpack.c.bf16 %v7454_v24, %v7445_v18  ;;  %v9004_v59 = vld [vmem:[#allocation51_spill] sm:$0xff]  ;;  %v9006_v13 = vld [vmem:[#allocation48_spill] sm:$0xff]  ;;  %v3642_v18 = vld [vmem:[#allocation2 + $0x121] sm:$0xff] }
 0x248   : > { %v9003_v16 = vpack.c.bf16 %v7464_v31, %v7459_v28  ;;  %v3641_v24 = vld [vmem:[#allocation2 + $0x119] sm:$0xff]  ;;  %v3674_v60 = vsel %vm1750_vm0, %v3642_v18, 0.0 }
 0x249   : > { %v9012_v28 = vld [vmem:[#allocation57_spill] sm:$0xff]  ;;  %v9013_v31 = vld [vmem:[#allocation60_spill] sm:$0xff]  ;;  %v3673_v63 = vsel %vm1749_vm3, %v3641_v24, 0.0 }
 0x24a   : > { %v9014_v58 = vpack.c.bf16 %v9012_v28, %v9013_v31  ;;  %v3690_v26 = vpack.c.bf16 %v3674_v60, %v3673_v63 }
 0x24e   : > { %5098 = vmatmul.mubr.msk.bf16.gmra.mrb[8].mxu1 %vm708_vm11, %v8829_v61  ;;  %v8993_v61 = vpack.c.bf16 %v7364_v11, %v7359_v42  ;;  %v9000_v42 = vpack.c.bf16 %v7426_v19, %v7421_v27  ;;  %v9005_v11 = vpack.c.bf16 %v7483_v45, %v9004_v59  ;;  %v9009_v27 = vld [vmem:[#allocation53_spill] sm:$0xff]  ;;  %v9010_v19 = vld [vmem:[#allocation55_spill] sm:$0xff] }
 0x24f   : > { %5101 = vmatprep.mubr.msk.bf16.mxu1 %vm708_vm11, %v7594_v52  ;;  %v8994_v52 = vld [vmem:[#allocation52_spill] sm:$0xff]  ;;  %v9011_v62 = vpack.c.bf16 %v9009_v27, %v9010_v19  ;;  %v9015_v45 = vld [vmem:[#allocation67_spill] sm:$0xff] }
 0x250   : > { %v8995_v40 = vpack.c.bf16 %v7378_v47, %v8994_v52  ;;  %v9007_v47 = vld [vmem:[#allocation58_spill] sm:$0xff]  ;;  %v9017_v2 = vpack.c.bf16 %v9015_v45, %v9016_v57 }
 0x251   : > { %v9008_v20 = vpack.c.bf16 %v9006_v13, %v9007_v47 }
 0x256   : > { %5102 = vmatmul.mubr.msk.bf16.gmra.mrb[12].mxu1 %vm708_vm11, %v3364_v34 }
 0x257   : > { %5107 = vmatprep.mubr.msk.bf16.mxu1 %vm708_vm11, %v8992_v39  ;;  %v7977_v39 = vld [vmem:[%s8178_s5] ss:$0 sm:$0xff] }
 0x25e   : > { %5108 = vmatmul.mubr.msk.bf16.vlgmr.msra.gmra.mrb[16].mxu1 %vm708_vm11, %v8993_v61 }
 0x25f   : > { %5111 = vmatprep.mubr.msk.bf16.mxu1 %vm708_vm11, %v8995_v40 }
 0x266   : > { %5112 = vmatmul.mubr.msk.bf16.gmra.mrb[20].mxu1 %vm708_vm11, %v8997_v32 }
 0x267   : > { %5115 = vmatprep.mubr.msk.bf16.mxu1 %vm708_vm11, %v8998_v33 }
 0x26e   : > { %5116 = vmatmul.mubr.msk.bf16.gmra.mrb[24].mxu1 %vm708_vm11, %v8999_v8 }
 0x26f   : > { %5119 = vmatprep.mubr.msk.bf16.mxu1 %vm708_vm11, %v9000_v42 }
 0x276   : > { %5120 = vmatmul.mubr.msk.bf16.gmra.mrb[28].mxu1 %vm708_vm11, %v9001_v53 }
 0x277   : > { %5123 = vmatprep.mubr.msk.bf16.mxu1 %vm708_vm11, %v9002_v7 }
 0x27e   : > { %5124 = vmatmul.mubr.msk.bf16.gmra.mrb[0].mxu1 %vm708_vm11, %v9003_v16 }
 0x27f   : > { %5127 = vmatprep.mubr.msk.bf16.mxu1 %vm708_vm11, %v9005_v11 }
 0x286   : > { %5128 = vmatmul.mubr.msk.bf16.gmra.mrb[4].mxu1 %vm708_vm11, %v9008_v20 }
 0x287   : > { %5131 = vmatprep.mubr.msk.bf16.mxu1 %vm708_vm11, %v9011_v62 }
 0x28e   : > { %5132 = vmatmul.mubr.msk.bf16.gmra.mrb[8].mxu1 %vm708_vm11, %v9014_v58 }
 0x28f   : > { %5135 = vmatprep.mubr.msk.bf16.mxu1 %vm708_vm11, %v9017_v2 }
 0x293   : > { %v7933_v10 = vpop.f32.mrb[48].mxu0 }
 0x294   : > { %v7935_v46 = vpop.f32.mrb[49].mxu0 }
 0x295   : > { %v7937_v49 = vpop.f32.mrb[50].mxu0 }
 0x296   : > { %v7939_v23 = vpop.f32.mrb[51].mxu0  ;;  %5136 = vmatmul.mubr.msk.bf16.gmra.mrb[12].mxu1 %vm708_vm11, %v3690_v26 }
 0x29b   : > { %v7942_v51 = vpop.f32.mrb[52].mxu0 }
 0x29c   : > { %v7944_v6 = vpop.f32.mrb[53].mxu0 }
 0x29d   : > { %v7946_v1 = vpop.f32.mrb[54].mxu0 }
 0x29e   : > { %v7948_v9 = vpop.f32.mrb[55].mxu0 }
 0x2a3   : > { %v7950_v5 = vpop.f32.mrb[56].mxu0 }
 0x2a4   : > { %v7952_v36 = vpop.f32.mrb[57].mxu0 }
 0x2a5   : > { %v7954_v35 = vpop.f32.mrb[58].mxu0 }
 0x2a6   : > { %v7956_v3 = vpop.f32.mrb[59].mxu0 }
 0x2ab   : > { %v7958_v55 = vpop.f32.mrb[60].mxu0 }
 0x2ac   : > { %v7960_v17 = vpop.f32.mrb[61].mxu0 }
 0x2ad   : > { %v7962_v48 = vpop.f32.mrb[62].mxu0 }
 0x2ae   : > { %v7964_v38 = vpop.f32.mrb[63].mxu0 }
 0x2b3   : > { %v4939_v43 = vpop.f32.mrb[32].mxu0 }
 0x2b4   : > { %v2212_v44 = vpop.f32.mrb[33].mxu0 }
 0x2b5   : > { %v4940_v14 = vpop.f32.mrb[34].mxu0 }
 0x2b6   : > { %v2215_v37 = vpop.f32.mrb[35].mxu0 }
 0x2bb   : > { %v4943_v50 = vpop.f32.mrb[36].mxu0 }
 0x2bc   : > { %v2228_v54 = vpop.f32.mrb[37].mxu0 }
 0x2bd   : > { %v4944_v21 = vpop.f32.mrb[38].mxu0 }
 0x2be   : > { %v2231_v4 = vpop.f32.mrb[39].mxu0 }
 0x2c3   : > { %v4947_v29 = vpop.f32.mrb[40].mxu0 }
 0x2c4   : > { %v2244_v0 = vpop.f32.mrb[41].mxu0 }
 0x2c5   : > { %v4948_v41 = vpop.f32.mrb[42].mxu0 }
 0x2c6   : > { %v2247_v12 = vpop.f32.mrb[43].mxu0 }
 0x2cb   : > { %v7966_v25 = vpop.f32.mrb[44].mxu0 }
 0x2cc   : > { %v7968_v15 = vpop.f32.mrb[45].mxu0 }
 0x2cd   : > { %v7970_v30 = vpop.f32.mrb[46].mxu0 }
 0x2ce   : > { %v7972_v22 = vpop.f32.mrb[47].mxu0 }
 0x331   : > { %v5109_v34 = vpop.f32.mrb[16].mxu1 }
 0x332   : > { %v5175_v61 = vadd.f32 %v5109_v34, %v4939_v43  ;;  %v3778_v52 = vpop.f32.mrb[17].mxu1 }
 0x333   : > { %v5176_v40 = vadd.f32 %v3778_v52, %v2212_v44  ;;  %v5110_v56 = vpop.f32.mrb[18].mxu1 }
 0x334   : > { %v3946_v32 = vadd.f32 %v5175_v61, %v7977_v39  ;;  %v5177_v33 = vadd.f32 %v5110_v56, %v4940_v14  ;;  %v3781_v8 = vpop.f32.mrb[19].mxu1 }
 0x335   : > { %v3944_v42 = vadd.f32 %v5176_v40, %v7977_v39  ;;  %v5178_v53 = vadd.f32 %v3781_v8, %v2215_v37 }
 0x336   : > { %v3947_v7 = vadd.f32 %v5177_v33, %v7977_v39  ;;  %v3978_v59 = vmax.f32 %v3946_v32, 0.0 }
 0x337   : > { %v3945_v16 = vadd.f32 %v5178_v53, %v7977_v39  ;;  %v3976_v13 = vmax.f32 %v3944_v42, 0.0 }
 0x338   : > { %v3979_v11 = vmax.f32 %v3947_v7, 0.0 }
 0x339   : > { %v3977_v47 = vmax.f32 %v3945_v16, 0.0  ;;  %v5113_v20 = vpop.f32.mrb[20].mxu1 }
 0x33a   : > { %v4009_v27 = vpack.c.bf16 %v3979_v11, %v3978_v59  ;;  %v5179_v19 = vadd.f32 %v5113_v20, %v4943_v50  ;;  %v3794_v62 = vpop.f32.mrb[21].mxu1 }
 0x33b   : > { %v4008_v18 = vpack.c.bf16 %v3977_v47, %v3976_v13  ;;  %v5180_v24 = vadd.f32 %v3794_v62, %v2228_v54  ;;  %v5114_v28 = vpop.f32.mrb[22].mxu1 }
 0x33c   : > { %v3950_v31 = vadd.f32 %v5179_v19, %v7977_v39  ;;  %v5181_v58 = vadd.f32 %v5114_v28, %v4944_v21  ;;  %v3797_v45 = vpop.f32.mrb[23].mxu1 }
 0x33d   : > { %v3948_v57 = vadd.f32 %v5180_v24, %v7977_v39  ;;  %v5182_v2 = vadd.f32 %v3797_v45, %v2231_v4  ;;  %5141 = vmatprep.mubr.msk.bf16.mxu0 %vm708_vm11, %v4008_v18 }
 0x33e   : > { %v3951_v60 = vadd.f32 %v5181_v58, %v7977_v39  ;;  %5142 = vmatmul.mubr.msk.bf16.vlgmr.msra.gmra.mrb[64].mxu0 %vm708_vm11, %v4009_v27  ;;  %v3982_v26 = vmax.f32 %v3950_v31, 0.0 }
 0x33f   : > { %v3949_v63 = vadd.f32 %v5182_v2, %v7977_v39  ;;  %v3980_v44 = vmax.f32 %v3948_v57, 0.0 }
 0x340   : > { %v3983_v43 = vmax.f32 %v3951_v60, 0.0 }
 0x341   : > { %v3981_v14 = vmax.f32 %v3949_v63, 0.0  ;;  %v5117_v37 = vpop.f32.mrb[24].mxu1 }
 0x342   : > { %v4011_v50 = vpack.c.bf16 %v3983_v43, %v3982_v26  ;;  %v5183_v54 = vadd.f32 %v5117_v37, %v4947_v29  ;;  %v3810_v21 = vpop.f32.mrb[25].mxu1 }
 0x343   : > { %v4010_v34 = vpack.c.bf16 %v3981_v14, %v3980_v44  ;;  %v5184_v61 = vadd.f32 %v3810_v21, %v2244_v0  ;;  %v5118_v52 = vpop.f32.mrb[26].mxu1 }
 0x344   : > { %v3954_v4 = vadd.f32 %v5183_v54, %v7977_v39  ;;  %v5185_v40 = vadd.f32 %v5118_v52, %v4948_v41  ;;  %v3813_v56 = vpop.f32.mrb[27].mxu1 }
 0x345   : > { %v3952_v32 = vadd.f32 %v5184_v61, %v7977_v39  ;;  %v5186_v33 = vadd.f32 %v3813_v56, %v2247_v12  ;;  %5145 = vmatprep.mubr.msk.bf16.mxu0 %vm708_vm11, %v4010_v34 }
 0x346   : > { %v3955_v8 = vadd.f32 %v5185_v40, %v7977_v39  ;;  %5146 = vmatmul.mubr.msk.bf16.gmra.mrb[68].mxu0 %vm708_vm11, %v4011_v50  ;;  %v3986_v29 = vmax.f32 %v3954_v4, 0.0 }
 0x347   : > { %v3953_v42 = vadd.f32 %v5186_v33, %v7977_v39  ;;  %v3984_v7 = vmax.f32 %v3952_v32, 0.0 }
 0x348   : > { %v3987_v53 = vmax.f32 %v3955_v8, 0.0 }
 0x349   : > { %v3985_v0 = vmax.f32 %v3953_v42, 0.0  ;;  %v5121_v16 = vpop.f32.mrb[28].mxu1 }
 0x34a   : > { %v4013_v59 = vpack.c.bf16 %v3987_v53, %v3986_v29  ;;  %v5187_v41 = vadd.f32 %v5121_v16, %v7966_v25  ;;  %v3826_v11 = vpop.f32.mrb[29].mxu1 }
 0x34b   : > { %v4012_v13 = vpack.c.bf16 %v3985_v0, %v3984_v7  ;;  %v5188_v12 = vadd.f32 %v3826_v11, %v7968_v15  ;;  %v5122_v47 = vpop.f32.mrb[30].mxu1 }
 0x34c   : > { %v3958_v20 = vadd.f32 %v5187_v41, %v7977_v39  ;;  %v5189_v27 = vadd.f32 %v5122_v47, %v7970_v30  ;;  %v3829_v19 = vpop.f32.mrb[31].mxu1 }
 0x34d   : > { %v3956_v62 = vadd.f32 %v5188_v12, %v7977_v39  ;;  %v5190_v18 = vadd.f32 %v3829_v19, %v7972_v22  ;;  %5149 = vmatprep.mubr.msk.bf16.mxu0 %vm708_vm11, %v4012_v13 }
 0x34e   : > { %v3959_v24 = vadd.f32 %v5189_v27, %v7977_v39  ;;  %5150 = vmatmul.mubr.msk.bf16.gmra.mrb[72].mxu0 %vm708_vm11, %v4013_v59  ;;  %v3990_v28 = vmax.f32 %v3958_v20, 0.0 }
 0x34f   : > { %v3957_v25 = vadd.f32 %v5190_v18, %v7977_v39  ;;  %v3988_v31 = vmax.f32 %v3956_v62, 0.0 }
 0x350   : > { %v3991_v15 = vmax.f32 %v3959_v24, 0.0 }
 0x351   : > { %v3989_v58 = vmax.f32 %v3957_v25, 0.0  ;;  %v5125_v45 = vpop.f32.mrb[0].mxu1 }
 0x352   : > { %v4015_v57 = vpack.c.bf16 %v3991_v15, %v3990_v28  ;;  %v5191_v30 = vadd.f32 %v5125_v45, %v7933_v10  ;;  %v3842_v2 = vpop.f32.mrb[1].mxu1 }
 0x353   : > { %v4014_v60 = vpack.c.bf16 %v3989_v58, %v3988_v31  ;;  %v5192_v22 = vadd.f32 %v3842_v2, %v7935_v46  ;;  %v5126_v63 = vpop.f32.mrb[2].mxu1 }
 0x354   : > { %v3962_v26 = vadd.f32 %v5191_v30, %v7977_v39  ;;  %v5193_v43 = vadd.f32 %v5126_v63, %v7937_v49  ;;  %v3845_v44 = vpop.f32.mrb[3].mxu1 }
 0x355   : > { %v3960_v14 = vadd.f32 %v5192_v22, %v7977_v39  ;;  %v5194_v37 = vadd.f32 %v3845_v44, %v7939_v23  ;;  %5153 = vmatprep.mubr.msk.bf16.mxu0 %vm708_vm11, %v4014_v60 }
 0x356   : > { %v3963_v50 = vadd.f32 %v5193_v43, %v7977_v39  ;;  %5154 = vmatmul.mubr.msk.bf16.gmra.mrb[76].mxu0 %vm708_vm11, %v4015_v57  ;;  %v3994_v54 = vmax.f32 %v3962_v26, 0.0 }
 0x357   : > { %v3961_v10 = vadd.f32 %v5194_v37, %v7977_v39  ;;  %v3992_v21 = vmax.f32 %v3960_v14, 0.0 }
 0x358   : > { %v3995_v46 = vmax.f32 %v3963_v50, 0.0  ;;  %v5488_v50 = vld [vmem:[%s5616_s24 + $0x8] sm:$0xff]  }
 0x359   : > { %v3993_v34 = vmax.f32 %v3961_v10, 0.0  ;;  %v5129_v61 = vpop.f32.mrb[4].mxu1  ;;  %v341_v10 = vunpack.c.l.bf16 %v5488_v50 }
 0x35a   : > { %v4017_v52 = vpack.c.bf16 %v3995_v46, %v3994_v54  ;;  %v5195_v49 = vadd.f32 %v5129_v61, %v7942_v51  ;;  %v3858_v4 = vpop.f32.mrb[5].mxu1  ;;  %v5489_v54 = vld [vmem:[%s5616_s24] sm:$0xff]   ;;  %v342_v61 = vunpack.c.h.bf16 %v5488_v50 }
 0x35b   : > { %v4016_v40 = vpack.c.bf16 %v3993_v34, %v3992_v21  ;;  %v5196_v23 = vadd.f32 %v3858_v4, %v7944_v6  ;;  %v5130_v56 = vpop.f32.mrb[6].mxu1  ;;  %v339_v46 = vunpack.c.l.bf16 %v5489_v54 }
 0x35c   : > { %v3966_v32 = vadd.f32 %v5195_v49, %v7977_v39  ;;  %v5197_v33 = vadd.f32 %v5130_v56, %v7946_v1  ;;  %v3861_v8 = vpop.f32.mrb[7].mxu1 }
 0x35d   : > { %v3964_v42 = vadd.f32 %v5196_v23, %v7977_v39  ;;  %v5198_v29 = vadd.f32 %v3861_v8, %v7948_v9  ;;  %5157 = vmatprep.mubr.msk.bf16.mxu0 %vm708_vm11, %v4016_v40 }
 0x35e   : > { %v3967_v53 = vadd.f32 %v5197_v33, %v7977_v39  ;;  %5158 = vmatmul.mubr.msk.bf16.gmra.mrb[80].mxu0 %vm708_vm11, %v4017_v52  ;;  %v3998_v7 = vmax.f32 %v3966_v32, 0.0  ;;  %v340_v52 = vunpack.c.h.bf16 %v5489_v54  ;;  %v5494_v54 = vld [vmem:[%s5616_s24 + $0x38] sm:$0xff]  }
 0x35f   : > { %v3965_v51 = vadd.f32 %v5198_v29, %v7977_v39  ;;  %v3996_v0 = vmax.f32 %v3964_v42, 0.0 }
 0x360   : > { %v3999_v6 = vmax.f32 %v3967_v53, 0.0 }
 0x361   : > { %v3997_v16 = vmax.f32 %v3965_v51, 0.0  ;;  %v5133_v59 = vpop.f32.mrb[8].mxu1 }
 0x362   : > { %v4019_v41 = vpack.c.bf16 %v3999_v6, %v3998_v7  ;;  %v5199_v1 = vadd.f32 %v5133_v59, %v7950_v5  ;;  %v3874_v11 = vpop.f32.mrb[9].mxu1  ;;  %v5490_v7 = vld [vmem:[%s5616_s24 + $0x18] sm:$0xff]   ;;  %v5491_v59 = vld [vmem:[%s5616_s24 + $0x10] sm:$0xff]  }
 0x363   : > { %v4018_v13 = vpack.c.bf16 %v3997_v16, %v3996_v0  ;;  %v5200_v9 = vadd.f32 %v3874_v11, %v7952_v36  ;;  %v5134_v12 = vpop.f32.mrb[10].mxu1  ;;  %v345_v6 = vunpack.c.l.bf16 %v5490_v7 }
 0x364   : > { %v3970_v47 = vadd.f32 %v5199_v1, %v7977_v39  ;;  %v5201_v20 = vadd.f32 %v5134_v12, %v7954_v35  ;;  %v3877_v27 = vpop.f32.mrb[11].mxu1 }
 0x365   : > { %v3968_v19 = vadd.f32 %v5200_v9, %v7977_v39  ;;  %v5202_v62 = vadd.f32 %v3877_v27, %v7956_v3  ;;  %5161 = vmatprep.mubr.msk.bf16.mxu0 %vm708_vm11, %v4018_v13  ;;  %v346_v13 = vunpack.c.h.bf16 %v5490_v7 }
 0x366   : > { %v3971_v18 = vadd.f32 %v5201_v20, %v7977_v39  ;;  %5162 = vmatmul.mubr.msk.bf16.gmra.mrb[84].mxu0 %vm708_vm11, %v4019_v41  ;;  %v4002_v24 = vmax.f32 %v3970_v47, 0.0  ;;  %v343_v41 = vunpack.c.l.bf16 %v5491_v59  ;;  %v344_v47 = vunpack.c.h.bf16 %v5491_v59 }
 0x367   : > { %v3969_v5 = vadd.f32 %v5202_v62, %v7977_v39  ;;  %v4000_v25 = vmax.f32 %v3968_v19, 0.0 }
 0x368   : > { %v4003_v36 = vmax.f32 %v3971_v18, 0.0 }
 0x369   : > { %v4001_v28 = vmax.f32 %v3969_v5, 0.0  ;;  %v5137_v15 = vpop.f32.mrb[12].mxu1 }
 0x36a   : > { %v4021_v31 = vpack.c.bf16 %v4003_v36, %v4002_v24  ;;  %v5203_v35 = vadd.f32 %v5137_v15, %v7958_v55  ;;  %v3890_v58 = vpop.f32.mrb[13].mxu1  ;;  %v5492_v15 = vld [vmem:[%s5616_s24 + $0x28] sm:$0xff]  }
 0x36b   : > { %v4020_v45 = vpack.c.bf16 %v4001_v28, %v4000_v25  ;;  %v5204_v3 = vadd.f32 %v3890_v58, %v7960_v17  ;;  %v5138_v57 = vpop.f32.mrb[14].mxu1 }
 0x36c   : > { %v3974_v30 = vadd.f32 %v5203_v35, %v7977_v39  ;;  %v5205_v2 = vadd.f32 %v5138_v57, %v7962_v48  ;;  %v3893_v60 = vpop.f32.mrb[15].mxu1 }
 0x36d   : > { %v3972_v22 = vadd.f32 %v5204_v3, %v7977_v39  ;;  %v5206_v63 = vadd.f32 %v3893_v60, %v7964_v38  ;;  %5165 = vmatprep.mubr.msk.bf16.mxu0 %vm708_vm11, %v4020_v45  ;;  %v8050_v38 = vld [vmem:[%s8180_s7] ss:$0 sm:$0xff] }
 0x36e   : > { %v3975_v55 = vadd.f32 %v5205_v2, %v7977_v39  ;;  %5166 = vmatmul.mubr.msk.bf16.gmra.mrb[88].mxu0 %vm708_vm11, %v4021_v31  ;;  %v4006_v26 = vmax.f32 %v3974_v30, 0.0  ;;  %v349_v31 = vunpack.c.l.bf16 %v5492_v15  ;;  %v5493_v45 = vld [vmem:[%s5616_s24 + $0x20] sm:$0xff]   ;;  %v350_v2 = vunpack.c.h.bf16 %v5492_v15 }
 0x36f   : > { %v3973_v17 = vadd.f32 %v5206_v63, %v7977_v39  ;;  %v4004_v44 = vmax.f32 %v3972_v22, 0.0  ;;  %v347_v3 = vunpack.c.l.bf16 %v5493_v45  ;;  %v348_v63 = vunpack.c.h.bf16 %v5493_v45 }
 0x370   : > { %v4007_v43 = vmax.f32 %v3975_v55, 0.0 }
 0x371   : > { %v4005_v48 = vmax.f32 %v3973_v17, 0.0 }
 0x372   : > { %v4023_v14 = vpack.c.bf16 %v4007_v43, %v4006_v26 }
 0x373   : > { %v4022_v37 = vpack.c.bf16 %v4005_v48, %v4004_v44 }
 0x375   : > { %5169 = vmatprep.mubr.msk.bf16.mxu0 %vm708_vm11, %v4022_v37 }
 0x376   : > { %5170 = vmatmul.mubr.msk.bf16.gmra.mrb[92].mxu0 %vm708_vm11, %v4023_v14  ;;  %vm9018_vm11 = vcmask 130048  }
 0x377   : > { %vm9019_vm9 = vmmov %vm9018_vm11 }
 0x378   : > { %vm9020_vm12 = vmmov %vm9019_vm9 }
 0x379   : > { %vm9021_vm1 = vmmov %vm9019_vm9 }
 0x37a   : > { %vm9022_vm4 = vmmov %vm9021_vm1 }
 0x37b   : > { %vm9023_vm14 = vmmov %vm9021_vm1 }
 0x37c   : > { %vm9024_vm0 = vmmov %vm9021_vm1 }
 0x37d   : > { %vm9025_vm3 = vmmov %vm9024_vm0 }
 0x37e   : > { %vm9026_vm2 = vmmov %vm9024_vm0 }
 0x37f   : > { %vm9027_vm15 = vmmov %vm9024_vm0 }
 0x380   : > { %vm9028_vm13 = vmmov %vm9024_vm0 }
 0x381   : > { %vm9029_vm6 = vmmov %vm9024_vm0 }
 0x382   : > { %vm9030_vm8 = vmmov %vm9024_vm0 }
 0x383   : > { %vm9031_vm10 = vmmov %vm9024_vm0 }
 0x384   : > { %vm9032_vm7 = vmmov %vm9024_vm0 }
 0x385   : > { %vm9033_vm5 = vmmov %vm9024_vm0 }
 0x411   : > { %v5143_v39 = vpop.f32.mrb[64].mxu0 }
 0x412   : > { %v4126_v21 = vadd.f32 %v5143_v39, %v8050_v38  ;;  %v4117_v34 = vpop.f32.mrb[65].mxu0 }
 0x413   : > { %v4118_v49 = vadd.f32 %v8050_v38, %v4117_v34  ;;  %v5144_v4 = vpop.f32.mrb[66].mxu0  ;;  %v5495_v34 = vld [vmem:[%s5616_s24 + $0x30] sm:$0xff]  }
 0x414   : > { %v4246_v40 = vadd.f32 %v4126_v21, %v341_v10  ;;  %v4129_v23 = vadd.f32 %v5144_v4, %v8050_v38  ;;  %v4120_v56 = vpop.f32.mrb[67].mxu0  ;;  %v354_v4 = vunpack.c.h.bf16 %v5494_v54 }
 0x415   : > { %v4244_v32 = vadd.f32 %v4118_v49, %v339_v46  ;;  %v4121_v33 = vadd.f32 %v8050_v38, %v4120_v56  ;;  %v353_v46 = vunpack.c.l.bf16 %v5494_v54  ;;  %v352_v56 = vunpack.c.h.bf16 %v5495_v34 }
 0x416   : > { %v4278_v8 = vmax.f32 %v4246_v40, 0.0  ;;  %v4247_v42 = vadd.f32 %v4129_v23, %v342_v61  ;;  %v351_v61 = vunpack.c.l.bf16 %v5495_v34 }
 0x417   : > { %v4276_v29 = vmax.f32 %v4244_v32, 0.0  ;;  %v4245_v53 = vadd.f32 %v4121_v33, %v340_v52 }
 0x418   : > { %4310 = vst.msk [vmem:[%s8061_s12 + $0x10] sm:$0xff] %vm9018_vm11, %v4278_v8  ;;  %v4279_v51 = vmax.f32 %v4247_v42, 0.0  ;;  %vm9034_vm11 = vmmov %vm9024_vm0 }
 0x419   : > { %4308 = vst.msk [vmem:[%s8061_s12] sm:$0xff] %vm9019_vm9, %v4276_v29  ;;  %v4277_v0 = vmax.f32 %v4245_v53, 0.0  ;;  %v5147_v16 = vpop.f32.mrb[68].mxu0  ;;  %vm9035_vm9 = vmmov %vm9024_vm0 }
 0x41a   : > { %4311 = vst.msk [vmem:[%s8061_s12 + $0x18] sm:$0xff] %vm9020_vm12, %v4279_v51  ;;  %v4142_v1 = vadd.f32 %v5147_v16, %v8050_v38  ;;  %v4133_v11 = vpop.f32.mrb[69].mxu0  ;;  %v5496_v16 = vld [vmem:[%s5616_s24 + $0x48] sm:$0xff]   ;;  %vm9036_vm12 = vmmov %vm9024_vm0 }
 0x41b   : > { %4309 = vst.msk [vmem:[%s8061_s12 + $0x8] sm:$0xff] %vm9021_vm1, %v4277_v0  ;;  %v4134_v9 = vadd.f32 %v8050_v38, %v4133_v11  ;;  %v5148_v12 = vpop.f32.mrb[70].mxu0  ;;  %v357_v59 = vunpack.c.l.bf16 %v5496_v16  ;;  %v5497_v11 = vld [vmem:[%s5616_s24 + $0x40] sm:$0xff]   ;;  %vm9037_vm1 = vmmov %vm9024_vm0 }
 0x41c   : > { %v4250_v20 = vadd.f32 %v4142_v1, %v345_v6  ;;  %v4145_v27 = vadd.f32 %v5148_v12, %v8050_v38  ;;  %v4136_v19 = vpop.f32.mrb[71].mxu0 }
 0x41d   : > { %v4248_v62 = vadd.f32 %v4134_v9, %v343_v41  ;;  %v4137_v18 = vadd.f32 %v8050_v38, %v4136_v19  ;;  %v356_v19 = vunpack.c.h.bf16 %v5497_v11 }
 0x41e   : > { %v4282_v5 = vmax.f32 %v4250_v20, 0.0  ;;  %v4251_v24 = vadd.f32 %v4145_v27, %v346_v13  ;;  %v355_v13 = vunpack.c.l.bf16 %v5497_v11 }
 0x41f   : > { %v4280_v36 = vmax.f32 %v4248_v62, 0.0  ;;  %v4249_v25 = vadd.f32 %v4137_v18, %v344_v47  ;;  %v358_v47 = vunpack.c.h.bf16 %v5496_v16 }
 0x420   : > { %4314 = vst.msk [vmem:[%s8061_s12 + $0x30] sm:$0xff] %vm9022_vm4, %v4282_v5  ;;  %v4283_v28 = vmax.f32 %v4251_v24, 0.0  ;;  %vm9038_vm4 = vmmov %vm9024_vm0 }
 0x421   : > { %4312 = vst.msk [vmem:[%s8061_s12 + $0x20] sm:$0xff] %vm9023_vm14, %v4280_v36  ;;  %v4281_v35 = vmax.f32 %v4249_v25, 0.0  ;;  %v5151_v58 = vpop.f32.mrb[72].mxu0  ;;  %vm9039_vm14 = vmmov %vm9024_vm0 }
 0x422   : > { %4315 = vst.msk [vmem:[%s8061_s12 + $0x38] sm:$0xff] %vm9024_vm0, %v4283_v28  ;;  %v4158_v57 = vadd.f32 %v5151_v58, %v8050_v38  ;;  %v4149_v30 = vpop.f32.mrb[73].mxu0  ;;  %v5498_v58 = vld [vmem:[%s5616_s24 + $0x58] sm:$0xff]  }
 0x423   : > { %4313 = vst.msk [vmem:[%s8061_s12 + $0x28] sm:$0xff] %vm9025_vm3, %v4281_v35  ;;  %v4150_v60 = vadd.f32 %v8050_v38, %v4149_v30  ;;  %v5152_v22 = vpop.f32.mrb[74].mxu0  ;;  %v361_v45 = vunpack.c.l.bf16 %v5498_v58  ;;  %v5499_v30 = vld [vmem:[%s5616_s24 + $0x50] sm:$0xff]   ;;  %vm9040_vm3 = vmmov %vm9024_vm0 }
 0x424   : > { %v4254_v55 = vadd.f32 %v4158_v57, %v349_v31  ;;  %v4161_v17 = vadd.f32 %v5152_v22, %v8050_v38  ;;  %v4152_v26 = vpop.f32.mrb[75].mxu0 }
 0x425   : > { %v4252_v43 = vadd.f32 %v4150_v60, %v347_v3  ;;  %v4153_v44 = vadd.f32 %v8050_v38, %v4152_v26  ;;  %v360_v26 = vunpack.c.h.bf16 %v5499_v30 }
 0x426   : > { %v4286_v48 = vmax.f32 %v4254_v55, 0.0  ;;  %v4255_v14 = vadd.f32 %v4161_v17, %v350_v2  ;;  %v359_v2 = vunpack.c.l.bf16 %v5499_v30 }
 0x427   : > { %v4284_v37 = vmax.f32 %v4252_v43, 0.0  ;;  %v4253_v50 = vadd.f32 %v4153_v44, %v348_v63  ;;  %v362_v63 = vunpack.c.h.bf16 %v5498_v58 }
 0x428   : > { %4318 = vst.msk [vmem:[%s8061_s12 + $0x50] sm:$0xff] %vm9026_vm2, %v4286_v48  ;;  %v4287_v10 = vmax.f32 %v4255_v14, 0.0  ;;  %vm9041_vm2 = vmmov %vm9024_vm0 }
 0x429   : > { %4316 = vst.msk [vmem:[%s8061_s12 + $0x40] sm:$0xff] %vm9027_vm15, %v4284_v37  ;;  %v4285_v39 = vmax.f32 %v4253_v50, 0.0  ;;  %v5155_v21 = vpop.f32.mrb[76].mxu0  ;;  %vm9042_vm15 = vmmov %vm9024_vm0 }
 0x42a   : > { %4319 = vst.msk [vmem:[%s8061_s12 + $0x58] sm:$0xff] %vm9028_vm13, %v4287_v10  ;;  %v4174_v52 = vadd.f32 %v5155_v21, %v8050_v38  ;;  %v4165_v49 = vpop.f32.mrb[77].mxu0  ;;  %v5500_v21 = vld [vmem:[%s5616_s24 + $0x68] sm:$0xff]   ;;  %vm9043_vm13 = vmmov %vm9024_vm0 }
 0x42b   : > { %4317 = vst.msk [vmem:[%s8061_s12 + $0x48] sm:$0xff] %vm9029_vm6, %v4285_v39  ;;  %v4166_v40 = vadd.f32 %v8050_v38, %v4165_v49  ;;  %v5156_v23 = vpop.f32.mrb[78].mxu0  ;;  %v365_v34 = vunpack.c.l.bf16 %v5500_v21  ;;  %v5501_v49 = vld [vmem:[%s5616_s24 + $0x60] sm:$0xff]   ;;  %vm9044_vm6 = vmmov %vm9024_vm0 }
 0x42c   : > { %v4258_v32 = vadd.f32 %v4174_v52, %v353_v46  ;;  %v4177_v33 = vadd.f32 %v5156_v23, %v8050_v38  ;;  %v4168_v8 = vpop.f32.mrb[79].mxu0 }
 0x42d   : > { %v4256_v42 = vadd.f32 %v4166_v40, %v351_v61  ;;  %v4169_v29 = vadd.f32 %v8050_v38, %v4168_v8  ;;  %v364_v8 = vunpack.c.h.bf16 %v5501_v49 }
 0x42e   : > { %v4290_v53 = vmax.f32 %v4258_v32, 0.0  ;;  %v4259_v51 = vadd.f32 %v4177_v33, %v354_v4  ;;  %v363_v4 = vunpack.c.l.bf16 %v5501_v49 }
 0x42f   : > { %v4288_v7 = vmax.f32 %v4256_v42, 0.0  ;;  %v4257_v6 = vadd.f32 %v4169_v29, %v352_v56  ;;  %v366_v56 = vunpack.c.h.bf16 %v5500_v21 }
 0x430   : > { %4322 = vst.msk [vmem:[%s8061_s12 + $0x70] sm:$0xff] %vm9030_vm8, %v4290_v53  ;;  %v4291_v0 = vmax.f32 %v4259_v51, 0.0  ;;  %vm9045_vm8 = vmmov %vm9024_vm0 }
 0x431   : > { %4320 = vst.msk [vmem:[%s8061_s12 + $0x60] sm:$0xff] %vm9031_vm10, %v4288_v7  ;;  %v4289_v41 = vmax.f32 %v4257_v6, 0.0  ;;  %v5159_v1 = vpop.f32.mrb[80].mxu0  ;;  %vm9046_vm10 = vmmov %vm9024_vm0 }
 0x432   : > { %4323 = vst.msk [vmem:[%s8061_s12 + $0x78] sm:$0xff] %vm9032_vm7, %v4291_v0  ;;  %v4190_v9 = vadd.f32 %v5159_v1, %v8050_v38  ;;  %v4181_v12 = vpop.f32.mrb[81].mxu0  ;;  %v5502_v1 = vld [vmem:[%s5616_s24 + $0x78] sm:$0xff]   ;;  %vm9047_vm7 = vmmov %vm9024_vm0 }
 0x433   : > { %4321 = vst.msk [vmem:[%s8061_s12 + $0x68] sm:$0xff] %vm9033_vm5, %v4289_v41  ;;  %v4182_v20 = vadd.f32 %v8050_v38, %v4181_v12  ;;  %v5160_v27 = vpop.f32.mrb[82].mxu0  ;;  %v369_v11 = vunpack.c.l.bf16 %v5502_v1  ;;  %v5503_v12 = vld [vmem:[%s5616_s24 + $0x70] sm:$0xff]   ;;  %vm9048_vm5 = vmmov %vm9024_vm0 }
 0x434   : > { %v4262_v62 = vadd.f32 %v4190_v9, %v357_v59  ;;  %v4193_v18 = vadd.f32 %v5160_v27, %v8050_v38  ;;  %v4184_v5 = vpop.f32.mrb[83].mxu0 }
 0x435   : > { %v4260_v24 = vadd.f32 %v4182_v20, %v355_v13  ;;  %v4185_v36 = vadd.f32 %v8050_v38, %v4184_v5  ;;  %v368_v5 = vunpack.c.h.bf16 %v5503_v12 }
 0x436   : > { %v4294_v25 = vmax.f32 %v4262_v62, 0.0  ;;  %v4263_v28 = vadd.f32 %v4193_v18, %v358_v47  ;;  %v367_v47 = vunpack.c.l.bf16 %v5503_v12 }
 0x437   : > { %v4292_v15 = vmax.f32 %v4260_v24, 0.0  ;;  %v4261_v31 = vadd.f32 %v4185_v36, %v356_v19  ;;  %v370_v19 = vunpack.c.h.bf16 %v5502_v1 }
 0x438   : > { %4326 = vst.msk [vmem:[%s8061_s12 + $0x90] sm:$0xff] %vm9034_vm11, %v4294_v25  ;;  %v4295_v35 = vmax.f32 %v4263_v28, 0.0 }
 0x439   : > { %4324 = vst.msk [vmem:[%s8061_s12 + $0x80] sm:$0xff] %vm9035_vm9, %v4292_v15  ;;  %v4293_v3 = vmax.f32 %v4261_v31, 0.0  ;;  %v5163_v57 = vpop.f32.mrb[84].mxu0 }
 0x43a   : > { %4327 = vst.msk [vmem:[%s8061_s12 + $0x98] sm:$0xff] %vm9036_vm12, %v4295_v35  ;;  %v4206_v60 = vadd.f32 %v5163_v57, %v8050_v38  ;;  %v4197_v22 = vpop.f32.mrb[85].mxu0 }
 0x43b   : > { %4325 = vst.msk [vmem:[%s8061_s12 + $0x88] sm:$0xff] %vm9037_vm1, %v4293_v3  ;;  %v4198_v55 = vadd.f32 %v8050_v38, %v4197_v22  ;;  %v5164_v17 = vpop.f32.mrb[86].mxu0 }
 0x43c   : > { %v4266_v43 = vadd.f32 %v4206_v60, %v361_v45  ;;  %v4209_v44 = vadd.f32 %v5164_v17, %v8050_v38  ;;  %v4200_v48 = vpop.f32.mrb[87].mxu0 }
 0x43d   : > { %v4264_v14 = vadd.f32 %v4198_v55, %v359_v2  ;;  %v4201_v37 = vadd.f32 %v8050_v38, %v4200_v48 }
 0x43e   : > { %v4298_v50 = vmax.f32 %v4266_v43, 0.0  ;;  %v4267_v10 = vadd.f32 %v4209_v44, %v362_v63 }
 0x43f   : > { %v4296_v54 = vmax.f32 %v4264_v14, 0.0  ;;  %v4265_v46 = vadd.f32 %v4201_v37, %v360_v26 }
 0x440   : > { %4330 = vst.msk [vmem:[%s8061_s12 + $0xb0] sm:$0xff] %vm9038_vm4, %v4298_v50  ;;  %v4299_v39 = vmax.f32 %v4267_v10, 0.0 }
 0x441   : > { %4328 = vst.msk [vmem:[%s8061_s12 + $0xa0] sm:$0xff] %vm9039_vm14, %v4296_v54  ;;  %v4297_v61 = vmax.f32 %v4265_v46, 0.0  ;;  %v5167_v52 = vpop.f32.mrb[88].mxu0 }
 0x442   : > { %4331 = vst.msk [vmem:[%s8061_s12 + $0xb8] sm:$0xff] %vm9024_vm0, %v4299_v39  ;;  %v4222_v40 = vadd.f32 %v5167_v52, %v8050_v38  ;;  %v4213_v23 = vpop.f32.mrb[89].mxu0 }
 0x443   : > { %4329 = vst.msk [vmem:[%s8061_s12 + $0xa8] sm:$0xff] %vm9040_vm3, %v4297_v61  ;;  %v4214_v32 = vadd.f32 %v8050_v38, %v4213_v23  ;;  %v5168_v33 = vpop.f32.mrb[90].mxu0 }
 0x444   : > { %v4270_v42 = vadd.f32 %v4222_v40, %v365_v34  ;;  %v4225_v29 = vadd.f32 %v5168_v33, %v8050_v38  ;;  %v4216_v53 = vpop.f32.mrb[91].mxu0 }
 0x445   : > { %v4268_v51 = vadd.f32 %v4214_v32, %v363_v4  ;;  %v4217_v7 = vadd.f32 %v8050_v38, %v4216_v53 }
 0x446   : > { %v4302_v6 = vmax.f32 %v4270_v42, 0.0  ;;  %v4271_v0 = vadd.f32 %v4225_v29, %v366_v56 }
 0x447   : > { %v4300_v16 = vmax.f32 %v4268_v51, 0.0  ;;  %v4269_v59 = vadd.f32 %v4217_v7, %v364_v8 }
 0x448   : > { %4334 = vst.msk [vmem:[%s8061_s12 + $0xd0] sm:$0xff] %vm9041_vm2, %v4302_v6  ;;  %v4303_v41 = vmax.f32 %v4271_v0, 0.0 }
 0x449   : > { %4332 = vst.msk [vmem:[%s8061_s12 + $0xc0] sm:$0xff] %vm9042_vm15, %v4300_v16  ;;  %v4301_v13 = vmax.f32 %v4269_v59, 0.0  ;;  %v5171_v9 = vpop.f32.mrb[92].mxu0 }
 0x44a   : > { %4335 = vst.msk [vmem:[%s8061_s12 + $0xd8] sm:$0xff] %vm9043_vm13, %v4303_v41  ;;  %v4238_v20 = vadd.f32 %v5171_v9, %v8050_v38  ;;  %v4229_v27 = vpop.f32.mrb[93].mxu0 }
 0x44b   : > { %4333 = vst.msk [vmem:[%s8061_s12 + $0xc8] sm:$0xff] %vm9044_vm6, %v4301_v13  ;;  %v4230_v62 = vadd.f32 %v8050_v38, %v4229_v27  ;;  %v5172_v18 = vpop.f32.mrb[94].mxu0 }
 0x44c   : > { %v4274_v24 = vadd.f32 %v4238_v20, %v369_v11  ;;  %v4241_v36 = vadd.f32 %v5172_v18, %v8050_v38  ;;  %v4232_v25 = vpop.f32.mrb[95].mxu0 }
 0x44d   : > { %v4272_v28 = vadd.f32 %v4230_v62, %v367_v47  ;;  %v4233_v15 = vadd.f32 %v8050_v38, %v4232_v25 }
 0x44e   : > { %v4306_v31 = vmax.f32 %v4274_v24, 0.0  ;;  %v4275_v35 = vadd.f32 %v4241_v36, %v370_v19 }
 0x44f   : > { %v4304_v58 = vmax.f32 %v4272_v28, 0.0  ;;  %v4273_v45 = vadd.f32 %v4233_v15, %v368_v5 }
 0x450   : > { %4338 = vst.msk [vmem:[%s8061_s12 + $0xf0] sm:$0xff] %vm9045_vm8, %v4306_v31  ;;  %v4307_v3 = vmax.f32 %v4275_v35, 0.0 }
 0x451   : > { %4336 = vst.msk [vmem:[%s8061_s12 + $0xe0] sm:$0xff] %vm9046_vm10, %v4304_v58  ;;  %v4305_v57 = vmax.f32 %v4273_v45, 0.0 }
 0x452   : > { %4339 = vst.msk [vmem:[%s8061_s12 + $0xf8] sm:$0xff] %vm9047_vm7, %v4307_v3 }
 0x453   : > { %4337 = vst.msk [vmem:[%s8061_s12 + $0xe8] sm:$0xff] %vm9048_vm5, %v4305_v57 }
 0x454 PF: > { %s18_s27 = sadd.s32 1, %s5510_s27  }
 0x455   : > { %p15_p4 = scmp.ge.s32.totalorder %s18_s27, 4  }
 0x457   :  { %17 = sbr.rel (!%p15_p4) target bundleno = 1 (0x1), region = 90 }

</bundles_post_ra>
